<compile_context>
chip_gen: v7x
topology: tpu7x:2x2x1
jax: 0.10.0
libtpu: 0.0.40
codegen_flags: <defaults>
</compile_context>

<pallas_src>
import jax
import jax.numpy as jnp
from jax import lax
from jax.experimental import pallas as pl
from jax.experimental.pallas import tpu as pltpu


# ----------------------------- fused forward kernel --------------------------
def _forward_kernel(
    x0_ref, v_ref,
    xw_ref, xb_ref, vw_ref, vb_ref,
    nrm_ref, winx_ref, binx_ref, winz_ref, binz_ref,
    convw_ref, convb_ref, wdl_ref, bdl_ref,
    wb_ref, bb_ref, wc_ref, bc_ref, A_ref, D_ref,
    wout_ref, bout_ref,
    finw_ref, headw_ref, headb_ref,
    out_ref,
    h_scr, y_scr,
):
    f32, bf16 = jnp.float32, jnp.bfloat16
    li = pl.program_id(1)
    last_layer = pl.num_programs(1) - 1

    b_tile, steps, _ = v_ref.shape
    num_x = xw_ref.shape[0]
    L = num_x + steps
    d_inner = winx_ref.shape[1]
    d_state = A_ref.shape[0]
    K = convw_ref.shape[0]

    def mm(a, w):
        # contract the last (feature / lane) dim of `a` with the first dim of `w`
        return lax.dot_general(a, w, (((a.ndim - 1,), (0,)), ((), ())),
                               preferred_element_type=f32)

    def sigmoid(x):
        # divide pushed onto the EUP reciprocal slot (perf-review feedback)
        return pl.reciprocal(1.0 + jnp.exp(-x), approx=True)

    def softplus(x):
        # numerically stable softplus using only exp/log/max/abs
        return jnp.maximum(x, 0.0) + jnp.log(1.0 + jnp.exp(-jnp.abs(x)))

    # ---- token embedding: only on the first layer grid step (li == 0) ------
    @pl.when(li == 0)
    def _():
        x0 = x0_ref[...].astype(bf16)                            # (b_tile, 1, x_dim)
        for i in range(num_x):                                   # static, tiny
            tok = mm(x0, xw_ref[i]) + xb_ref[i]                  # (b_tile, 1, d_model)
            h_scr[:, pl.ds(i, 1), :] = tok
        v_tok = mm(v_ref[...].astype(bf16), vw_ref[...]) + vb_ref[...]
        h_scr[:, pl.ds(num_x, steps), :] = v_tok                 # (b_tile, steps, d_model)

    # ---------------------------- one Mamba block ----------------------------
    h = h_scr[...]                                               # (b_tile, L, d_model)
    var = jnp.mean(h * h, axis=-1, keepdims=True)
    hn = h * lax.rsqrt(var + 1e-5) * nrm_ref[...]                # RMSNorm (fp32)
    hn_b = hn.astype(bf16)

    x_in = mm(hn_b, winx_ref[...]) + binx_ref[...]               # (b_tile, L, d_inner)
    z = mm(hn_b, winz_ref[...]) + binz_ref[...]

    # causal depthwise conv1d: static shifted slices, O(L*d_inner) per tap
    convw = convw_ref[...]                                       # (K, d_inner)
    acc = x_in * convw[K - 1]
    for s in range(1, K):
        if s < L:
            shifted = jnp.concatenate(
                [jnp.zeros((b_tile, s, d_inner), f32), x_in[:, : L - s, :]], axis=1)
            acc = acc + shifted * convw[K - 1 - s]
    acc = acc + convb_ref[...]
    u = acc * sigmoid(acc)                                       # SiLU
    u_b = u.astype(bf16)

    # SSM parameter projections (dt_proj pre-folded into wdl; delta path fp32)
    delta = softplus(mm(u, wdl_ref[...]) + bdl_ref[...])         # (b_tile, L, d_inner)
    Bm = mm(u_b, wb_ref[...]) + bb_ref[...]                      # (b_tile, L, d_state)
    Cm = mm(u_b, wc_ref[...]) + bc_ref[...]                      # (b_tile, L, d_state)

    A = A_ref[...]                                               # (d_state, d_inner)
    du = delta * u

    # Precompute per-step decay / input tensors OFF the recurrence chain:
    #   dA_t  = exp(delta_t * A)                  (b_tile, S, d_inner)
    #   dBu_t = B_t (outer) (delta_t * u_t)       (b_tile, S, d_inner)
    dA_l, dBu_l, c_l = [], [], []
    for t in range(L):
        d_t = delta[:, t:t + 1, :]                               # (b_tile, 1, d_inner)
        du_t = du[:, t:t + 1, :]
        b_t = Bm[:, t:t + 1, :]                                  # (b_tile, 1, d_state)
        dA_l.append(jnp.exp(d_t * A))
        dBu_l.append(lax.dot_general(b_t, du_t, (((1,), (1,)), ((0,), (0,))),
                                     preferred_element_type=f32))
        c_l.append(Cm[:, t:t + 1, :])

    # Selective scan: serial body is a bare FMA; y_t contraction is not on the
    # recurrence chain.  Rows are stored to scratch at static sublane offsets.
    hstate = jnp.zeros((b_tile, d_state, d_inner), f32)
    for t in range(L):
        hstate = dA_l[t] * hstate + dBu_l[t]
        y_t = lax.dot_general(c_l[t], hstate, (((2,), (1,)), ((0,), (0,))),
                              preferred_element_type=f32)        # (b_tile, 1, d_inner)
        y_scr[:, pl.ds(t, 1), :] = y_t

    y = y_scr[...] + u * D_ref[...]
    y = y * (z * sigmoid(z))                                     # SiLU gate
    out = mm(y.astype(bf16), wout_ref[...]) + bout_ref[...]
    h_new = h + out
    h_scr[...] = h_new                                           # carry residual

    # ---- final RMSNorm + head (V-token rows only): last layer grid step ----
    @pl.when(li == last_layer)
    def _():
        var_f = jnp.mean(h_new * h_new, axis=-1, keepdims=True)
        hn_f = h_new * lax.rsqrt(var_f + 1e-5) * finw_ref[...]
        hv = hn_f[:, num_x:, :]                                  # (b_tile, steps, d_model)
        logits = mm(hv, headw_ref[...]) + headb_ref[...]         # lane-dense (steps, y_pad)
        out_ref[...] = logits.astype(out_ref.dtype)


# ----------------------------- parameter init --------------------------------
def init_params(key, cfg):
    d_model, d_inner = cfg["d_model"], cfg["d_inner"]
    d_state, d_conv, dt_rank = cfg["d_state"], cfg["d_conv"], cfg["dt_rank"]

    keys = iter(jax.random.split(key, 4 + cfg["n_layer"] * 8))

    def rnd(shape, scale=0.02):
        return scale * jax.random.normal(next(keys), shape, dtype=jnp.float32)

    params = {
        "x_embed_w": rnd((cfg["x_dim"], cfg["num_x_tokens"] * d_model)),
        "x_embed_b": jnp.zeros((cfg["num_x_tokens"] * d_model,), jnp.float32),
        "v_embed_w": rnd((cfg["v_dim"], d_model)),
        "v_embed_b": jnp.zeros((d_model,), jnp.float32),
        "layers": [],
        "final_norm_w": jnp.ones((d_model,), jnp.float32),
    }
    for _ in range(cfg["n_layer"]):
        layer = {
            "norm_w": jnp.ones((d_model,), jnp.float32),
            "in_proj_w": rnd((d_model, 2 * d_inner)),
            "in_proj_b": jnp.zeros((2 * d_inner,), jnp.float32),
            "conv_w": rnd((d_conv, d_inner), scale=0.1),
            "conv_b": jnp.zeros((d_inner,), jnp.float32),
            "x_proj_w": rnd((d_inner, dt_rank + 2 * d_state)),
            "x_proj_b": jnp.zeros((dt_rank + 2 * d_state,), jnp.float32),
            "dt_proj_w": rnd((dt_rank, d_inner), scale=0.1),
            "dt_proj_b": jnp.full((d_inner,), 0.1, jnp.float32),
            "A_log": jnp.log(
                jnp.broadcast_to(
                    jnp.arange(1, d_state + 1, dtype=jnp.float32)[:, None],
                    (d_state, d_inner),
                )
            ),
            "D": jnp.ones((d_inner,), jnp.float32),
            "out_proj_w": rnd((d_inner, d_model)),
            "out_proj_b": jnp.zeros((d_model,), jnp.float32),
        }
        params["layers"].append(layer)
    params["head_w"] = rnd((d_model, cfg["y_dim"]))
    params["head_b"] = jnp.zeros((cfg["y_dim"],), jnp.float32)
    return params


# ------------------- host-side packing / weight pre-composition --------------
def pack_params(params, cfg):
    dm, di = cfg["d_model"], cfg["d_inner"]
    S, K, R = cfg["d_state"], cfg["d_conv"], cfg["dt_rank"]
    nx, y_dim = cfg["num_x_tokens"], cfg["y_dim"]
    bf16, f32 = jnp.bfloat16, jnp.float32

    y_pad = ((y_dim + 127) // 128) * 128  # lane-dense head / output store

    def stack(fn):
        return jnp.stack([fn(l) for l in params["layers"]], axis=0)

    head_w = jnp.zeros((dm, y_pad), f32).at[:, :y_dim].set(params["head_w"])
    head_b = jnp.zeros((1, y_pad), f32).at[:, :y_dim].set(params["head_b"][None, :])

    return dict(
        x_emb_w=params["x_embed_w"].reshape(cfg["x_dim"], nx, dm)
                 .transpose(1, 0, 2).astype(bf16),                        # (nx, x_dim, dm)
        x_emb_b=params["x_embed_b"].reshape(nx, 1, dm).astype(f32),
        v_emb_w=params["v_embed_w"].astype(bf16),                         # (v_dim, dm)
        v_emb_b=params["v_embed_b"].reshape(1, dm).astype(f32),
        nrm_w=stack(lambda l: l["norm_w"].reshape(1, dm)).astype(f32),
        w_in_x=stack(lambda l: l["in_proj_w"][:, :di]).astype(bf16),
        b_in_x=stack(lambda l: l["in_proj_b"][:di].reshape(1, di)).astype(f32),
        w_in_z=stack(lambda l: l["in_proj_w"][:, di:]).astype(bf16),
        b_in_z=stack(lambda l: l["in_proj_b"][di:].reshape(1, di)).astype(f32),
        conv_w=stack(lambda l: l["conv_w"]).astype(f32),                  # (n_layer, K, di)
        conv_b=stack(lambda l: l["conv_b"].reshape(1, di)).astype(f32),
        # dt_proj folded into x_proj (exact precomposition, kept fp32 for fidelity)
        w_dl=stack(lambda l: l["x_proj_w"][:, :R] @ l["dt_proj_w"]).astype(f32),
        b_dl=stack(lambda l: (l["x_proj_b"][:R] @ l["dt_proj_w"]
                              + l["dt_proj_b"]).reshape(1, di)).astype(f32),
        w_b=stack(lambda l: l["x_proj_w"][:, R:R + S]).astype(bf16),      # (n_layer, di, S)
        b_b=stack(lambda l: l["x_proj_b"][R:R + S].reshape(1, S)).astype(f32),
        w_c=stack(lambda l: l["x_proj_w"][:, R + S:]).astype(bf16),
        b_c=stack(lambda l: l["x_proj_b"][R + S:].reshape(1, S)).astype(f32),
        A=stack(lambda l: -jnp.exp(l["A_log"])).astype(f32),              # (n_layer, S, di)
        D=stack(lambda l: l["D"].reshape(1, di)).astype(f32),
        w_out=stack(lambda l: l["out_proj_w"]).astype(bf16),
        b_out=stack(lambda l: l["out_proj_b"].reshape(1, dm)).astype(f32),
        final_norm_w=params["final_norm_w"].reshape(1, dm).astype(f32),
        head_w=head_w,                                                    # (dm, y_pad) fp32
        head_b=head_b,
    )


# ----------------------------- full forward ----------------------------------
def mamba_forward(packed, cfg, x_0, V):
    B, steps, v_dim = V.shape
    num_x = cfg["num_x_tokens"]
    L = num_x + steps
    x_dim = x_0.shape[-1]
    n_layer = cfg["n_layer"]
    y_pad = packed["head_w"].shape[-1]

    b_tile = 2 if B % 2 == 0 else 1          # >=2 grid steps so both v7x TCs get work
    n_btiles = B // b_tile

    # (name, is_per_layer_stacked)
    weight_order = [
        ("x_emb_w", False), ("x_emb_b", False), ("v_emb_w", False), ("v_emb_b", False),
        ("nrm_w", True), ("w_in_x", True), ("b_in_x", True), ("w_in_z", True), ("b_in_z", True),
        ("conv_w", True), ("conv_b", True), ("w_dl", True), ("b_dl", True),
        ("w_b", True), ("b_b", True), ("w_c", True), ("b_c", True),
        ("A", True), ("D", True), ("w_out", True), ("b_out", True),
        ("final_norm_w", False), ("head_w", False), ("head_b", False),
    ]
    weights = [packed[k] for k, _ in weight_order]

    const_maps = {2: (lambda b, li: (0, 0)), 3: (lambda b, li: (0, 0, 0))}
    layer_maps = {3: (lambda b, li: (li, 0, 0)), 4: (lambda b, li: (li, 0, 0, 0))}

    w_specs = []
    for (name, per_layer), arr in zip(weight_order, weights):
        if per_layer:
            # layer-streamed: only the current (and prefetched next) layer slab in VMEM
            w_specs.append(pl.BlockSpec((None,) + arr.shape[1:], layer_maps[arr.ndim]))
        else:
            # layer/batch-invariant weights (could be single-buffered via
            # pipeline_mode=pl.Buffered(1) to shave VMEM at real model sizes)
            w_specs.append(pl.BlockSpec(arr.shape, const_maps[arr.ndim]))

    in_specs = [
        pl.BlockSpec((b_tile, 1, x_dim), lambda b, li: (b, 0, 0)),        # x_0 tile
        pl.BlockSpec((b_tile, steps, v_dim), lambda b, li: (b, 0, 0)),    # V tile
    ] + w_specs

    logits_pad = pl.pallas_call(
        _forward_kernel,
        grid=(n_btiles, n_layer),
        in_specs=in_specs,
        out_specs=pl.BlockSpec((b_tile, steps, y_pad), lambda b, li: (b, 0, 0)),
        out_shape=jax.ShapeDtypeStruct((B, steps, y_pad), jnp.float32),
        scratch_shapes=[
            pltpu.VMEM((b_tile, L, cfg["d_model"]), jnp.float32),   # residual stream h
            pltpu.VMEM((b_tile, L, cfg["d_inner"]), jnp.float32),   # scan output rows
        ],
        compiler_params=pltpu.CompilerParams(
            dimension_semantics=("parallel", "arbitrary")),
    )(x_0.reshape(B, 1, x_dim), V, *weights)

    # drop the lane padding of the head (y_dim columns are the real logits)
    return logits_pad[:, :, : cfg["y_dim"]]


# ----------------------------- main -------------------------------------------
if __name__ == "__main__":
    cfg = dict(
        d_model=32, n_layer=2, num_x_tokens=2,
        x_dim=6, v_dim=5, y_dim=7,
        d_inner=64, d_state=8, d_conv=4, dt_rank=2,
    )
    batch, steps = 4, 8

    root = jax.random.PRNGKey(0)
    k_params, k_x, k_v = jax.random.split(root, 3)
    params = init_params(k_params, cfg)
    packed = pack_params(params, cfg)

    x_0 = jax.random.normal(k_x, (batch, cfg["x_dim"]), dtype=jnp.float32)
    V = jax.random.normal(k_v, (batch, steps, cfg["v_dim"]), dtype=jnp.float32)

    logits = mamba_forward(packed, cfg, x_0, V)
    jax.block_until_ready(logits)

    assert logits.shape == (batch, steps, cfg["y_dim"]), logits.shape
    assert bool(jnp.all(jnp.isfinite(logits)))
    print("KERNEL_OK")
</pallas_src>

<mosaic_0001>
module attributes {stable_mosaic.version = 11 : i64} {
  func.func @_forward_kernel(%arg0: i32, %arg1: i32, %arg2: memref<2x1x6xf32, #tpu.memory_space<vmem>>, %arg3: memref<2x8x5xf32, #tpu.memory_space<vmem>>, %arg4: memref<2x6x32xbf16, #tpu.memory_space<vmem>>, %arg5: memref<2x1x32xf32, #tpu.memory_space<vmem>>, %arg6: memref<5x32xbf16, #tpu.memory_space<vmem>>, %arg7: memref<1x32xf32, #tpu.memory_space<vmem>>, %arg8: memref<1x1x32xf32, #tpu.memory_space<vmem>>, %arg9: memref<1x32x64xbf16, #tpu.memory_space<vmem>>, %arg10: memref<1x1x64xf32, #tpu.memory_space<vmem>>, %arg11: memref<1x32x64xbf16, #tpu.memory_space<vmem>>, %arg12: memref<1x1x64xf32, #tpu.memory_space<vmem>>, %arg13: memref<1x4x64xf32, #tpu.memory_space<vmem>>, %arg14: memref<1x1x64xf32, #tpu.memory_space<vmem>>, %arg15: memref<1x64x64xf32, #tpu.memory_space<vmem>>, %arg16: memref<1x1x64xf32, #tpu.memory_space<vmem>>, %arg17: memref<1x64x8xbf16, #tpu.memory_space<vmem>>, %arg18: memref<1x1x8xf32, #tpu.memory_space<vmem>>, %arg19: memref<1x64x8xbf16, #tpu.memory_space<vmem>>, %arg20: memref<1x1x8xf32, #tpu.memory_space<vmem>>, %arg21: memref<1x8x64xf32, #tpu.memory_space<vmem>>, %arg22: memref<1x1x64xf32, #tpu.memory_space<vmem>>, %arg23: memref<1x64x32xbf16, #tpu.memory_space<vmem>>, %arg24: memref<1x1x32xf32, #tpu.memory_space<vmem>>, %arg25: memref<1x32xf32, #tpu.memory_space<vmem>>, %arg26: memref<32x128xf32, #tpu.memory_space<vmem>>, %arg27: memref<1x128xf32, #tpu.memory_space<vmem>>, %arg28: memref<2x8x128xf32, #tpu.memory_space<vmem>>, %arg29: memref<2x10x32xf32, #tpu.memory_space<vmem>>, %arg30: memref<2x10x64xf32, #tpu.memory_space<vmem>>) attributes {dimension_semantics = [#tpu.dimension_semantics<parallel>, #tpu.dimension_semantics<arbitrary>], iteration_bounds = array<i64: 2, 2>, scalar_prefetch = 0 : i64, scratch_operands = 2 : i64, tpu.core_type = #tpu.core_type<tc>, window_params = [{transform_indices = @transform_0, window_bounds = array<i64: 2, 1, 6>}, {transform_indices = @transform_1, window_bounds = array<i64: 2, 8, 5>}, {pipeline_mode = #tpu.pipeline_mode<synchronous>, transform_indices = @transform_2, window_bounds = array<i64: 2, 6, 32>}, {pipeline_mode = #tpu.pipeline_mode<synchronous>, transform_indices = @transform_3, window_bounds = array<i64: 2, 1, 32>}, {pipeline_mode = #tpu.pipeline_mode<synchronous>, transform_indices = @transform_4, window_bounds = array<i64: 5, 32>}, {pipeline_mode = #tpu.pipeline_mode<synchronous>, transform_indices = @transform_5, window_bounds = array<i64: 1, 32>}, {transform_indices = @transform_6, window_bounds = array<i64: 1, 1, 32>}, {transform_indices = @transform_7, window_bounds = array<i64: 1, 32, 64>}, {transform_indices = @transform_8, window_bounds = array<i64: 1, 1, 64>}, {transform_indices = @transform_9, window_bounds = array<i64: 1, 32, 64>}, {transform_indices = @transform_10, window_bounds = array<i64: 1, 1, 64>}, {transform_indices = @transform_11, window_bounds = array<i64: 1, 4, 64>}, {transform_indices = @transform_12, window_bounds = array<i64: 1, 1, 64>}, {transform_indices = @transform_13, window_bounds = array<i64: 1, 64, 64>}, {transform_indices = @transform_14, window_bounds = array<i64: 1, 1, 64>}, {transform_indices = @transform_15, window_bounds = array<i64: 1, 64, 8>}, {transform_indices = @transform_16, window_bounds = array<i64: 1, 1, 8>}, {transform_indices = @transform_17, window_bounds = array<i64: 1, 64, 8>}, {transform_indices = @transform_18, window_bounds = array<i64: 1, 1, 8>}, {transform_indices = @transform_19, window_bounds = array<i64: 1, 8, 64>}, {transform_indices = @transform_20, window_bounds = array<i64: 1, 1, 64>}, {transform_indices = @transform_21, window_bounds = array<i64: 1, 64, 32>}, {transform_indices = @transform_22, window_bounds = array<i64: 1, 1, 32>}, {pipeline_mode = #tpu.pipeline_mode<synchronous>, transform_indices = @transform_23, window_bounds = array<i64: 1, 32>}, {pipeline_mode = #tpu.pipeline_mode<synchronous>, transform_indices = @transform_24, window_bounds = array<i64: 32, 128>}, {pipeline_mode = #tpu.pipeline_mode<synchronous>, transform_indices = @transform_25, window_bounds = array<i64: 1, 128>}, {transform_indices = @transform_26, window_bounds = array<i64: 2, 8, 128>}]} {
    %c0_i32 = arith.constant 0 : i32
    %0 = arith.cmpi eq, %arg1, %c0_i32 : i32
    %1 = arith.extui %0 : i1 to i32
    %c0_i32_0 = arith.constant 0 : i32
    %2 = arith.cmpi ne, %1, %c0_i32_0 : i32
    scf.if %2 {
      %c0_121 = arith.constant 0 : index
      %c0_122 = arith.constant 0 : index
      %c0_123 = arith.constant 0 : index
      %290 = vector.load %arg2[%c0_121, %c0_122, %c0_123] : memref<2x1x6xf32, #tpu.memory_space<vmem>>, vector<2x1x6xf32>
      %291 = arith.truncf %290 : vector<2x1x6xf32> to vector<2x1x6xbf16>
      %c0_124 = arith.constant 0 : index
      %c0_125 = arith.constant 0 : index
      %c0_126 = arith.constant 0 : index
      %292 = vector.load %arg4[%c0_124, %c0_125, %c0_126] : memref<2x6x32xbf16, #tpu.memory_space<vmem>>, vector<1x6x32xbf16>
      %293 = vector.shape_cast %292 : vector<1x6x32xbf16> to vector<6x32xbf16>
      %cst_127 = arith.constant dense<0.000000e+00> : vector<2x1x32xf32>
      %294 = tpu.matmul %291, %293, %cst_127 {dimension_numbers = #tpu.dot_dimension_numbers<[2], [0], [0, 1], [1], [0, 0, 0, 1, 1, 1], [], []>} : vector<2x1x6xbf16>, vector<6x32xbf16>, vector<2x1x32xf32> -> vector<2x1x32xf32>
      %c0_128 = arith.constant 0 : index
      %c0_129 = arith.constant 0 : index
      %c0_130 = arith.constant 0 : index
      %295 = vector.load %arg5[%c0_128, %c0_129, %c0_130] : memref<2x1x32xf32, #tpu.memory_space<vmem>>, vector<1x1x32xf32>
      %296 = vector.shape_cast %295 : vector<1x1x32xf32> to vector<1x32xf32>
      %297 = vector.shape_cast %296 : vector<1x32xf32> to vector<1x1x32xf32>
      %298 = vector.broadcast %297 : vector<1x1x32xf32> to vector<2x1x32xf32>
      %299 = arith.addf %294, %298 : vector<2x1x32xf32>
      %c0_131 = arith.constant 0 : index
      %c0_132 = arith.constant 0 : index
      %c0_133 = arith.constant 0 : index
      %300 = vector.load %arg29[%c0_131, %c0_132, %c0_133] : memref<2x10x32xf32, #tpu.memory_space<vmem>>, vector<2x1x32xf32>
      tpu.vector_store %arg29[%c0_131, %c0_132, %c0_133], %299 {strides = array<i32>} : memref<2x10x32xf32, #tpu.memory_space<vmem>>, vector<2x1x32xf32>,
      %c1_134 = arith.constant 1 : index
      %c0_135 = arith.constant 0 : index
      %c0_136 = arith.constant 0 : index
      %301 = vector.load %arg4[%c1_134, %c0_135, %c0_136] : memref<2x6x32xbf16, #tpu.memory_space<vmem>>, vector<1x6x32xbf16>
      %302 = vector.shape_cast %301 : vector<1x6x32xbf16> to vector<6x32xbf16>
      %cst_137 = arith.constant dense<0.000000e+00> : vector<2x1x32xf32>
      %303 = tpu.matmul %291, %302, %cst_137 {dimension_numbers = #tpu.dot_dimension_numbers<[2], [0], [0, 1], [1], [0, 0, 0, 1, 1, 1], [], []>} : vector<2x1x6xbf16>, vector<6x32xbf16>, vector<2x1x32xf32> -> vector<2x1x32xf32>
      %c1_138 = arith.constant 1 : index
      %c0_139 = arith.constant 0 : index
      %c0_140 = arith.constant 0 : index
      %304 = vector.load %arg5[%c1_138, %c0_139, %c0_140] : memref<2x1x32xf32, #tpu.memory_space<vmem>>, vector<1x1x32xf32>
      %305 = vector.shape_cast %304 : vector<1x1x32xf32> to vector<1x32xf32>
      %306 = vector.shape_cast %305 : vector<1x32xf32> to vector<1x1x32xf32>
      %307 = vector.broadcast %306 : vector<1x1x32xf32> to vector<2x1x32xf32>
      %308 = arith.addf %303, %307 : vector<2x1x32xf32>
      %c0_141 = arith.constant 0 : index
      %c1_142 = arith.constant 1 : index
      %c0_143 = arith.constant 0 : index
      %309 = vector.load %arg29[%c0_141, %c1_142, %c0_143] : memref<2x10x32xf32, #tpu.memory_space<vmem>>, vector<2x1x32xf32>
      tpu.vector_store %arg29[%c0_141, %c1_142, %c0_143], %308 {strides = array<i32>} : memref<2x10x32xf32, #tpu.memory_space<vmem>>, vector<2x1x32xf32>,
      %c0_144 = arith.constant 0 : index
      %c0_145 = arith.constant 0 : index
      %c0_146 = arith.constant 0 : index
      %310 = vector.load %arg3[%c0_144, %c0_145, %c0_146] : memref<2x8x5xf32, #tpu.memory_space<vmem>>, vector<2x8x5xf32>
      %311 = arith.truncf %310 : vector<2x8x5xf32> to vector<2x8x5xbf16>
      %c0_147 = arith.constant 0 : index
      %c0_148 = arith.constant 0 : index
      %312 = vector.load %arg6[%c0_147, %c0_148] : memref<5x32xbf16, #tpu.memory_space<vmem>>, vector<5x32xbf16>
      %cst_149 = arith.constant dense<0.000000e+00> : vector<2x8x32xf32>
      %313 = tpu.matmul %311, %312, %cst_149 {dimension_numbers = #tpu.dot_dimension_numbers<[2], [0], [0, 1], [1], [0, 0, 0, 1, 1, 1], [], []>} : vector<2x8x5xbf16>, vector<5x32xbf16>, vector<2x8x32xf32> -> vector<2x8x32xf32>
      %c0_150 = arith.constant 0 : index
      %c0_151 = arith.constant 0 : index
      %314 = vector.load %arg7[%c0_150, %c0_151] : memref<1x32xf32, #tpu.memory_space<vmem>>, vector<1x32xf32>
      %315 = vector.shape_cast %314 : vector<1x32xf32> to vector<1x1x32xf32>
      %316 = vector.broadcast %315 : vector<1x1x32xf32> to vector<2x8x32xf32>
      %317 = arith.addf %313, %316 : vector<2x8x32xf32>
      %c0_152 = arith.constant 0 : index
      %c2_153 = arith.constant 2 : index
      %c0_154 = arith.constant 0 : index
      %318 = vector.load %arg29[%c0_152, %c2_153, %c0_154] : memref<2x10x32xf32, #tpu.memory_space<vmem>>, vector<2x8x32xf32>
      tpu.vector_store %arg29[%c0_152, %c2_153, %c0_154], %317 {strides = array<i32>} : memref<2x10x32xf32, #tpu.memory_space<vmem>>, vector<2x8x32xf32>,
    } else {
    }
    %c0 = arith.constant 0 : index
    %c0_1 = arith.constant 0 : index
    %c0_2 = arith.constant 0 : index
    %3 = vector.load %arg29[%c0, %c0_1, %c0_2] : memref<2x10x32xf32, #tpu.memory_space<vmem>>, vector<2x10x32xf32>
    %4 = arith.mulf %3, %3 : vector<2x10x32xf32>
    %cst = arith.constant dense<0.000000e+00> : vector<2x10xf32>
    %5 = vector.multi_reduction <add>, %4, %cst [2] : vector<2x10x32xf32> to vector<2x10xf32>
    %6 = vector.shape_cast %5 : vector<2x10xf32> to vector<2x10x1xf32>
    %cst_3 = arith.constant 3.200000e+01 : f32
    %7 = vector.broadcast %cst_3 : f32 to vector<2x10x1xf32>
    %8 = arith.divf %6, %7 : vector<2x10x1xf32>
    %cst_4 = arith.constant 9.99999974E-6 : f32
    %9 = vector.broadcast %cst_4 : f32 to vector<2x10x1xf32>
    %10 = arith.addf %8, %9 : vector<2x10x1xf32>
    %11 = math.rsqrt %10 : vector<2x10x1xf32>
    %12 = vector.broadcast %11 : vector<2x10x1xf32> to vector<2x10x32xf32>
    %13 = arith.mulf %3, %12 : vector<2x10x32xf32>
    %c0_5 = arith.constant 0 : index
    %c0_6 = arith.constant 0 : index
    %c0_7 = arith.constant 0 : index
    %14 = vector.load %arg8[%c0_5, %c0_6, %c0_7] : memref<1x1x32xf32, #tpu.memory_space<vmem>>, vector<1x1x32xf32>
    %15 = vector.shape_cast %14 : vector<1x1x32xf32> to vector<1x32xf32>
    %16 = vector.shape_cast %15 : vector<1x32xf32> to vector<1x1x32xf32>
    %17 = vector.broadcast %16 : vector<1x1x32xf32> to vector<2x10x32xf32>
    %18 = arith.mulf %13, %17 : vector<2x10x32xf32>
    %19 = arith.truncf %18 : vector<2x10x32xf32> to vector<2x10x32xbf16>
    %c0_8 = arith.constant 0 : index
    %c0_9 = arith.constant 0 : index
    %c0_10 = arith.constant 0 : index
    %20 = vector.load %arg9[%c0_8, %c0_9, %c0_10] : memref<1x32x64xbf16, #tpu.memory_space<vmem>>, vector<1x32x64xbf16>
    %21 = vector.shape_cast %20 : vector<1x32x64xbf16> to vector<32x64xbf16>
    %cst_11 = arith.constant dense<0.000000e+00> : vector<2x10x64xf32>
    %22 = tpu.matmul %19, %21, %cst_11 {dimension_numbers = #tpu.dot_dimension_numbers<[2], [0], [0, 1], [1], [0, 0, 0, 1, 1, 1], [], []>} : vector<2x10x32xbf16>, vector<32x64xbf16>, vector<2x10x64xf32> -> vector<2x10x64xf32>
    %c0_12 = arith.constant 0 : index
    %c0_13 = arith.constant 0 : index
    %c0_14 = arith.constant 0 : index
    %23 = vector.load %arg10[%c0_12, %c0_13, %c0_14] : memref<1x1x64xf32, #tpu.memory_space<vmem>>, vector<1x1x64xf32>
    %24 = vector.shape_cast %23 : vector<1x1x64xf32> to vector<1x64xf32>
    %25 = vector.shape_cast %24 : vector<1x64xf32> to vector<1x1x64xf32>
    %26 = vector.broadcast %25 : vector<1x1x64xf32> to vector<2x10x64xf32>
    %27 = arith.addf %22, %26 : vector<2x10x64xf32>
    %c0_15 = arith.constant 0 : index
    %c0_16 = arith.constant 0 : index
    %c0_17 = arith.constant 0 : index
    %28 = vector.load %arg11[%c0_15, %c0_16, %c0_17] : memref<1x32x64xbf16, #tpu.memory_space<vmem>>, vector<1x32x64xbf16>
    %29 = vector.shape_cast %28 : vector<1x32x64xbf16> to vector<32x64xbf16>
    %cst_18 = arith.constant dense<0.000000e+00> : vector<2x10x64xf32>
    %30 = tpu.matmul %19, %29, %cst_18 {dimension_numbers = #tpu.dot_dimension_numbers<[2], [0], [0, 1], [1], [0, 0, 0, 1, 1, 1], [], []>} : vector<2x10x32xbf16>, vector<32x64xbf16>, vector<2x10x64xf32> -> vector<2x10x64xf32>
    %c0_19 = arith.constant 0 : index
    %c0_20 = arith.constant 0 : index
    %c0_21 = arith.constant 0 : index
    %31 = vector.load %arg12[%c0_19, %c0_20, %c0_21] : memref<1x1x64xf32, #tpu.memory_space<vmem>>, vector<1x1x64xf32>
    %32 = vector.shape_cast %31 : vector<1x1x64xf32> to vector<1x64xf32>
    %33 = vector.shape_cast %32 : vector<1x64xf32> to vector<1x1x64xf32>
    %34 = vector.broadcast %33 : vector<1x1x64xf32> to vector<2x10x64xf32>
    %35 = arith.addf %30, %34 : vector<2x10x64xf32>
    %c0_22 = arith.constant 0 : index
    %c0_23 = arith.constant 0 : index
    %c0_24 = arith.constant 0 : index
    %36 = vector.load %arg13[%c0_22, %c0_23, %c0_24] : memref<1x4x64xf32, #tpu.memory_space<vmem>>, vector<1x4x64xf32>
    %37 = vector.shape_cast %36 : vector<1x4x64xf32> to vector<4x64xf32>
    %38 = vector.extract_strided_slice %37 {offsets = [3, 0], sizes = [1, 64], strides = [1, 1]} : vector<4x64xf32> to vector<1x64xf32>
    %39 = vector.shape_cast %38 : vector<1x64xf32> to vector<64xf32>
    %40 = vector.shape_cast %39 : vector<64xf32> to vector<1x1x64xf32>
    %41 = vector.broadcast %40 : vector<1x1x64xf32> to vector<2x10x64xf32>
    %42 = arith.mulf %27, %41 : vector<2x10x64xf32>
    %cst_25 = arith.constant 0.000000e+00 : f32
    %43 = vector.broadcast %cst_25 : f32 to vector<2x1x64xf32>
    %44 = vector.extract_strided_slice %27 {offsets = [0, 0, 0], sizes = [2, 9, 64], strides = [1, 1, 1]} : vector<2x10x64xf32> to vector<2x9x64xf32>
    %45 = tpu.concatenate %43, %44 in 1 : vector<2x1x64xf32>, vector<2x9x64xf32> -> vector<2x10x64xf32>
    %46 = vector.extract_strided_slice %37 {offsets = [2, 0], sizes = [1, 64], strides = [1, 1]} : vector<4x64xf32> to vector<1x64xf32>
    %47 = vector.shape_cast %46 : vector<1x64xf32> to vector<64xf32>
    %48 = vector.shape_cast %47 : vector<64xf32> to vector<1x1x64xf32>
    %49 = vector.broadcast %48 : vector<1x1x64xf32> to vector<2x10x64xf32>
    %50 = arith.mulf %45, %49 : vector<2x10x64xf32>
    %51 = arith.addf %42, %50 : vector<2x10x64xf32>
    %cst_26 = arith.constant 0.000000e+00 : f32
    %52 = vector.broadcast %cst_26 : f32 to vector<2x2x64xf32>
    %53 = vector.extract_strided_slice %27 {offsets = [0, 0, 0], sizes = [2, 8, 64], strides = [1, 1, 1]} : vector<2x10x64xf32> to vector<2x8x64xf32>
    %54 = tpu.concatenate %52, %53 in 1 : vector<2x2x64xf32>, vector<2x8x64xf32> -> vector<2x10x64xf32>
    %55 = vector.extract_strided_slice %37 {offsets = [1, 0], sizes = [1, 64], strides = [1, 1]} : vector<4x64xf32> to vector<1x64xf32>
    %56 = vector.shape_cast %55 : vector<1x64xf32> to vector<64xf32>
    %57 = vector.shape_cast %56 : vector<64xf32> to vector<1x1x64xf32>
    %58 = vector.broadcast %57 : vector<1x1x64xf32> to vector<2x10x64xf32>
    %59 = arith.mulf %54, %58 : vector<2x10x64xf32>
    %60 = arith.addf %51, %59 : vector<2x10x64xf32>
    %cst_27 = arith.constant 0.000000e+00 : f32
    %61 = vector.broadcast %cst_27 : f32 to vector<2x3x64xf32>
    %62 = vector.extract_strided_slice %27 {offsets = [0, 0, 0], sizes = [2, 7, 64], strides = [1, 1, 1]} : vector<2x10x64xf32> to vector<2x7x64xf32>
    %63 = tpu.concatenate %61, %62 in 1 : vector<2x3x64xf32>, vector<2x7x64xf32> -> vector<2x10x64xf32>
    %64 = vector.extract_strided_slice %37 {offsets = [0, 0], sizes = [1, 64], strides = [1, 1]} : vector<4x64xf32> to vector<1x64xf32>
    %65 = vector.shape_cast %64 : vector<1x64xf32> to vector<64xf32>
    %66 = vector.shape_cast %65 : vector<64xf32> to vector<1x1x64xf32>
    %67 = vector.broadcast %66 : vector<1x1x64xf32> to vector<2x10x64xf32>
    %68 = arith.mulf %63, %67 : vector<2x10x64xf32>
    %69 = arith.addf %60, %68 : vector<2x10x64xf32>
    %c0_28 = arith.constant 0 : index
    %c0_29 = arith.constant 0 : index
    %c0_30 = arith.constant 0 : index
    %70 = vector.load %arg14[%c0_28, %c0_29, %c0_30] : memref<1x1x64xf32, #tpu.memory_space<vmem>>, vector<1x1x64xf32>
    %71 = vector.shape_cast %70 : vector<1x1x64xf32> to vector<1x64xf32>
    %72 = vector.shape_cast %71 : vector<1x64xf32> to vector<1x1x64xf32>
    %73 = vector.broadcast %72 : vector<1x1x64xf32> to vector<2x10x64xf32>
    %74 = arith.addf %69, %73 : vector<2x10x64xf32>
    %cst_31 = arith.constant 0.000000e+00 : f32
    %75 = vector.broadcast %cst_31 : f32 to vector<2x10x64xf32>
    %76 = arith.subf %75, %74 : vector<2x10x64xf32>
    %77 = math.exp %76 : vector<2x10x64xf32>
    %cst_32 = arith.constant 1.000000e+00 : f32
    %78 = vector.broadcast %cst_32 : f32 to vector<2x10x64xf32>
    %79 = arith.addf %78, %77 : vector<2x10x64xf32>
    %80 = tpu.reciprocal %79 {approx = true} : vector<2x10x64xf32> -> vector<2x10x64xf32>
    %81 = arith.mulf %74, %80 : vector<2x10x64xf32>
    %82 = arith.truncf %81 : vector<2x10x64xf32> to vector<2x10x64xbf16>
    %c0_33 = arith.constant 0 : index
    %c0_34 = arith.constant 0 : index
    %c0_35 = arith.constant 0 : index
    %83 = vector.load %arg15[%c0_33, %c0_34, %c0_35] : memref<1x64x64xf32, #tpu.memory_space<vmem>>, vector<1x64x64xf32>
    %84 = vector.shape_cast %83 : vector<1x64x64xf32> to vector<64x64xf32>
    %cst_36 = arith.constant dense<0.000000e+00> : vector<2x10x64xf32>
    %85 = tpu.matmul %81, %84, %cst_36 {dimension_numbers = #tpu.dot_dimension_numbers<[2], [0], [0, 1], [1], [0, 0, 0, 1, 1, 1], [], []>} : vector<2x10x64xf32>, vector<64x64xf32>, vector<2x10x64xf32> -> vector<2x10x64xf32>
    %c0_37 = arith.constant 0 : index
    %c0_38 = arith.constant 0 : index
    %c0_39 = arith.constant 0 : index
    %86 = vector.load %arg16[%c0_37, %c0_38, %c0_39] : memref<1x1x64xf32, #tpu.memory_space<vmem>>, vector<1x1x64xf32>
    %87 = vector.shape_cast %86 : vector<1x1x64xf32> to vector<1x64xf32>
    %88 = vector.shape_cast %87 : vector<1x64xf32> to vector<1x1x64xf32>
    %89 = vector.broadcast %88 : vector<1x1x64xf32> to vector<2x10x64xf32>
    %90 = arith.addf %85, %89 : vector<2x10x64xf32>
    %cst_40 = arith.constant 0.000000e+00 : f32
    %91 = vector.broadcast %cst_40 : f32 to vector<2x10x64xf32>
    %92 = arith.maximumf %90, %91 : vector<2x10x64xf32>
    %93 = math.absf %90 : vector<2x10x64xf32>
    %cst_41 = arith.constant 0.000000e+00 : f32
    %94 = vector.broadcast %cst_41 : f32 to vector<2x10x64xf32>
    %95 = arith.subf %94, %93 : vector<2x10x64xf32>
    %96 = math.exp %95 : vector<2x10x64xf32>
    %cst_42 = arith.constant 1.000000e+00 : f32
    %97 = vector.broadcast %cst_42 : f32 to vector<2x10x64xf32>
    %98 = arith.addf %97, %96 : vector<2x10x64xf32>
    %99 = math.log %98 : vector<2x10x64xf32>
    %100 = arith.addf %92, %99 : vector<2x10x64xf32>
    %c0_43 = arith.constant 0 : index
    %c0_44 = arith.constant 0 : index
    %c0_45 = arith.constant 0 : index
    %101 = vector.load %arg17[%c0_43, %c0_44, %c0_45] : memref<1x64x8xbf16, #tpu.memory_space<vmem>>, vector<1x64x8xbf16>
    %102 = vector.shape_cast %101 : vector<1x64x8xbf16> to vector<64x8xbf16>
    %cst_46 = arith.constant dense<0.000000e+00> : vector<2x10x8xf32>
    %103 = tpu.matmul %82, %102, %cst_46 {dimension_numbers = #tpu.dot_dimension_numbers<[2], [0], [0, 1], [1], [0, 0, 0, 1, 1, 1], [], []>} : vector<2x10x64xbf16>, vector<64x8xbf16>, vector<2x10x8xf32> -> vector<2x10x8xf32>
    %c0_47 = arith.constant 0 : index
    %c0_48 = arith.constant 0 : index
    %c0_49 = arith.constant 0 : index
    %104 = vector.load %arg18[%c0_47, %c0_48, %c0_49] : memref<1x1x8xf32, #tpu.memory_space<vmem>>, vector<1x1x8xf32>
    %105 = vector.shape_cast %104 : vector<1x1x8xf32> to vector<1x8xf32>
    %106 = vector.shape_cast %105 : vector<1x8xf32> to vector<1x1x8xf32>
    %107 = vector.broadcast %106 : vector<1x1x8xf32> to vector<2x10x8xf32>
    %108 = arith.addf %103, %107 : vector<2x10x8xf32>
    %c0_50 = arith.constant 0 : index
    %c0_51 = arith.constant 0 : index
    %c0_52 = arith.constant 0 : index
    %109 = vector.load %arg19[%c0_50, %c0_51, %c0_52] : memref<1x64x8xbf16, #tpu.memory_space<vmem>>, vector<1x64x8xbf16>
    %110 = vector.shape_cast %109 : vector<1x64x8xbf16> to vector<64x8xbf16>
    %cst_53 = arith.constant dense<0.000000e+00> : vector<2x10x8xf32>
    %111 = tpu.matmul %82, %110, %cst_53 {dimension_numbers = #tpu.dot_dimension_numbers<[2], [0], [0, 1], [1], [0, 0, 0, 1, 1, 1], [], []>} : vector<2x10x64xbf16>, vector<64x8xbf16>, vector<2x10x8xf32> -> vector<2x10x8xf32>
    %c0_54 = arith.constant 0 : index
    %c0_55 = arith.constant 0 : index
    %c0_56 = arith.constant 0 : index
    %112 = vector.load %arg20[%c0_54, %c0_55, %c0_56] : memref<1x1x8xf32, #tpu.memory_space<vmem>>, vector<1x1x8xf32>
    %113 = vector.shape_cast %112 : vector<1x1x8xf32> to vector<1x8xf32>
    %114 = vector.shape_cast %113 : vector<1x8xf32> to vector<1x1x8xf32>
    %115 = vector.broadcast %114 : vector<1x1x8xf32> to vector<2x10x8xf32>
    %116 = arith.addf %111, %115 : vector<2x10x8xf32>
    %c0_57 = arith.constant 0 : index
    %c0_58 = arith.constant 0 : index
    %c0_59 = arith.constant 0 : index
    %117 = vector.load %arg21[%c0_57, %c0_58, %c0_59] : memref<1x8x64xf32, #tpu.memory_space<vmem>>, vector<1x8x64xf32>
    %118 = vector.shape_cast %117 : vector<1x8x64xf32> to vector<8x64xf32>
    %119 = arith.mulf %100, %81 : vector<2x10x64xf32>
    %120 = vector.extract_strided_slice %100 {offsets = [0, 0, 0], sizes = [2, 1, 64], strides = [1, 1, 1]} : vector<2x10x64xf32> to vector<2x1x64xf32>
    %121 = vector.extract_strided_slice %119 {offsets = [0, 0, 0], sizes = [2, 1, 64], strides = [1, 1, 1]} : vector<2x10x64xf32> to vector<2x1x64xf32>
    %122 = vector.extract_strided_slice %108 {offsets = [0, 0, 0], sizes = [2, 1, 8], strides = [1, 1, 1]} : vector<2x10x8xf32> to vector<2x1x8xf32>
    %123 = vector.shape_cast %118 : vector<8x64xf32> to vector<1x8x64xf32>
    %124 = vector.broadcast %120 : vector<2x1x64xf32> to vector<2x8x64xf32>
    %125 = vector.broadcast %123 : vector<1x8x64xf32> to vector<2x8x64xf32>
    %126 = arith.mulf %124, %125 : vector<2x8x64xf32>
    %127 = math.exp %126 : vector<2x8x64xf32>
    %cst_60 = arith.constant dense<0.000000e+00> : vector<2x8x64xf32>
    %128 = tpu.matmul %122, %121, %cst_60 {dimension_numbers = #tpu.dot_dimension_numbers<[1], [1], [2], [2], [0, 0, 0, 2, 1, 2], [0], [0]>} : vector<2x1x8xf32>, vector<2x1x64xf32>, vector<2x8x64xf32> -> vector<2x8x64xf32>
    %129 = vector.extract_strided_slice %116 {offsets = [0, 0, 0], sizes = [2, 1, 8], strides = [1, 1, 1]} : vector<2x10x8xf32> to vector<2x1x8xf32>
    %130 = vector.extract_strided_slice %100 {offsets = [0, 1, 0], sizes = [2, 1, 64], strides = [1, 1, 1]} : vector<2x10x64xf32> to vector<2x1x64xf32>
    %131 = vector.extract_strided_slice %119 {offsets = [0, 1, 0], sizes = [2, 1, 64], strides = [1, 1, 1]} : vector<2x10x64xf32> to vector<2x1x64xf32>
    %132 = vector.extract_strided_slice %108 {offsets = [0, 1, 0], sizes = [2, 1, 8], strides = [1, 1, 1]} : vector<2x10x8xf32> to vector<2x1x8xf32>
    %133 = vector.shape_cast %118 : vector<8x64xf32> to vector<1x8x64xf32>
    %134 = vector.broadcast %130 : vector<2x1x64xf32> to vector<2x8x64xf32>
    %135 = vector.broadcast %133 : vector<1x8x64xf32> to vector<2x8x64xf32>
    %136 = arith.mulf %134, %135 : vector<2x8x64xf32>
    %137 = math.exp %136 : vector<2x8x64xf32>
    %cst_61 = arith.constant dense<0.000000e+00> : vector<2x8x64xf32>
    %138 = tpu.matmul %132, %131, %cst_61 {dimension_numbers = #tpu.dot_dimension_numbers<[1], [1], [2], [2], [0, 0, 0, 2, 1, 2], [0], [0]>} : vector<2x1x8xf32>, vector<2x1x64xf32>, vector<2x8x64xf32> -> vector<2x8x64xf32>
    %139 = vector.extract_strided_slice %116 {offsets = [0, 1, 0], sizes = [2, 1, 8], strides = [1, 1, 1]} : vector<2x10x8xf32> to vector<2x1x8xf32>
    %140 = vector.extract_strided_slice %100 {offsets = [0, 2, 0], sizes = [2, 1, 64], strides = [1, 1, 1]} : vector<2x10x64xf32> to vector<2x1x64xf32>
    %141 = vector.extract_strided_slice %119 {offsets = [0, 2, 0], sizes = [2, 1, 64], strides = [1, 1, 1]} : vector<2x10x64xf32> to vector<2x1x64xf32>
    %142 = vector.extract_strided_slice %108 {offsets = [0, 2, 0], sizes = [2, 1, 8], strides = [1, 1, 1]} : vector<2x10x8xf32> to vector<2x1x8xf32>
    %143 = vector.shape_cast %118 : vector<8x64xf32> to vector<1x8x64xf32>
    %144 = vector.broadcast %140 : vector<2x1x64xf32> to vector<2x8x64xf32>
    %145 = vector.broadcast %143 : vector<1x8x64xf32> to vector<2x8x64xf32>
    %146 = arith.mulf %144, %145 : vector<2x8x64xf32>
    %147 = math.exp %146 : vector<2x8x64xf32>
    %cst_62 = arith.constant dense<0.000000e+00> : vector<2x8x64xf32>
    %148 = tpu.matmul %142, %141, %cst_62 {dimension_numbers = #tpu.dot_dimension_numbers<[1], [1], [2], [2], [0, 0, 0, 2, 1, 2], [0], [0]>} : vector<2x1x8xf32>, vector<2x1x64xf32>, vector<2x8x64xf32> -> vector<2x8x64xf32>
    %149 = vector.extract_strided_slice %116 {offsets = [0, 2, 0], sizes = [2, 1, 8], strides = [1, 1, 1]} : vector<2x10x8xf32> to vector<2x1x8xf32>
    %150 = vector.extract_strided_slice %100 {offsets = [0, 3, 0], sizes = [2, 1, 64], strides = [1, 1, 1]} : vector<2x10x64xf32> to vector<2x1x64xf32>
    %151 = vector.extract_strided_slice %119 {offsets = [0, 3, 0], sizes = [2, 1, 64], strides = [1, 1, 1]} : vector<2x10x64xf32> to vector<2x1x64xf32>
    %152 = vector.extract_strided_slice %108 {offsets = [0, 3, 0], sizes = [2, 1, 8], strides = [1, 1, 1]} : vector<2x10x8xf32> to vector<2x1x8xf32>
    %153 = vector.shape_cast %118 : vector<8x64xf32> to vector<1x8x64xf32>
    %154 = vector.broadcast %150 : vector<2x1x64xf32> to vector<2x8x64xf32>
    %155 = vector.broadcast %153 : vector<1x8x64xf32> to vector<2x8x64xf32>
    %156 = arith.mulf %154, %155 : vector<2x8x64xf32>
    %157 = math.exp %156 : vector<2x8x64xf32>
    %cst_63 = arith.constant dense<0.000000e+00> : vector<2x8x64xf32>
    %158 = tpu.matmul %152, %151, %cst_63 {dimension_numbers = #tpu.dot_dimension_numbers<[1], [1], [2], [2], [0, 0, 0, 2, 1, 2], [0], [0]>} : vector<2x1x8xf32>, vector<2x1x64xf32>, vector<2x8x64xf32> -> vector<2x8x64xf32>
    %159 = vector.extract_strided_slice %116 {offsets = [0, 3, 0], sizes = [2, 1, 8], strides = [1, 1, 1]} : vector<2x10x8xf32> to vector<2x1x8xf32>
    %160 = vector.extract_strided_slice %100 {offsets = [0, 4, 0], sizes = [2, 1, 64], strides = [1, 1, 1]} : vector<2x10x64xf32> to vector<2x1x64xf32>
    %161 = vector.extract_strided_slice %119 {offsets = [0, 4, 0], sizes = [2, 1, 64], strides = [1, 1, 1]} : vector<2x10x64xf32> to vector<2x1x64xf32>
    %162 = vector.extract_strided_slice %108 {offsets = [0, 4, 0], sizes = [2, 1, 8], strides = [1, 1, 1]} : vector<2x10x8xf32> to vector<2x1x8xf32>
    %163 = vector.shape_cast %118 : vector<8x64xf32> to vector<1x8x64xf32>
    %164 = vector.broadcast %160 : vector<2x1x64xf32> to vector<2x8x64xf32>
    %165 = vector.broadcast %163 : vector<1x8x64xf32> to vector<2x8x64xf32>
    %166 = arith.mulf %164, %165 : vector<2x8x64xf32>
    %167 = math.exp %166 : vector<2x8x64xf32>
    %cst_64 = arith.constant dense<0.000000e+00> : vector<2x8x64xf32>
    %168 = tpu.matmul %162, %161, %cst_64 {dimension_numbers = #tpu.dot_dimension_numbers<[1], [1], [2], [2], [0, 0, 0, 2, 1, 2], [0], [0]>} : vector<2x1x8xf32>, vector<2x1x64xf32>, vector<2x8x64xf32> -> vector<2x8x64xf32>
    %169 = vector.extract_strided_slice %116 {offsets = [0, 4, 0], sizes = [2, 1, 8], strides = [1, 1, 1]} : vector<2x10x8xf32> to vector<2x1x8xf32>
    %170 = vector.extract_strided_slice %100 {offsets = [0, 5, 0], sizes = [2, 1, 64], strides = [1, 1, 1]} : vector<2x10x64xf32> to vector<2x1x64xf32>
    %171 = vector.extract_strided_slice %119 {offsets = [0, 5, 0], sizes = [2, 1, 64], strides = [1, 1, 1]} : vector<2x10x64xf32> to vector<2x1x64xf32>
    %172 = vector.extract_strided_slice %108 {offsets = [0, 5, 0], sizes = [2, 1, 8], strides = [1, 1, 1]} : vector<2x10x8xf32> to vector<2x1x8xf32>
    %173 = vector.shape_cast %118 : vector<8x64xf32> to vector<1x8x64xf32>
    %174 = vector.broadcast %170 : vector<2x1x64xf32> to vector<2x8x64xf32>
    %175 = vector.broadcast %173 : vector<1x8x64xf32> to vector<2x8x64xf32>
    %176 = arith.mulf %174, %175 : vector<2x8x64xf32>
    %177 = math.exp %176 : vector<2x8x64xf32>
    %cst_65 = arith.constant dense<0.000000e+00> : vector<2x8x64xf32>
    %178 = tpu.matmul %172, %171, %cst_65 {dimension_numbers = #tpu.dot_dimension_numbers<[1], [1], [2], [2], [0, 0, 0, 2, 1, 2], [0], [0]>} : vector<2x1x8xf32>, vector<2x1x64xf32>, vector<2x8x64xf32> -> vector<2x8x64xf32>
    %179 = vector.extract_strided_slice %116 {offsets = [0, 5, 0], sizes = [2, 1, 8], strides = [1, 1, 1]} : vector<2x10x8xf32> to vector<2x1x8xf32>
    %180 = vector.extract_strided_slice %100 {offsets = [0, 6, 0], sizes = [2, 1, 64], strides = [1, 1, 1]} : vector<2x10x64xf32> to vector<2x1x64xf32>
    %181 = vector.extract_strided_slice %119 {offsets = [0, 6, 0], sizes = [2, 1, 64], strides = [1, 1, 1]} : vector<2x10x64xf32> to vector<2x1x64xf32>
    %182 = vector.extract_strided_slice %108 {offsets = [0, 6, 0], sizes = [2, 1, 8], strides = [1, 1, 1]} : vector<2x10x8xf32> to vector<2x1x8xf32>
    %183 = vector.shape_cast %118 : vector<8x64xf32> to vector<1x8x64xf32>
    %184 = vector.broadcast %180 : vector<2x1x64xf32> to vector<2x8x64xf32>
    %185 = vector.broadcast %183 : vector<1x8x64xf32> to vector<2x8x64xf32>
    %186 = arith.mulf %184, %185 : vector<2x8x64xf32>
    %187 = math.exp %186 : vector<2x8x64xf32>
    %cst_66 = arith.constant dense<0.000000e+00> : vector<2x8x64xf32>
    %188 = tpu.matmul %182, %181, %cst_66 {dimension_numbers = #tpu.dot_dimension_numbers<[1], [1], [2], [2], [0, 0, 0, 2, 1, 2], [0], [0]>} : vector<2x1x8xf32>, vector<2x1x64xf32>, vector<2x8x64xf32> -> vector<2x8x64xf32>
    %189 = vector.extract_strided_slice %116 {offsets = [0, 6, 0], sizes = [2, 1, 8], strides = [1, 1, 1]} : vector<2x10x8xf32> to vector<2x1x8xf32>
    %190 = vector.extract_strided_slice %100 {offsets = [0, 7, 0], sizes = [2, 1, 64], strides = [1, 1, 1]} : vector<2x10x64xf32> to vector<2x1x64xf32>
    %191 = vector.extract_strided_slice %119 {offsets = [0, 7, 0], sizes = [2, 1, 64], strides = [1, 1, 1]} : vector<2x10x64xf32> to vector<2x1x64xf32>
    %192 = vector.extract_strided_slice %108 {offsets = [0, 7, 0], sizes = [2, 1, 8], strides = [1, 1, 1]} : vector<2x10x8xf32> to vector<2x1x8xf32>
    %193 = vector.shape_cast %118 : vector<8x64xf32> to vector<1x8x64xf32>
    %194 = vector.broadcast %190 : vector<2x1x64xf32> to vector<2x8x64xf32>
    %195 = vector.broadcast %193 : vector<1x8x64xf32> to vector<2x8x64xf32>
    %196 = arith.mulf %194, %195 : vector<2x8x64xf32>
    %197 = math.exp %196 : vector<2x8x64xf32>
    %cst_67 = arith.constant dense<0.000000e+00> : vector<2x8x64xf32>
    %198 = tpu.matmul %192, %191, %cst_67 {dimension_numbers = #tpu.dot_dimension_numbers<[1], [1], [2], [2], [0, 0, 0, 2, 1, 2], [0], [0]>} : vector<2x1x8xf32>, vector<2x1x64xf32>, vector<2x8x64xf32> -> vector<2x8x64xf32>
    %199 = vector.extract_strided_slice %116 {offsets = [0, 7, 0], sizes = [2, 1, 8], strides = [1, 1, 1]} : vector<2x10x8xf32> to vector<2x1x8xf32>
    %200 = vector.extract_strided_slice %100 {offsets = [0, 8, 0], sizes = [2, 1, 64], strides = [1, 1, 1]} : vector<2x10x64xf32> to vector<2x1x64xf32>
    %201 = vector.extract_strided_slice %119 {offsets = [0, 8, 0], sizes = [2, 1, 64], strides = [1, 1, 1]} : vector<2x10x64xf32> to vector<2x1x64xf32>
    %202 = vector.extract_strided_slice %108 {offsets = [0, 8, 0], sizes = [2, 1, 8], strides = [1, 1, 1]} : vector<2x10x8xf32> to vector<2x1x8xf32>
    %203 = vector.shape_cast %118 : vector<8x64xf32> to vector<1x8x64xf32>
    %204 = vector.broadcast %200 : vector<2x1x64xf32> to vector<2x8x64xf32>
    %205 = vector.broadcast %203 : vector<1x8x64xf32> to vector<2x8x64xf32>
    %206 = arith.mulf %204, %205 : vector<2x8x64xf32>
    %207 = math.exp %206 : vector<2x8x64xf32>
    %cst_68 = arith.constant dense<0.000000e+00> : vector<2x8x64xf32>
    %208 = tpu.matmul %202, %201, %cst_68 {dimension_numbers = #tpu.dot_dimension_numbers<[1], [1], [2], [2], [0, 0, 0, 2, 1, 2], [0], [0]>} : vector<2x1x8xf32>, vector<2x1x64xf32>, vector<2x8x64xf32> -> vector<2x8x64xf32>
    %209 = vector.extract_strided_slice %116 {offsets = [0, 8, 0], sizes = [2, 1, 8], strides = [1, 1, 1]} : vector<2x10x8xf32> to vector<2x1x8xf32>
    %210 = vector.extract_strided_slice %100 {offsets = [0, 9, 0], sizes = [2, 1, 64], strides = [1, 1, 1]} : vector<2x10x64xf32> to vector<2x1x64xf32>
    %211 = vector.extract_strided_slice %119 {offsets = [0, 9, 0], sizes = [2, 1, 64], strides = [1, 1, 1]} : vector<2x10x64xf32> to vector<2x1x64xf32>
    %212 = vector.extract_strided_slice %108 {offsets = [0, 9, 0], sizes = [2, 1, 8], strides = [1, 1, 1]} : vector<2x10x8xf32> to vector<2x1x8xf32>
    %213 = vector.shape_cast %118 : vector<8x64xf32> to vector<1x8x64xf32>
    %214 = vector.broadcast %210 : vector<2x1x64xf32> to vector<2x8x64xf32>
    %215 = vector.broadcast %213 : vector<1x8x64xf32> to vector<2x8x64xf32>
    %216 = arith.mulf %214, %215 : vector<2x8x64xf32>
    %217 = math.exp %216 : vector<2x8x64xf32>
    %cst_69 = arith.constant dense<0.000000e+00> : vector<2x8x64xf32>
    %218 = tpu.matmul %212, %211, %cst_69 {dimension_numbers = #tpu.dot_dimension_numbers<[1], [1], [2], [2], [0, 0, 0, 2, 1, 2], [0], [0]>} : vector<2x1x8xf32>, vector<2x1x64xf32>, vector<2x8x64xf32> -> vector<2x8x64xf32>
    %219 = vector.extract_strided_slice %116 {offsets = [0, 9, 0], sizes = [2, 1, 8], strides = [1, 1, 1]} : vector<2x10x8xf32> to vector<2x1x8xf32>
    %cst_70 = arith.constant 0.000000e+00 : f32
    %220 = vector.broadcast %cst_70 : f32 to vector<2x8x64xf32>
    %221 = arith.mulf %127, %220 : vector<2x8x64xf32>
    %222 = arith.addf %221, %128 : vector<2x8x64xf32>
    %cst_71 = arith.constant dense<0.000000e+00> : vector<2x1x64xf32>
    %223 = tpu.matmul %129, %222, %cst_71 {dimension_numbers = #tpu.dot_dimension_numbers<[2], [1], [1], [2], [0, 0, 0, 1, 1, 2], [0], [0]>} : vector<2x1x8xf32>, vector<2x8x64xf32>, vector<2x1x64xf32> -> vector<2x1x64xf32>
    %c0_72 = arith.constant 0 : index
    %c0_73 = arith.constant 0 : index
    %c0_74 = arith.constant 0 : index
    %224 = vector.load %arg30[%c0_72, %c0_73, %c0_74] : memref<2x10x64xf32, #tpu.memory_space<vmem>>, vector<2x1x64xf32>
    tpu.vector_store %arg30[%c0_72, %c0_73, %c0_74], %223 {strides = array<i32>} : memref<2x10x64xf32, #tpu.memory_space<vmem>>, vector<2x1x64xf32>,
    %225 = arith.mulf %137, %222 : vector<2x8x64xf32>
    %226 = arith.addf %225, %138 : vector<2x8x64xf32>
    %cst_75 = arith.constant dense<0.000000e+00> : vector<2x1x64xf32>
    %227 = tpu.matmul %139, %226, %cst_75 {dimension_numbers = #tpu.dot_dimension_numbers<[2], [1], [1], [2], [0, 0, 0, 1, 1, 2], [0], [0]>} : vector<2x1x8xf32>, vector<2x8x64xf32>, vector<2x1x64xf32> -> vector<2x1x64xf32>
    %c0_76 = arith.constant 0 : index
    %c1 = arith.constant 1 : index
    %c0_77 = arith.constant 0 : index
    %228 = vector.load %arg30[%c0_76, %c1, %c0_77] : memref<2x10x64xf32, #tpu.memory_space<vmem>>, vector<2x1x64xf32>
    tpu.vector_store %arg30[%c0_76, %c1, %c0_77], %227 {strides = array<i32>} : memref<2x10x64xf32, #tpu.memory_space<vmem>>, vector<2x1x64xf32>,
    %229 = arith.mulf %147, %226 : vector<2x8x64xf32>
    %230 = arith.addf %229, %148 : vector<2x8x64xf32>
    %cst_78 = arith.constant dense<0.000000e+00> : vector<2x1x64xf32>
    %231 = tpu.matmul %149, %230, %cst_78 {dimension_numbers = #tpu.dot_dimension_numbers<[2], [1], [1], [2], [0, 0, 0, 1, 1, 2], [0], [0]>} : vector<2x1x8xf32>, vector<2x8x64xf32>, vector<2x1x64xf32> -> vector<2x1x64xf32>
    %c0_79 = arith.constant 0 : index
    %c2 = arith.constant 2 : index
    %c0_80 = arith.constant 0 : index
    %232 = vector.load %arg30[%c0_79, %c2, %c0_80] : memref<2x10x64xf32, #tpu.memory_space<vmem>>, vector<2x1x64xf32>
    tpu.vector_store %arg30[%c0_79, %c2, %c0_80], %231 {strides = array<i32>} : memref<2x10x64xf32, #tpu.memory_space<vmem>>, vector<2x1x64xf32>,
    %233 = arith.mulf %157, %230 : vector<2x8x64xf32>
    %234 = arith.addf %233, %158 : vector<2x8x64xf32>
    %cst_81 = arith.constant dense<0.000000e+00> : vector<2x1x64xf32>
    %235 = tpu.matmul %159, %234, %cst_81 {dimension_numbers = #tpu.dot_dimension_numbers<[2], [1], [1], [2], [0, 0, 0, 1, 1, 2], [0], [0]>} : vector<2x1x8xf32>, vector<2x8x64xf32>, vector<2x1x64xf32> -> vector<2x1x64xf32>
    %c0_82 = arith.constant 0 : index
    %c3 = arith.constant 3 : index
    %c0_83 = arith.constant 0 : index
    %236 = vector.load %arg30[%c0_82, %c3, %c0_83] : memref<2x10x64xf32, #tpu.memory_space<vmem>>, vector<2x1x64xf32>
    tpu.vector_store %arg30[%c0_82, %c3, %c0_83], %235 {strides = array<i32>} : memref<2x10x64xf32, #tpu.memory_space<vmem>>, vector<2x1x64xf32>,
    %237 = arith.mulf %167, %234 : vector<2x8x64xf32>
    %238 = arith.addf %237, %168 : vector<2x8x64xf32>
    %cst_84 = arith.constant dense<0.000000e+00> : vector<2x1x64xf32>
    %239 = tpu.matmul %169, %238, %cst_84 {dimension_numbers = #tpu.dot_dimension_numbers<[2], [1], [1], [2], [0, 0, 0, 1, 1, 2], [0], [0]>} : vector<2x1x8xf32>, vector<2x8x64xf32>, vector<2x1x64xf32> -> vector<2x1x64xf32>
    %c0_85 = arith.constant 0 : index
    %c4 = arith.constant 4 : index
    %c0_86 = arith.constant 0 : index
    %240 = vector.load %arg30[%c0_85, %c4, %c0_86] : memref<2x10x64xf32, #tpu.memory_space<vmem>>, vector<2x1x64xf32>
    tpu.vector_store %arg30[%c0_85, %c4, %c0_86], %239 {strides = array<i32>} : memref<2x10x64xf32, #tpu.memory_space<vmem>>, vector<2x1x64xf32>,
    %241 = arith.mulf %177, %238 : vector<2x8x64xf32>
    %242 = arith.addf %241, %178 : vector<2x8x64xf32>
    %cst_87 = arith.constant dense<0.000000e+00> : vector<2x1x64xf32>
    %243 = tpu.matmul %179, %242, %cst_87 {dimension_numbers = #tpu.dot_dimension_numbers<[2], [1], [1], [2], [0, 0, 0, 1, 1, 2], [0], [0]>} : vector<2x1x8xf32>, vector<2x8x64xf32>, vector<2x1x64xf32> -> vector<2x1x64xf32>
    %c0_88 = arith.constant 0 : index
    %c5 = arith.constant 5 : index
    %c0_89 = arith.constant 0 : index
    %244 = vector.load %arg30[%c0_88, %c5, %c0_89] : memref<2x10x64xf32, #tpu.memory_space<vmem>>, vector<2x1x64xf32>
    tpu.vector_store %arg30[%c0_88, %c5, %c0_89], %243 {strides = array<i32>} : memref<2x10x64xf32, #tpu.memory_space<vmem>>, vector<2x1x64xf32>,
    %245 = arith.mulf %187, %242 : vector<2x8x64xf32>
    %246 = arith.addf %245, %188 : vector<2x8x64xf32>
    %cst_90 = arith.constant dense<0.000000e+00> : vector<2x1x64xf32>
    %247 = tpu.matmul %189, %246, %cst_90 {dimension_numbers = #tpu.dot_dimension_numbers<[2], [1], [1], [2], [0, 0, 0, 1, 1, 2], [0], [0]>} : vector<2x1x8xf32>, vector<2x8x64xf32>, vector<2x1x64xf32> -> vector<2x1x64xf32>
    %c0_91 = arith.constant 0 : index
    %c6 = arith.constant 6 : index
    %c0_92 = arith.constant 0 : index
    %248 = vector.load %arg30[%c0_91, %c6, %c0_92] : memref<2x10x64xf32, #tpu.memory_space<vmem>>, vector<2x1x64xf32>
    tpu.vector_store %arg30[%c0_91, %c6, %c0_92], %247 {strides = array<i32>} : memref<2x10x64xf32, #tpu.memory_space<vmem>>, vector<2x1x64xf32>,
    %249 = arith.mulf %197, %246 : vector<2x8x64xf32>
    %250 = arith.addf %249, %198 : vector<2x8x64xf32>
    %cst_93 = arith.constant dense<0.000000e+00> : vector<2x1x64xf32>
    %251 = tpu.matmul %199, %250, %cst_93 {dimension_numbers = #tpu.dot_dimension_numbers<[2], [1], [1], [2], [0, 0, 0, 1, 1, 2], [0], [0]>} : vector<2x1x8xf32>, vector<2x8x64xf32>, vector<2x1x64xf32> -> vector<2x1x64xf32>
    %c0_94 = arith.constant 0 : index
    %c7 = arith.constant 7 : index
    %c0_95 = arith.constant 0 : index
    %252 = vector.load %arg30[%c0_94, %c7, %c0_95] : memref<2x10x64xf32, #tpu.memory_space<vmem>>, vector<2x1x64xf32>
    tpu.vector_store %arg30[%c0_94, %c7, %c0_95], %251 {strides = array<i32>} : memref<2x10x64xf32, #tpu.memory_space<vmem>>, vector<2x1x64xf32>,
    %253 = arith.mulf %207, %250 : vector<2x8x64xf32>
    %254 = arith.addf %253, %208 : vector<2x8x64xf32>
    %cst_96 = arith.constant dense<0.000000e+00> : vector<2x1x64xf32>
    %255 = tpu.matmul %209, %254, %cst_96 {dimension_numbers = #tpu.dot_dimension_numbers<[2], [1], [1], [2], [0, 0, 0, 1, 1, 2], [0], [0]>} : vector<2x1x8xf32>, vector<2x8x64xf32>, vector<2x1x64xf32> -> vector<2x1x64xf32>
    %c0_97 = arith.constant 0 : index
    %c8 = arith.constant 8 : index
    %c0_98 = arith.constant 0 : index
    %256 = vector.load %arg30[%c0_97, %c8, %c0_98] : memref<2x10x64xf32, #tpu.memory_space<vmem>>, vector<2x1x64xf32>
    tpu.vector_store %arg30[%c0_97, %c8, %c0_98], %255 {strides = array<i32>} : memref<2x10x64xf32, #tpu.memory_space<vmem>>, vector<2x1x64xf32>,
    %257 = arith.mulf %217, %254 : vector<2x8x64xf32>
    %258 = arith.addf %257, %218 : vector<2x8x64xf32>
    %cst_99 = arith.constant dense<0.000000e+00> : vector<2x1x64xf32>
    %259 = tpu.matmul %219, %258, %cst_99 {dimension_numbers = #tpu.dot_dimension_numbers<[2], [1], [1], [2], [0, 0, 0, 1, 1, 2], [0], [0]>} : vector<2x1x8xf32>, vector<2x8x64xf32>, vector<2x1x64xf32> -> vector<2x1x64xf32>
    %c0_100 = arith.constant 0 : index
    %c9 = arith.constant 9 : index
    %c0_101 = arith.constant 0 : index
    %260 = vector.load %arg30[%c0_100, %c9, %c0_101] : memref<2x10x64xf32, #tpu.memory_space<vmem>>, vector<2x1x64xf32>
    tpu.vector_store %arg30[%c0_100, %c9, %c0_101], %259 {strides = array<i32>} : memref<2x10x64xf32, #tpu.memory_space<vmem>>, vector<2x1x64xf32>,
    %c0_102 = arith.constant 0 : index
    %c0_103 = arith.constant 0 : index
    %c0_104 = arith.constant 0 : index
    %261 = vector.load %arg30[%c0_102, %c0_103, %c0_104] : memref<2x10x64xf32, #tpu.memory_space<vmem>>, vector<2x10x64xf32>
    %c0_105 = arith.constant 0 : index
    %c0_106 = arith.constant 0 : index
    %c0_107 = arith.constant 0 : index
    %262 = vector.load %arg22[%c0_105, %c0_106, %c0_107] : memref<1x1x64xf32, #tpu.memory_space<vmem>>, vector<1x1x64xf32>
    %263 = vector.shape_cast %262 : vector<1x1x64xf32> to vector<1x64xf32>
    %264 = vector.shape_cast %263 : vector<1x64xf32> to vector<1x1x64xf32>
    %265 = vector.broadcast %264 : vector<1x1x64xf32> to vector<2x10x64xf32>
    %266 = arith.mulf %81, %265 : vector<2x10x64xf32>
    %267 = arith.addf %261, %266 : vector<2x10x64xf32>
    %cst_108 = arith.constant 0.000000e+00 : f32
    %268 = vector.broadcast %cst_108 : f32 to vector<2x10x64xf32>
    %269 = arith.subf %268, %35 : vector<2x10x64xf32>
    %270 = math.exp %269 : vector<2x10x64xf32>
    %cst_109 = arith.constant 1.000000e+00 : f32
    %271 = vector.broadcast %cst_109 : f32 to vector<2x10x64xf32>
    %272 = arith.addf %271, %270 : vector<2x10x64xf32>
    %273 = tpu.reciprocal %272 {approx = true} : vector<2x10x64xf32> -> vector<2x10x64xf32>
    %274 = arith.mulf %35, %273 : vector<2x10x64xf32>
    %275 = arith.mulf %267, %274 : vector<2x10x64xf32>
    %276 = arith.truncf %275 : vector<2x10x64xf32> to vector<2x10x64xbf16>
    %c0_110 = arith.constant 0 : index
    %c0_111 = arith.constant 0 : index
    %c0_112 = arith.constant 0 : index
    %277 = vector.load %arg23[%c0_110, %c0_111, %c0_112] : memref<1x64x32xbf16, #tpu.memory_space<vmem>>, vector<1x64x32xbf16>
    %278 = vector.shape_cast %277 : vector<1x64x32xbf16> to vector<64x32xbf16>
    %cst_113 = arith.constant dense<0.000000e+00> : vector<2x10x32xf32>
    %279 = tpu.matmul %276, %278, %cst_113 {dimension_numbers = #tpu.dot_dimension_numbers<[2], [0], [0, 1], [1], [0, 0, 0, 1, 1, 1], [], []>} : vector<2x10x64xbf16>, vector<64x32xbf16>, vector<2x10x32xf32> -> vector<2x10x32xf32>
    %c0_114 = arith.constant 0 : index
    %c0_115 = arith.constant 0 : index
    %c0_116 = arith.constant 0 : index
    %280 = vector.load %arg24[%c0_114, %c0_115, %c0_116] : memref<1x1x32xf32, #tpu.memory_space<vmem>>, vector<1x1x32xf32>
    %281 = vector.shape_cast %280 : vector<1x1x32xf32> to vector<1x32xf32>
    %282 = vector.shape_cast %281 : vector<1x32xf32> to vector<1x1x32xf32>
    %283 = vector.broadcast %282 : vector<1x1x32xf32> to vector<2x10x32xf32>
    %284 = arith.addf %279, %283 : vector<2x10x32xf32>
    %285 = arith.addf %3, %284 : vector<2x10x32xf32>
    %c0_117 = arith.constant 0 : index
    %c0_118 = arith.constant 0 : index
    %c0_119 = arith.constant 0 : index
    %286 = vector.load %arg29[%c0_117, %c0_118, %c0_119] : memref<2x10x32xf32, #tpu.memory_space<vmem>>, vector<2x10x32xf32>
    tpu.vector_store %arg29[%c0_117, %c0_118, %c0_119], %285 {strides = array<i32>} : memref<2x10x32xf32, #tpu.memory_space<vmem>>, vector<2x10x32xf32>,
    %c1_i32 = arith.constant 1 : i32
    %287 = arith.cmpi eq, %arg1, %c1_i32 : i32
    %288 = arith.extui %287 : i1 to i32
    %c0_i32_120 = arith.constant 0 : i32
    %289 = arith.cmpi ne, %288, %c0_i32_120 : i32
    scf.if %289 {
      %290 = arith.mulf %285, %285 : vector<2x10x32xf32>
      %cst_121 = arith.constant dense<0.000000e+00> : vector<2x10xf32>
      %291 = vector.multi_reduction <add>, %290, %cst_121 [2] : vector<2x10x32xf32> to vector<2x10xf32>
      %292 = vector.shape_cast %291 : vector<2x10xf32> to vector<2x10x1xf32>
      %cst_122 = arith.constant 3.200000e+01 : f32
      %293 = vector.broadcast %cst_122 : f32 to vector<2x10x1xf32>
      %294 = arith.divf %292, %293 : vector<2x10x1xf32>
      %cst_123 = arith.constant 9.99999974E-6 : f32
      %295 = vector.broadcast %cst_123 : f32 to vector<2x10x1xf32>
      %296 = arith.addf %294, %295 : vector<2x10x1xf32>
      %297 = math.rsqrt %296 : vector<2x10x1xf32>
      %298 = vector.broadcast %297 : vector<2x10x1xf32> to vector<2x10x32xf32>
      %299 = arith.mulf %285, %298 : vector<2x10x32xf32>
      %c0_124 = arith.constant 0 : index
      %c0_125 = arith.constant 0 : index
      %300 = vector.load %arg25[%c0_124, %c0_125] : memref<1x32xf32, #tpu.memory_space<vmem>>, vector<1x32xf32>
      %301 = vector.shape_cast %300 : vector<1x32xf32> to vector<1x1x32xf32>
      %302 = vector.broadcast %301 : vector<1x1x32xf32> to vector<2x10x32xf32>
      %303 = arith.mulf %299, %302 : vector<2x10x32xf32>
      %304 = vector.extract_strided_slice %303 {offsets = [0, 2, 0], sizes = [2, 8, 32], strides = [1, 1, 1]} : vector<2x10x32xf32> to vector<2x8x32xf32>
      %c0_126 = arith.constant 0 : index
      %c0_127 = arith.constant 0 : index
      %305 = vector.load %arg26[%c0_126, %c0_127] : memref<32x128xf32, #tpu.memory_space<vmem>>, vector<32x128xf32>
      %cst_128 = arith.constant dense<0.000000e+00> : vector<2x8x128xf32>
      %306 = tpu.matmul %304, %305, %cst_128 {dimension_numbers = #tpu.dot_dimension_numbers<[2], [0], [0, 1], [1], [0, 0, 0, 1, 1, 1], [], []>} : vector<2x8x32xf32>, vector<32x128xf32>, vector<2x8x128xf32> -> vector<2x8x128xf32>
      %c0_129 = arith.constant 0 : index
      %c0_130 = arith.constant 0 : index
      %307 = vector.load %arg27[%c0_129, %c0_130] : memref<1x128xf32, #tpu.memory_space<vmem>>, vector<1x128xf32>
      %308 = vector.shape_cast %307 : vector<1x128xf32> to vector<1x1x128xf32>
      %309 = vector.broadcast %308 : vector<1x1x128xf32> to vector<2x8x128xf32>
      %310 = arith.addf %306, %309 : vector<2x8x128xf32>
      %c0_131 = arith.constant 0 : index
      %c0_132 = arith.constant 0 : index
      %c0_133 = arith.constant 0 : index
      %311 = vector.load %arg28[%c0_131, %c0_132, %c0_133] : memref<2x8x128xf32, #tpu.memory_space<vmem>>, vector<2x8x128xf32>
      tpu.vector_store %arg28[%c0_131, %c0_132, %c0_133], %310 {strides = array<i32>} : memref<2x8x128xf32, #tpu.memory_space<vmem>>, vector<2x8x128xf32>,
    } else {
    }
    return
  }
  func.func @transform_0(%arg0: i32, %arg1: i32) -> (i32, i32, i32) {
    %c0_i32 = arith.constant 0 : i32
    %c0_i32_0 = arith.constant 0 : i32
    %c0_i32_1 = arith.constant 0 : i32
    return %arg0, %c0_i32, %c0_i32_0 : i32, i32, i32
  }
  func.func @transform_1(%arg0: i32, %arg1: i32) -> (i32, i32, i32) {
    %c0_i32 = arith.constant 0 : i32
    %c0_i32_0 = arith.constant 0 : i32
    %c0_i32_1 = arith.constant 0 : i32
    return %arg0, %c0_i32, %c0_i32_0 : i32, i32, i32
  }
  func.func @transform_2(%arg0: i32, %arg1: i32) -> (i32, i32, i32) {
    %c0_i32 = arith.constant 0 : i32
    %c0_i32_0 = arith.constant 0 : i32
    %c0_i32_1 = arith.constant 0 : i32
    %c0_i32_2 = arith.constant 0 : i32
    return %c0_i32, %c0_i32_0, %c0_i32_1 : i32, i32, i32
  }
  func.func @transform_3(%arg0: i32, %arg1: i32) -> (i32, i32, i32) {
    %c0_i32 = arith.constant 0 : i32
    %c0_i32_0 = arith.constant 0 : i32
    %c0_i32_1 = arith.constant 0 : i32
    %c0_i32_2 = arith.constant 0 : i32
    return %c0_i32, %c0_i32_0, %c0_i32_1 : i32, i32, i32
  }
  func.func @transform_4(%arg0: i32, %arg1: i32) -> (i32, i32) {
    %c0_i32 = arith.constant 0 : i32
    %c0_i32_0 = arith.constant 0 : i32
    %c0_i32_1 = arith.constant 0 : i32
    return %c0_i32, %c0_i32_0 : i32, i32
  }
  func.func @transform_5(%arg0: i32, %arg1: i32) -> (i32, i32) {
    %c0_i32 = arith.constant 0 : i32
    %c0_i32_0 = arith.constant 0 : i32
    %c0_i32_1 = arith.constant 0 : i32
    return %c0_i32, %c0_i32_0 : i32, i32
  }
  func.func @transform_6(%arg0: i32, %arg1: i32) -> (i32, i32, i32) {
    %c0_i32 = arith.constant 0 : i32
    %c0_i32_0 = arith.constant 0 : i32
    %c0_i32_1 = arith.constant 0 : i32
    return %arg1, %c0_i32, %c0_i32_0 : i32, i32, i32
  }
  func.func @transform_7(%arg0: i32, %arg1: i32) -> (i32, i32, i32) {
    %c0_i32 = arith.constant 0 : i32
    %c0_i32_0 = arith.constant 0 : i32
    %c0_i32_1 = arith.constant 0 : i32
    return %arg1, %c0_i32, %c0_i32_0 : i32, i32, i32
  }
  func.func @transform_8(%arg0: i32, %arg1: i32) -> (i32, i32, i32) {
    %c0_i32 = arith.constant 0 : i32
    %c0_i32_0 = arith.constant 0 : i32
    %c0_i32_1 = arith.constant 0 : i32
    return %arg1, %c0_i32, %c0_i32_0 : i32, i32, i32
  }
  func.func @transform_9(%arg0: i32, %arg1: i32) -> (i32, i32, i32) {
    %c0_i32 = arith.constant 0 : i32
    %c0_i32_0 = arith.constant 0 : i32
    %c0_i32_1 = arith.constant 0 : i32
    return %arg1, %c0_i32, %c0_i32_0 : i32, i32, i32
  }
  func.func @transform_10(%arg0: i32, %arg1: i32) -> (i32, i32, i32) {
    %c0_i32 = arith.constant 0 : i32
    %c0_i32_0 = arith.constant 0 : i32
    %c0_i32_1 = arith.constant 0 : i32
    return %arg1, %c0_i32, %c0_i32_0 : i32, i32, i32
  }
  func.func @transform_11(%arg0: i32, %arg1: i32) -> (i32, i32, i32) {
    %c0_i32 = arith.constant 0 : i32
    %c0_i32_0 = arith.constant 0 : i32
    %c0_i32_1 = arith.constant 0 : i32
    return %arg1, %c0_i32, %c0_i32_0 : i32, i32, i32
  }
  func.func @transform_12(%arg0: i32, %arg1: i32) -> (i32, i32, i32) {
    %c0_i32 = arith.constant 0 : i32
    %c0_i32_0 = arith.constant 0 : i32
    %c0_i32_1 = arith.constant 0 : i32
    return %arg1, %c0_i32, %c0_i32_0 : i32, i32, i32
  }
  func.func @transform_13(%arg0: i32, %arg1: i32) -> (i32, i32, i32) {
    %c0_i32 = arith.constant 0 : i32
    %c0_i32_0 = arith.constant 0 : i32
    %c0_i32_1 = arith.constant 0 : i32
    return %arg1, %c0_i32, %c0_i32_0 : i32, i32, i32
  }
  func.func @transform_14(%arg0: i32, %arg1: i32) -> (i32, i32, i32) {
    %c0_i32 = arith.constant 0 : i32
    %c0_i32_0 = arith.constant 0 : i32
    %c0_i32_1 = arith.constant 0 : i32
    return %arg1, %c0_i32, %c0_i32_0 : i32, i32, i32
  }
  func.func @transform_15(%arg0: i32, %arg1: i32) -> (i32, i32, i32) {
    %c0_i32 = arith.constant 0 : i32
    %c0_i32_0 = arith.constant 0 : i32
    %c0_i32_1 = arith.constant 0 : i32
    return %arg1, %c0_i32, %c0_i32_0 : i32, i32, i32
  }
  func.func @transform_16(%arg0: i32, %arg1: i32) -> (i32, i32, i32) {
    %c0_i32 = arith.constant 0 : i32
    %c0_i32_0 = arith.constant 0 : i32
    %c0_i32_1 = arith.constant 0 : i32
    return %arg1, %c0_i32, %c0_i32_0 : i32, i32, i32
  }
  func.func @transform_17(%arg0: i32, %arg1: i32) -> (i32, i32, i32) {
    %c0_i32 = arith.constant 0 : i32
    %c0_i32_0 = arith.constant 0 : i32
    %c0_i32_1 = arith.constant 0 : i32
    return %arg1, %c0_i32, %c0_i32_0 : i32, i32, i32
  }
  func.func @transform_18(%arg0: i32, %arg1: i32) -> (i32, i32, i32) {
    %c0_i32 = arith.constant 0 : i32
    %c0_i32_0 = arith.constant 0 : i32
    %c0_i32_1 = arith.constant 0 : i32
    return %arg1, %c0_i32, %c0_i32_0 : i32, i32, i32
  }
  func.func @transform_19(%arg0: i32, %arg1: i32) -> (i32, i32, i32) {
    %c0_i32 = arith.constant 0 : i32
    %c0_i32_0 = arith.constant 0 : i32
    %c0_i32_1 = arith.constant 0 : i32
    return %arg1, %c0_i32, %c0_i32_0 : i32, i32, i32
  }
  func.func @transform_20(%arg0: i32, %arg1: i32) -> (i32, i32, i32) {
    %c0_i32 = arith.constant 0 : i32
    %c0_i32_0 = arith.constant 0 : i32
    %c0_i32_1 = arith.constant 0 : i32
    return %arg1, %c0_i32, %c0_i32_0 : i32, i32, i32
  }
  func.func @transform_21(%arg0: i32, %arg1: i32) -> (i32, i32, i32) {
    %c0_i32 = arith.constant 0 : i32
    %c0_i32_0 = arith.constant 0 : i32
    %c0_i32_1 = arith.constant 0 : i32
    return %arg1, %c0_i32, %c0_i32_0 : i32, i32, i32
  }
  func.func @transform_22(%arg0: i32, %arg1: i32) -> (i32, i32, i32) {
    %c0_i32 = arith.constant 0 : i32
    %c0_i32_0 = arith.constant 0 : i32
    %c0_i32_1 = arith.constant 0 : i32
    return %arg1, %c0_i32, %c0_i32_0 : i32, i32, i32
  }
  func.func @transform_23(%arg0: i32, %arg1: i32) -> (i32, i32) {
    %c0_i32 = arith.constant 0 : i32
    %c0_i32_0 = arith.constant 0 : i32
    %c0_i32_1 = arith.constant 0 : i32
    return %c0_i32, %c0_i32_0 : i32, i32
  }
  func.func @transform_24(%arg0: i32, %arg1: i32) -> (i32, i32) {
    %c0_i32 = arith.constant 0 : i32
    %c0_i32_0 = arith.constant 0 : i32
    %c0_i32_1 = arith.constant 0 : i32
    return %c0_i32, %c0_i32_0 : i32, i32
  }
  func.func @transform_25(%arg0: i32, %arg1: i32) -> (i32, i32) {
    %c0_i32 = arith.constant 0 : i32
    %c0_i32_0 = arith.constant 0 : i32
    %c0_i32_1 = arith.constant 0 : i32
    return %c0_i32, %c0_i32_0 : i32, i32
  }
  func.func @transform_26(%arg0: i32, %arg1: i32) -> (i32, i32, i32) {
    %c0_i32 = arith.constant 0 : i32
    %c0_i32_0 = arith.constant 0 : i32
    %c0_i32_1 = arith.constant 0 : i32
    return %arg0, %c0_i32, %c0_i32_0 : i32, i32, i32
  }
}

</mosaic_0001>

<bundles_post_ra>
// kernel: tpu_custom_call.1
= control target key start
LH: loop header
LB: loop body
LE: loop exit
PB: predicated region body
PF: predicated region fallthrough
CT: control target
= control target key end

     0   :  { %s11046_s0 = inlined_call_operand.vmem [shape: f32[4,1,6], index: 0, kind: input, shape index: {}]   ;;  %s11047_s1 = inlined_call_operand.vmem [shape: f32[4,8,5], index: 1, kind: input, shape index: {}]   ;;  %s11048_s2 = inlined_call_operand.vmem [shape: bf16[2,6,32], index: 2, kind: input, shape index: {}]   ;;  %s11049_s3 = inlined_call_operand.vmem [shape: f32[2,1,32], index: 3, kind: input, shape index: {}]   ;;  %s11050_s4 = inlined_call_operand.vmem [shape: bf16[5,32], index: 4, kind: input, shape index: {}]   ;;  %s11051_s5 = inlined_call_operand.hbm [shape: f32[1,32], index: 5, kind: input, shape index: {}]   ;;  %s11052_s6 = inlined_call_operand.vmem [shape: f32[2,1,32], index: 6, kind: input, shape index: {}]   ;;  %s11053_s7 = inlined_call_operand.vmem [shape: bf16[2,32,64], index: 7, kind: input, shape index: {}]   ;;  %s11054_s8 = inlined_call_operand.vmem [shape: f32[2,1,64], index: 8, kind: input, shape index: {}]   ;;  %s11055_s9 = inlined_call_operand.vmem [shape: bf16[2,32,64], index: 9, kind: input, shape index: {}]   ;;  %s11056_s10 = inlined_call_operand.vmem [shape: f32[2,1,64], index: 10, kind: input, shape index: {}]   ;;  %s11057_s11 = inlined_call_operand.vmem [shape: f32[2,4,64], index: 11, kind: input, shape index: {}]   ;;  %s11058_s12 = inlined_call_operand.vmem [shape: f32[2,1,64], index: 12, kind: input, shape index: {}]   ;;  %s11059_s13 = inlined_call_operand.vmem [shape: f32[2,64,64], index: 13, kind: input, shape index: {}]   ;;  %s11060_s14 = inlined_call_operand.vmem [shape: f32[2,1,64], index: 14, kind: input, shape index: {}]   ;;  %s11061_s15 = inlined_call_operand.vmem [shape: bf16[2,64,8], index: 15, kind: input, shape index: {}]   ;;  %s11062_s16 = inlined_call_operand.vmem [shape: f32[2,1,8], index: 16, kind: input, shape index: {}]   ;;  %s11063_s17 = inlined_call_operand.vmem [shape: bf16[2,64,8], index: 17, kind: input, shape index: {}]   ;;  %s11064_s18 = inlined_call_operand.vmem [shape: f32[2,1,8], index: 18, kind: input, shape index: {}]   ;;  %s11065_s19 = inlined_call_operand.vmem [shape: f32[2,8,64], index: 19, kind: input, shape index: {}]   ;;  %s11066_s20 = inlined_call_operand.vmem [shape: f32[2,1,64], index: 20, kind: input, shape index: {}]   ;;  %s11067_s21 = inlined_call_operand.vmem [shape: bf16[2,64,32], index: 21, kind: input, shape index: {}]   ;;  %s11068_s22 = inlined_call_operand.vmem [shape: f32[2,1,32], index: 22, kind: input, shape index: {}]   ;;  %s11069_s23 = inlined_call_operand.vmem [shape: f32[1,32], index: 23, kind: input, shape index: {}]   ;;  %s11070_s24 = inlined_call_operand.vmem [shape: f32[32,128], index: 24, kind: input, shape index: {}]   ;;  %s11071_s25 = inlined_call_operand.vmem [shape: f32[1,128], index: 25, kind: input, shape index: {}]   ;;  %s11072_s26 = inlined_call_operand.hbm [shape: f32[4,8,128], index: 26, kind: output, shape index: {}]  }
   0x1   :  { %11099 = sst [smem:[#allocation25_spill]] %s11046_s0 }
   0x2   :  { %11100 = sst [smem:[#allocation26_spill]] %s11047_s1 }
   0x3   :  { %11101 = sst [smem:[#allocation27_spill]] %s11048_s2 }
   0x4   :  { %11102 = sst [smem:[#allocation28_spill]] %s11049_s3 }
   0x5   :  { %11103 = sst [smem:[#allocation29_spill]] %s11050_s4 }
   0x6   :  { %11104 = sst [smem:[#allocation30_spill]] %s11051_s5 }
   0x7   :  { %11105 = sst [smem:[#allocation31_spill]] %s11052_s6 }
   0x8   :  { %11106 = sst [smem:[#allocation32_spill]] %s11053_s7 }
   0x9   :  { %11107 = sst [smem:[#allocation33_spill]] %s11054_s8 }
   0xa   :  { %11108 = sst [smem:[#allocation34_spill]] %s11055_s9 }
   0xb   :  { %11109 = sst [smem:[#allocation35_spill]] %s11056_s10 }
   0xc   :  { %11110 = sst [smem:[#allocation36_spill]] %s11057_s11 }
   0xd   :  { %11111 = sst [smem:[#allocation37_spill]] %s11059_s13 }
   0xe   :  { %11112 = sst [smem:[#allocation38_spill]] %s11060_s14 }
   0xf   :  { %11113 = sst [smem:[#allocation39_spill]] %s11061_s15 }
  0x10   :  { %11114 = sst [smem:[#allocation40_spill]] %s11063_s17 }
  0x11   :  { %11115 = sst [smem:[#allocation41_spill]] %s11068_s22 }
  0x12   :  { %11116 = sst [smem:[#allocation42_spill]] %s11069_s23 }
  0x13   :  { %11117 = sst [smem:[#allocation43_spill]] %s11070_s24 }
  0x14   :  { %11118 = sst [smem:[#allocation44_spill]] %s11071_s25 }
  0x15   :  { %11119 = sst [smem:[#allocation45_spill]] %s11072_s26 }
  0x16   :  { %31 = vsyncpa [#allocation5], 0 }
  0x17   :  { %32 = vsyncpa [#allocation6], 0 }
  0x18   :  { %34 = vsyncpa [#allocation6 + $0x1], 0  ;;  %s9595_s27 = smov 0   ;;  %s9597_s3 = smov 0  }
  0x19   :  { %s9599_s7 = smov 0   ;;  %s9601_s28 = smov 0  }
  0x1a   :  { %s9603_s8 = smov 0   ;;  %s9605_s4 = smov 0  }
  0x1b   :  { %s9607_s29 = smov 0   ;;  %s9609_s0 = smov 0  }
  0x1c LB: > { %11120 = sst [smem:[#allocation10_spill]] %s9417_s27  ;;  %s8414_s9 = sadd.s32 4294967295, %s9445_s0   ;;  %s9445_s0 = sphi %s9609_s0, %s40_s0   ;;  %s9441_s29 = sphi %s9607_s29, %s11197_s29   ;;  %s9437_s4 = sphi %s9605_s4, %s11196_s4   ;;  %s9433_s8 = sphi %s9603_s8, %s11195_s8   ;;  %s9429_s28 = sphi %s9601_s28, %s11194_s28   ;;  %s9425_s7 = sphi %s9599_s7, %s11193_s7   ;;  %s9421_s3 = sphi %s9597_s3, %s11192_s3   ;;  %s9417_s27 = sphi %s9595_s27, %s11191_s27  }
  0x1d   : > { %11121 = sst [smem:[#allocation11_spill]] %s9421_s3  ;;  %s8415_s30 = sadd.s32 4294967294, %s9445_s0  }
  0x1e   : > { %11122 = sst [smem:[#allocation12_spill]] %s9425_s7  ;;  %s49_s2 = sadd.s32 1, %s9437_s4 }
  0x1f   : > { %11123 = sst [smem:[#allocation13_spill]] %s9429_s28  ;;  %s52_s5 = sadd.s32 1, %s9441_s29 }
  0x20   : > { %11124 = sst [smem:[#allocation14_spill]] %s9433_s8  ;;  %p50_p0 = scmp.ge.s32.totalorder %s49_s2, 2 }
  0x21   : > { %11125 = sst [smem:[#allocation15_spill]] %s9437_s4  ;;  %s700_s10 = sadd.s32 1, %s9425_s7 }
  0x22   : > { %11126 = sst [smem:[#allocation16_spill]] %s9441_s29  ;;  %p710_p1 = scmp.ne.s32.totalorder %s9425_s7, %s9421_s3 }
  0x23   : > { %11127 = sst [smem:[#allocation17_spill]] %s9445_s0  ;;  %p711_p2 = scmp.eq.s32.totalorder %s8414_s9, 3 }
  0x24   : > { %s11199_s2 = smov (%p50_p0, %s49_s2), 0  ;;  %s11201_s5 = smov (!%p50_p0, %s52_s5), %s9441_s29 }
  0x25   : > { %11128 = sst [smem:[#allocation18_spill]] %s11199_s2  ;;  %p9645_p3 = por %p711_p2, %p710_p1 }
  0x26   : > { %p716_p4 = scmp.ne.s32.totalorder %s9421_s3, %s9417_s27  ;;  %p54_p5 = scmp.ge.s32.totalorder %s11201_s5, 2 }
  0x27   : > { %s11129_s6 = scalar_select %p9645_p3, 1, 0 }
  0x28   : > { %p717_p6 = scmp.eq.s32.totalorder %s8415_s30, 3  ;;  %p8416_p7 = scmp.ge.s32.totalorder %s9445_s0, 1 }
  0x29   : > { %11130 = sst [smem:[#allocation19_spill]] %s11129_s6  ;;  %p724_p8 = scmp.lt.s32.totalorder %s9445_s0, 5 }
  0x2a   : > { %s11203_s5 = smov (%p54_p5, %s11201_s5), 0  ;;  %p9655_p9 = por %p717_p6, %p716_p4 }
  0x2b   : > { %11131 = sst [smem:[#allocation20_spill]] %s11203_s5  ;;  %p9659_p10 = pnand %p8416_p7, %p724_p8 }
  0x2c   : > { %s11132_s1 = scalar_select %p9655_p9, 1, 0 }
  0x2d   : > { %s11134_s4 = scalar_select %p9659_p10, 1, 0 }
  0x2e   : > { %11133 = sst [smem:[#allocation21_spill]] %s11132_s1  ;;  %s697_s2 = ssub.s32 %s9441_s29, %s11203_s5 }
  0x2f   : > { %p698_p11 = scmp.eq.s32.totalorder %s697_s2, 0  ;;  %p9034_p12 = pneg %p9659_p10 }
  0x30   : > { %p9667_p13 = scmp.eq.s32.totalorder %s8414_s9, 0  ;;  %s9447_s0 = smov [#allocation4]  }
  0x31   : > { %s9672_s27 = scalar_select %p698_p11, %s9425_s7, %s700_s10  }
  0x32   : > { %s11135_s30 = scalar_select %p9667_p13, 1, 0 }
  0x33   : > { %11136 = sst [smem:[#allocation22_spill]] %s9672_s27  ;;  %s746_s26 = sshll.u32 %s9447_s0, 4  ;;  %s747_s26 = int_to_ptr.vmem [resolvable:$true] %s746_s26 }
  0x34   : > { %p9676_p0 = pnand %p9667_p13, %p9034_p12  ;;  %s11138_s29 = sld [smem:[#allocation30_spill]] }
  0x36   : > { %p9321_p2 = pneg %p9676_p0 }
  0x3a   : > { %s11139_s6 = smov %s11138_s29  ;;  %s9319_s25 = scalar_lea.hbm %s11138_s29, 16 }
  0x3b   : > { %p9320_p1 = scmp.ne.s32.totalorder %s11139_s6, %s9319_s25  ;;  %p9326_p6 = scmp.lt.u32.totalorder %s9319_s25, %s11139_s6 }
  0x3d   : > { %p9322_p4 = pnand %p9321_p2, %p9320_p1 }
  0x3f   : > { %p9323_p5 = pneg %p9322_p4 }
  0x41   : > { %p9328_p7 = pnand %p9326_p6, %p9323_p5 }
  0x43   : > { %9331 = shalt.err (!%p9328_p7)
}
  0x44   : > { %s9332_s27 = scalar_lea.vmem %s747_s26, 16  ;;  %s9339_s5 = scalar_lea.vmem %s747_s26, 32 }
  0x45   : > { %p9333_p8 = scmp.ne.s32.totalorder %s747_s26, %s9332_s27  ;;  %p9340_p9 = scmp.lt.s32.totalorder %s747_s26, %s747_s26 }
  0x46   : > { %p9341_p3 = scmp.lt.s32.totalorder %s9339_s5, %s9332_s27 }
  0x47   : > { %p9335_p11 = pnand %p9333_p8, %p9321_p2 }
  0x48   : > { %p9342_p13 = por %p9341_p3, %p9340_p9 }
  0x49   : > { %p9336_p12 = pneg %p9335_p11 }
  0x4b   : > { %p9343_p10 = pnand %p9342_p13, %p9336_p12 }
  0x4d   : > { %9346 = shalt.err (!%p9343_p10)
}
  0x4e   : > { %9037 = dma.hbm_to_vmem [thread:$0]  (!%p9676_p0), %s11139_s6, 16, %s747_s26, [#allocation5]  }
  0x4f   : > { %p11140_p1 = scmp.ne.s32.totalorder %s11134_s4, 0 }
  0x51   : > { %901 = sbr.rel (%p11140_p1) target bundleno = 2375 (0x947), region = 124 }
  0x58   : > { %p11141_p4 = scmp.ne.s32.totalorder %s11135_s30, 0 }
  0x5a   : > { %9408 = dma.done.wait (%p11141_p4), [#allocation5], 16  }
  0x5b   : > { %9410 = vsyncadd (%p11141_p4), [#allocation5], 4294967280  ;;  %s11090_s25 = sand.u32 1, %s9421_s3   ;;  %s8422_s27 = sshll.u32 %s9433_s8, 1 }
  0x5c   : > { %s9706_s1 = sshll.u32 %s11090_s25, 4  ;;  %p1041_p3 = scmp.lt.s32.totalorder %s8422_s27, 3 }
  0x5d   : > { %p1051_p9 = scmp.lt.s32.totalorder %s9429_s28, 1  ;;  %s11142_s9 = sld [smem:[#allocation25_spill]] }
  0x5e   : > { %s11205_s27 = smov (!%p1041_p3, %s8422_s27), 3  ;;  %s11144_s23 = sld [smem:[#allocation26_spill]] }
  0x5f   : > { %s9710_s26 = scalar_select %p1051_p9, %s9429_s28, 1 }
  0x60   : > { %s8424_s0 = sshll.u32 %s11205_s27, 3  ;;  %s11149_s5 = sld [smem:[#allocation34_spill]] }
  0x61   : > { %s8565_s7 = sshll.u32 %s9710_s26, 4  ;;  %s11151_s11 = sld [smem:[#allocation36_spill]] }
  0x62   : > { %s8567_s28 = sshll.u32 %s9710_s26, 6  ;;  %s11153_s13 = sld [smem:[#allocation37_spill]] }
  0x63   : > { %s9715_s30 = scalar_lea.vmem %s11142_s9, %s11205_s27  ;;  %s11148_s27 = sld [smem:[#allocation32_spill]] }
  0x64   : > { %11143 = sst [smem:[#allocation23_spill]] %s9715_s30  ;;  %s9720_s29 = scalar_lea.vmem %s11144_s23, %s8424_s0 }
  0x65   : > { %11145 = sst [smem:[#allocation24_spill]] %s9720_s29  ;;  %s8429_s29 = sshll.u32 %s9710_s26, 2 }
  0x66   : > { %s9739_s23 = scalar_lea.vmem %s11149_s5, %s8565_s7  ;;  %s8568_s2 = sshll.u32 %s9710_s26, 5 }
  0x67   : > { %s9749_s24 = scalar_lea.vmem %s11151_s11, %s8429_s29  ;;  %s11154_s15 = sld [smem:[#allocation39_spill]] }
  0x68   : > { %s9763_s4 = scalar_lea.vmem %s11153_s13, %s8567_s28  ;;  %s11155_s17 = sld [smem:[#allocation40_spill]] }
  0x69   : > { %s9734_s22 = scalar_lea.vmem %s11148_s27, %s8565_s7  ;;  %s8436_s5 = sshll.u32 %s9710_s26, 3 }
  0x6a   : > { %s9792_s14 = scalar_lea.vmem %s11065_s19, %s8436_s5  ;;  %s9797_s27 = scalar_lea.vmem %s11067_s21, %s8568_s2 }
  0x6b   : > { %s9804_s7 = scalar_lea.vmem [#allocation7], %s9706_s1  ;;  %s11157_s28 = sld [smem:[#allocation13_spill]] }
  0x6d   : > { %s9769_s29 = scalar_lea.vmem %s11154_s15, %s8568_s2 }
  0x6e   : > { %s9778_s10 = scalar_lea.vmem %s11155_s17, %s8568_s2  ;;  %s11156_s17 = sld [smem:[#allocation41_spill]] }
  0x71   : > { %p8439_p10 = scmp.ne.s32.totalorder %s11157_s28, 0 }
  0x72   : > { %s11158_s6 = sld [smem:[#allocation27_spill]] (!%p8439_p10)  ;;  %vm1157_vm0 = vcmask (!%p8439_p10), 1042432   ;;  %v9448_v1 = vmov (!%p8439_p10), 0.0   ;;  %vm1341_vm1 = vcmask (!%p8439_p10), 1041408   ;;  %vm9449_vm2 = vmmov (!%p8439_p10), 0   ;;  %s11160_s1 = sld [smem:[#allocation24_spill]] (!%p8439_p10) }
  0x73   : > { %1121 = sbr.rel (%p8439_p10) target bundleno = 356 (0x164), region = 132  ;;  %s11159_s15 = sld [smem:[#allocation23_spill]] (!%p8439_p10)  ;;  %8702 = vmatprep.subr.bf16.mxu0 (!%p8439_p10), %v9448_v1  ;;  %8708 = vmatprep.subr.bf16.mxu1 (!%p8439_p10), %v9448_v1  ;;  %v9450_v7 = vmov (!%p8439_p10), 65535   ;;  %vm1133_vm3 = vcmask (!%p8439_p10), 1041409   ;;  %vm1153_vm4 = vcmask (!%p8439_p10), 48128   ;;  %vm1337_vm5 = vcmask (!%p8439_p10), 39936  }
  0x74   : > { %s1115_s0 = scalar_lea.vmem %s11156_s17, %s9710_s26  ;;  %8704 = vmatprep.mubr.msk.bf16.mxu0 (!%p8439_p10), %vm9449_vm2, %v9448_v1  ;;  %v1342_v8 = vsel (!%p8439_p10), %vm1341_vm1, 4294967295, %v9450_v7  ;;  %8710 = vmatprep.mubr.msk.bf16.mxu1 (!%p8439_p10), %vm9449_vm2, %v9448_v1  ;;  %s11161_s5 = sld [smem:[#allocation29_spill]] (!%p8439_p10)  ;;  %v9451_v22 = vmov (!%p8439_p10), 1966171168   ;;  %v1141_v24 = vlaneseq (!%p8439_p10)  ;;  %vm1226_vm6 = vcmask (!%p8439_p10), 253952  }
  0x75   : > { %v1343_v14 = vsel (!%p8439_p10), %vm1157_vm0, %v1342_v8, 0  ;;  %v1139_v23 = vunpack.c.l.s4 (!%p8439_p10), %v9451_v22  ;;  %s11162_s8 = sld [smem:[#allocation28_spill]] (!%p8439_p10)  ;;  %v8444_v50 = vld [vmem:[#allocation4] ss:$0 sm:$0xff] (!%p8439_p10)  ;;  %vm1388_vm7 = vcmask (!%p8439_p10), 261120  }
  0x76   : > { %v1142_v26 = vshrl.u32 (!%p8439_p10), %v1141_v24, 7 }
  0x77   : > { %v1140_v25 = vunpack.c.0.s8 (!%p8439_p10), %v1139_v23 }
  0x78   : > { %v1126_v0 = vld [vmem:[%s11158_s6] sm:$0x7] (!%p8439_p10)  ;;  %v8441_v3 = vld [vmem:[%s11158_s6 + $0x4] sm:$0x7] (!%p8439_p10)  ;;  %v1321_v20 = vld [vmem:[%s11160_s1 + $0x8] sm:$0xff] (!%p8439_p10) }
  0x79   : > { %v1159_v2 = vsel (!%p8439_p10), %vm1157_vm0, %v1126_v0, 0  ;;  %v1251_v4 = vsel (!%p8439_p10), %vm1157_vm0, %v8441_v3, 0  ;;  %v1122_v5 = vld [vmem:[%s11159_s15] sm:$0x1] (!%p8439_p10)  ;;  %v1123_v6 = vld [vmem:[%s11159_s15 + $0x1] sm:$0x1] (!%p8439_p10)  ;;  %v1143_v28 = vsub.s32 (!%p8439_p10), %v1140_v25, %v1142_v26 }
  0x7a   : > { %8703 = vmatpush3.bf16.msra.mxu0 %v1159_v2  ;;  %8709 = vmatpush3.bf16.msra.mxu1 %v1251_v4  ;;  %v1124_v9 = vpack.c.bf16 %v1122_v5, %v1122_v5  ;;  %v1125_v10 = vpack.c.bf16 %v1123_v6, %v1123_v6  ;;  %v1324_v13 = vld [vmem:[%s11161_s5] sm:$0x7] }
  0x7b   : > { %8714 = vmatprep.subr.bf16.mxu0 %v9448_v1  ;;  %v1345_v16 = vand.u32 %v1343_v14, %v1324_v13  ;;  %v1320_v19 = vld [vmem:[%s11160_s1] sm:$0xff]  ;;  %s11163_s9 = smov %s11162_s8 }
  0x7c   : > { %v1130_v11 = vunpack.c.l.b16 %v1124_v9  ;;  %v1131_v12 = vunpack.c.l.b16 %v1125_v10  ;;  %v8571_v21 = vpack.c.bf16 %v1321_v20, %v1320_v19  ;;  %v9121_v27 = vld [vmem:[%s11162_s8] ss:$0 sps:$4 sm:$0x11]   ;;  %v9122_v29 = vld [vmem:[%s11163_s9 + $0x1] ss:$0 sps:$4 sm:$0x11]  }
  0x7d   : > { %v1144_v30 = vrot.slane %v9121_v27, %v1143_v28  ;;  %v1241_v31 = vrot.slane %v9122_v29, %v1143_v28 }
  0x7e   : > { %v1132_v15 = vrot.slane %v1131_v12, 7 }
  0x7f   : > { %v1151_v32 = vrot.slane %v1144_v30, %v1143_v28  ;;  %v1248_v33 = vrot.slane %v1241_v31, %v1143_v28 }
  0x80   : > { %v1134_v17 = vsel %vm1133_vm3, %v1132_v15, %v1130_v11 }
  0x81   : > { %v1135_v18 = vpack.c.b16 %v1134_v17, %v1134_v17 }
  0x83   : > { %8705 = vmatmul.mubr.msk.bf16.vlgmr.msra.gmra.mrb[0].mxu0 %vm1153_vm4, %v1135_v18  ;;  %8711 = vmatmul.mubr.msk.bf16.vlgmr.msra.gmra.mrb[0].mxu1 %vm1153_vm4, %v1135_v18 }
  0x84   : > { %8715 = vmatpush3.bf16.msra.mxu0 %v1345_v16  ;;  %8716 = vmatprep.mubr.msk.bf16.mxu0 %vm9449_vm2, %v9448_v1 }
  0x8b   : > { %8717 = vmatmul.mubr.msk.bf16.vlgmr.msra.gmra.mrb[4].mxu0 %vm1337_vm5, %v8571_v21 }
 0x156   : > { %v1195_v34 = vpop.f32.mrb[0].mxu0  ;;  %v1287_v35 = vpop.f32.mrb[0].mxu1 }
 0x157   : > { %v1196_v36 = vadd.f32 %v1195_v34, %v1151_v32  ;;  %v8706_v37 = vpop.f32.mrb[1].mxu0  ;;  %v1288_v38 = vadd.f32 %v1287_v35, %v1248_v33  ;;  %v8712_v39 = vpop.f32.mrb[1].mxu1 }
 0x158   : > { %v1198_v40 = vpop.f32.mrb[2].mxu0  ;;  %v1290_v41 = vpop.f32.mrb[2].mxu1 }
 0x159   : > { %v1208_v42 = vrot.slane %v1196_v36, %v1143_v28  ;;  %v1300_v43 = vrot.slane %v1288_v38, %v1143_v28  ;;  %v8707_v44 = vpop.f32.mrb[3].mxu0  ;;  %v8713_v45 = vpop.f32.mrb[3].mxu1 }
 0x15b   : > { %v1209_v46 = vcombine.high %v1208_v42, %v1208_v42  ;;  %v1216_v47 = vrot.slane %v1208_v42, %v1143_v28  ;;  %v1301_v48 = vcombine.high %v1300_v43, %v1300_v43  ;;  %v1308_v49 = vrot.slane %v1300_v43, %v1143_v28 }
 0x15d   : > { %v1223_v51 = vrot.slane %v1209_v46, %v1143_v28  ;;  %1227 = vst.msk [vmem:[#allocation2] sm:$0x1] %vm1226_vm6, %v1216_v47  ;;  %v1315_v52 = vrot.slane %v1301_v48, %v1143_v28  ;;  %1318 = vst.msk [vmem:[#allocation2 + $0x1] sm:$0x1] %vm1226_vm6, %v1308_v49 }
 0x15e   : > { %v1381_v53 = vpop.f32.mrb[4].mxu0 }
 0x15f   : > { %1228 = vst.msk [vmem:[#allocation2 + $0x10] sm:$0x1] %vm1226_vm6, %v1223_v51  ;;  %1319 = vst.msk [vmem:[#allocation2 + $0x11] sm:$0x1] %vm1226_vm6, %v1315_v52  ;;  %v1382_v54 = vadd.f32 %v8444_v50, %v1381_v53  ;;  %v8718_v55 = vpop.f32.mrb[5].mxu0 }
 0x160   : > { %v1384_v56 = vpop.f32.mrb[6].mxu0 }
 0x161   : > { %1389 = vst.msk [vmem:[#allocation2 + $0x2] sm:$0xff] %vm1388_vm7, %v1382_v54  ;;  %v1385_v57 = vadd.f32 %v8444_v50, %v1384_v56  ;;  %v8719_v58 = vpop.f32.mrb[7].mxu0 }
 0x163   : > { %1390 = vst.msk [vmem:[#allocation2 + $0x12] sm:$0xff] %vm1388_vm7, %v1385_v57 }
 0x164 PF: > { %vm1399_vm8 = vcmask 261120   ;;  %vm1403_vm9 = vcmask 254976   ;;  %v9123_v7 = vld [vmem:[%s9734_s22] sm:$0xff]   ;;  %v9124_v8 = vld [vmem:[%s9734_s22 + $0x8] sm:$0xff]   ;;  %v9452_v22 = vmov 1966171168   ;;  %v1459_v24 = vlaneseq  ;;  %s11170_s8 = scalar_lea.vmem %s11058_s12, %s9710_s26 }
 0x165   : > { %8720 = vmatprep.subr.bf16.mxu1 %v9123_v7  ;;  %v9839_v9 = vld [vmem:[%s9739_s23] sm:$0xff]   ;;  %v1457_v23 = vunpack.c.l.s4 %v9452_v22  ;;  %s11164_s2 = sld [smem:[#allocation31_spill]]  ;;  %vm9454_vm10 = vmmov 0   ;;  %s11166_s30 = sld [smem:[#allocation33_spill]]  ;;  %vm2052_vm11 = vcmask 1040384   ;;  %vm2197_vm12 = vcmask 1041408  }
 0x166   : > { %8721 = vmatpush3.bf16.msra.mxu1 %v9123_v7  ;;  %v9842_v29 = vshrl.u32 %v1459_v24, 7  ;;  %v2535_v24 = vld [vmem:[%s9763_s4 + $0x38] sm:$0xff]  ;;  %s11168_s5 = sld [smem:[#allocation35_spill]]  ;;  %vm2284_vm13 = vcmask 1042432   ;;  %vm2629_vm14 = vcmask 523264   ;;  %s11171_s25 = sld [smem:[#allocation38_spill]] }
 0x167   : > { %8722 = vmatprep.subr.bf16.mxu1 %v9124_v8  ;;  %v1458_v28 = vunpack.c.0.s8 %v1457_v23  ;;  %v2534_v23 = vld [vmem:[%s9763_s4 + $0x30] sm:$0xff]  ;;  %vm3464_vm15 = vcmask 7168   ;;  %vm5803_vm0 = vcmask 64512   ;;  %vm5948_vm1 = vcmask 516096  }
 0x168   : > { %v1391_v60 = vld [vmem:[#allocation2] sm:$0xff]  ;;  %v1392_v1 = vld [vmem:[#allocation2 + $0x8] sm:$0x3] }
 0x169   : > { %v1395_v63 = vmul.f32 %v1391_v60, %v1391_v60  ;;  %v1396_v2 = vmul.f32 %v1392_v1, %v1392_v1  ;;  %v9850_v38 = vsub.s32 %v1458_v28, %v9842_v29 }
 0x16a   : > { %v1393_v59 = vld [vmem:[#allocation2 + $0x10] sm:$0xff]  ;;  %v1394_v61 = vld [vmem:[#allocation2 + $0x18] sm:$0x3]  ;;  %8723 = vmatpush3.bf16.msra.mxu1 %v9124_v8 }
 0x16b   : > { %v1397_v62 = vmul.f32 %v1393_v59, %v1393_v59  ;;  %v1398_v0 = vmul.f32 %v1394_v61, %v1394_v61  ;;  %v1400_v4 = vsel %vm1399_vm8, %v1395_v63, 0.0  ;;  %v1404_v6 = vsel %vm1403_vm9, %v1396_v2, 0.0  ;;  %8728 = vmatprep.subr.bf16.mxu1 %v9839_v9  ;;  %s11165_s17 = scalar_lea.vmem %s11164_s2, %s9710_s26  ;;  %s11167_s28 = scalar_lea.vmem %s11166_s30, %s9710_s26 }
 0x16c   : > { %1401 = vadd.xlane.f32.xlu0 %v1400_v4  ;;  %v8447_v31 = vld [vmem:[%s11165_s17] ss:$0 sm:$0xff]  ;;  %s11169_s3 = scalar_lea.vmem %s11168_s5, %s9710_s26  ;;  %s11172_s22 = scalar_lea.vmem %s11171_s25, %s9710_s26 }
 0x16d   : > { %v1407_v3 = vsel %vm1399_vm8, %v1397_v62, 0.0  ;;  %v1410_v5 = vsel %vm1403_vm9, %v1398_v0, 0.0  ;;  %s11173_s17 = scalar_lea.vmem %s11062_s16, %s9710_s26  ;;  %s11174_s30 = scalar_lea.vmem %s11064_s18, %s9710_s26 }
 0x16e   : > { %1408 = vadd.xlane.f32.xlu1 %v1407_v3 }
 0x170   : > { %1405 = vadd.xlane.f32.xlu0 %v1404_v6 }
 0x172   : > { %1411 = vadd.xlane.f32.xlu1 %v1410_v5 }
 0x1f9   : > { %v1402_v11 = vpop.xlane.xlu0 %1401 }
 0x1fa   : > { %v1414_v13 = vmul.f32 0.03125, %v1402_v11 }
 0x1fb   : > { %v1409_v10 = vpop.xlane.xlu1 %1408 }
 0x1fc   : > { %v1416_v12 = vmul.f32 0.03125, %v1409_v10  ;;  %v1418_v15 = vadd.f32 1e-05, %v1414_v13  ;;  %v2528_v13 = vld [vmem:[%s9763_s4] sm:$0xff] }
 0x1fd   : > { %v1406_v17 = vpop.xlane.xlu0 %1405 }
 0x1fe   : > { %v1420_v14 = vadd.f32 1e-05, %v1416_v12  ;;  %v1415_v19 = vmul.f32 0.03125, %v1406_v17  ;;  %v9126_v12 = vld [vmem:[%s9739_s23 + $0x8] sm:$0xff]   ;;  %v2531_v17 = vld [vmem:[%s9763_s4 + $0x18] sm:$0xff] }
 0x1ff   : > { %v1412_v16 = vpop.xlane.xlu1 %1411 }
 0x200   : > { %9139 = vrsqrt.f32 %v1420_v14  ;;  %v1417_v18 = vmul.f32 0.03125, %v1412_v16  ;;  %v1419_v21 = vadd.f32 1e-05, %v1415_v19  ;;  %v2529_v14 = vld [vmem:[%s9763_s4 + $0x8] sm:$0xff]  ;;  %v2530_v16 = vld [vmem:[%s9763_s4 + $0x10] sm:$0xff]  ;;  %v9455_v19 = vmov 0.0  }
 0x201   : > { %9141 = vrsqrt.f32 %v1418_v15  ;;  %v9009_v15 = vpack.c.bf16 %v2529_v14, %v2528_v13  ;;  %8752 = vmatprep.mubr.msk.f32.mxu0 %vm9454_vm10, %v9455_v19 }
 0x202   : > { %v1421_v20 = vadd.f32 1e-05, %v1417_v18  ;;  %v9453_v18 = vmov 0.0|0.0  }
 0x203   : > { %9008 = vmatprep.subr.bf16.mxu0 %v9453_v18 }
 0x204   : > { %9143 = vrsqrt.f32 %v1421_v20  ;;  %9010 = vmatpush3.bf16.msra.mxu0 %v9009_v15  ;;  %v2532_v20 = vld [vmem:[%s9763_s4 + $0x20] sm:$0xff] }
 0x205   : > { %9145 = vrsqrt.f32 %v1419_v21  ;;  %9011 = vmatprep.subr.bf16.mxu0 %v9453_v18  ;;  %v2533_v21 = vld [vmem:[%s9763_s4 + $0x28] sm:$0xff] }
 0x206   : > { %v9015_v22 = vpack.c.bf16 %v2533_v21, %v2532_v20 }
 0x20a   : > { %v9140_v25 = vpop.eup %9139 }
 0x20b   : > { %v9142_v26 = vpop.eup %9141  ;;  %v1428_v27 = vmul.f32 %v9140_v25, %v1393_v59  ;;  %v9018_v25 = vpack.c.bf16 %v2535_v24, %v2534_v23 }
 0x20c   : > { %v1426_v32 = vmul.f32 %v9142_v26, %v1391_v60  ;;  %v9456_v26 = vmov 1983009808  }
 0x20d   : > { %v1439_v36 = vmul.f32 %v8447_v31, %v1428_v27  ;;  %v1535_v27 = vunpack.c.l.s4 %v9456_v26 }
 0x20e   : > { %v9144_v30 = vpop.eup %9143  ;;  %v1437_v39 = vmul.f32 %v8447_v31, %v1426_v32 }
 0x20f   : > { %v9146_v33 = vpop.eup %9145  ;;  %v1429_v34 = vmul.f32 %v9144_v30, %v1394_v61  ;;  %v1536_v28 = vunpack.c.0.s8 %v1535_v27  ;;  %v8448_v30 = vld [vmem:[%s11167_s28] ss:$0 sm:$0xff]  ;;  %s11175_s28 = scalar_lea.vmem %s11066_s20, %s9710_s26  ;;  %s11177_s26 = sld [smem:[#allocation13_spill]] }
 0x210   : > { %v1427_v35 = vmul.f32 %v9146_v33, %v1392_v1  ;;  %v1533_v32 = vcombine.high %v8448_v30, %v8448_v30  ;;  %v9127_v33 = vld [vmem:[%s9769_s29] sm:$0xff]  }
 0x211   : > { %v1440_v37 = vmul.f32 %v8447_v31, %v1429_v34  ;;  %v9896_v34 = vld [vmem:[%s9778_s10] sm:$0xff]  }
 0x212   : > { %v1438_v40 = vmul.f32 %v8447_v31, %v1427_v35  ;;  %v9892_v31 = vsub.s32 %v1536_v28, %v9842_v29  ;;  %v9129_v35 = vld [vmem:[%s9769_s29 + $0x8] sm:$0xff]  }
 0x213   : > { %v8450_v41 = vpack.c.bf16 %v1440_v37, %v1440_v37  ;;  %v1442_v42 = vpack.c.bf16 %v1440_v37, %v1439_v36 }
 0x214   : > { %v1441_v43 = vpack.c.bf16 %v1438_v40, %v1437_v39  ;;  %v8449_v44 = vpack.c.bf16 %v1438_v40, %v1438_v40  ;;  %v1540_v36 = vrot.slane %v8448_v30, %v9892_v31  ;;  %v1547_v37 = vrot.slane %v1533_v32, %v9892_v31  ;;  %v9131_v39 = vld [vmem:[%s9769_s29 + $0x10] sm:$0xff]  }
 0x215   : > { %v1501_v45 = vrot.slane %v1442_v42, %v9850_v38  ;;  %v1508_v50 = vrot.slane %v8450_v41, %v9850_v38  ;;  %v9133_v42 = vld [vmem:[%s9769_s29 + $0x18] sm:$0xff]   ;;  %p8555_p13 = scmp.ne.s32.totalorder %s11177_s26, 1 }
 0x216   : > { %v1462_v46 = vrot.slane %v1441_v43, %v9850_v38  ;;  %v1469_v47 = vrot.slane %v8449_v44, %v9850_v38  ;;  %v1549_v40 = vcombine.high %v1547_v37, %v1547_v37  ;;  %v1548_v41 = vcombine.high %v1540_v36, %v1540_v36 }
 0x217   : > { %v1509_v48 = vcombine.high %v1501_v45, %v1501_v45  ;;  %v1516_v49 = vrot.slane %v1501_v45, %v9850_v38  ;;  %v1523_v59 = vrot.slane %v1508_v50, %v9850_v38  ;;  %v1643_v45 = vcombine.low %v1540_v36, %v1540_v36 }
 0x218   : > { %v1470_v51 = vcombine.high %v1462_v46, %v1462_v46  ;;  %v1484_v52 = vrot.slane %v1469_v47, %v9850_v38  ;;  %v1477_v55 = vrot.slane %v1462_v46, %v9850_v38  ;;  %v1626_v43 = vcombine.low %v1540_v36, %v1548_v41 }
 0x219   : > { %v1530_v53 = vrot.slane %v1509_v48, %v9850_v38  ;;  %v1531_v54 = vcombine.high %v1516_v49, %v1516_v49  ;;  %v1627_v44 = vcombine.low %v1547_v37, %v1549_v40  ;;  %v1644_v46 = vcombine.low %v1548_v41, %v1547_v37 }
 0x21a   : > { %v1491_v56 = vrot.slane %v1470_v51, %v9850_v38  ;;  %v1552_v57 = vcombine.low %v1484_v52, %v1516_v49  ;;  %v1634_v47 = vrot.slane %v1626_v43, %v9892_v31  ;;  %v1651_v49 = vrot.slane %v1643_v45, %v9892_v31 }
 0x21b   : > { %v1553_v58 = vcombine.low %v1530_v53, %v1531_v54  ;;  %v1532_v60 = vcombine.high %v1530_v53, %v1530_v53  ;;  %v1641_v48 = vrot.slane %v1627_v44, %v9892_v31  ;;  %v1658_v50 = vrot.slane %v1644_v46, %v9892_v31 }
 0x21c   : > { %v1550_v61 = vcombine.low %v1477_v55, %v1491_v56  ;;  %v8451_v62 = vcombine.high %v1477_v55, %v1491_v56  ;;  %v1574_v63 = vrot.slane %v1552_v57, %v9850_v38  ;;  %v1660_v51 = vcombine.low %v1549_v40, %v1540_v36  ;;  %v9911_v55 = vld [vmem:[%s9749_s24] sm:$0xf]  ;;  %s11178_s24 = sld [smem:[#allocation43_spill]] (!%p8555_p13) }
 0x21d   : > { %v1581_v0 = vrot.slane %v1553_v58, %v9850_v38  ;;  %v1599_v1 = vcombine.low %v1532_v60, %v1523_v59  ;;  %v1642_v52 = vcombine.low %v1634_v47, %v1641_v48  ;;  %v1970_v53 = vsub.s32 3, %v9842_v29 }
 0x21e   : > { %v1560_v2 = vrot.slane %v1550_v61, %v9850_v38  ;;  %v1567_v3 = vrot.slane %v8451_v62, %v9850_v38  ;;  %v1659_v56 = vcombine.low %v1651_v49, %v1658_v50  ;;  %v1667_v57 = vrot.slane %v1660_v51, %v9892_v31 }
 0x21f   : > { %v1583_v4 = vcombine.low %v1574_v63, %v1581_v0  ;;  %v1606_v7 = vrot.slane %v1599_v1, %v9850_v38  ;;  %v1971_v61 = vrot.slane %v9911_v55, %v1970_v53  ;;  %v8456_v63 = vld [vmem:[%s11169_s3] ss:$0 sm:$0xff]  ;;  %vm8041_vm2 = vcmask (!%p8555_p13), 1045504  }
 0x220   : > { %v1582_v5 = vcombine.low %v1560_v2, %v1567_v3  ;;  %v9962_v24 = vrot.slane %v8456_v63, %v9892_v31 }
 0x221   : > { %v1597_v6 = vrot.slane %v1583_v4, %v9850_v38  ;;  %v1613_v11 = vrot.slane %v1606_v7, %v9850_v38  ;;  %v1973_v7 = vcombine.high %v1971_v61, %v1971_v61 }
 0x222   : > { %v1590_v8 = vrot.slane %v1582_v5, %v9850_v38  ;;  %v10000_v43 = vcombine.high %v9962_v24, %v9962_v24  ;;  %v1836_v44 = vcombine.low %v9962_v24, %v9962_v24 }
 0x223   : > { %v9954_v21 = vrot.slane %v1973_v7, %v9892_v31 }
 0x224   : > { %v1598_v10 = vcombine.low %v1590_v8, %v1597_v6  ;;  %v1790_v6 = vcombine.high %v8456_v63, %v8456_v63 }
 0x226   : > { %8724 = vmatprep.mubr.msk.bf16.mxu1 %vm1399_vm8, %v1598_v10 }
 0x227   : > { %8725 = vmatmul.mubr.msk.bf16.vlgmr.msra.gmra.mrb[0].mxu1 %vm1399_vm8, %v1613_v11 }
 0x228   : > { %8729 = vmatpush3.bf16.msra.mxu1 %v9839_v9  ;;  %8732 = vmatprep.mubr.msk.bf16.mxu1 %vm1399_vm8, %v1598_v10  ;;  %v9012_v9 = vpack.c.bf16 %v2531_v17, %v2530_v16  ;;  %v9931_v10 = vsub.s32 1, %v9842_v29 }
 0x229   : > { %8730 = vmatprep.subr.bf16.mxu1 %v9126_v12 }
 0x22a   : > { %9013 = vmatpush3.bf16.msra.mxu0 %v9012_v9  ;;  %v9951_v9 = vrot.slane %v1790_v6, %v9892_v31  ;;  %v9968_v26 = vrot.slane %v9911_v55, %v9931_v10 }
 0x22b   : > { %9014 = vmatprep.subr.bf16.mxu0 %v9453_v18 }
 0x22c   : > { %8731 = vmatpush3.bf16.msra.mxu1 %v9126_v12  ;;  %v9992_v40 = vcombine.high %v9951_v9, %v9951_v9 }
 0x22d   : > { %8761 = vmatprep.subr.bf16.mxu1 %v9127_v33 }
 0x22e   : > { %9016 = vmatpush3.bf16.msra.mxu0 %v9015_v22  ;;  %v1853_v6 = vcombine.low %v9992_v40, %v9962_v24 }
 0x22f   : > { %8733 = vmatmul.mubr.msk.bf16.vlgmr.msra.gmra.mrb[4].mxu1 %vm1399_vm8, %v1613_v11  ;;  %9017 = vmatprep.subr.bf16.mxu0 %v9453_v18  ;;  %v2067_v18 = vsub.s32 2, %v9842_v29 }
 0x230   : > { %8762 = vmatpush3.bf16.msra.mxu1 %v9127_v33 }
 0x231   : > { %8763 = vmatprep.subr.bf16.mxu1 %v9129_v35  ;;  %v9986_v37 = vrot.slane %v9911_v55, %v2067_v18  ;;  %v10040_v18 = vcombine.high %v9954_v21, %v9954_v21 }
 0x232   : > { %9019 = vmatpush3.bf16.msra.mxu0 %v9018_v25 }
 0x233   : > { %8773 = vmatprep.subr.bf16.mxu0 %v9896_v34 }
 0x234   : > { %8764 = vmatpush3.bf16.msra.mxu1 %v9129_v35 }
 0x235   : > { %8765 = vmatprep.subr.bf16.mxu1 %v9131_v39 }
 0x238   : > { %8766 = vmatpush3.bf16.msra.mxu1 %v9131_v39 }
 0x239   : > { %8767 = vmatprep.subr.bf16.mxu1 %v9133_v42 }
 0x23c   : > { %8768 = vmatpush3.bf16.msra.mxu1 %v9133_v42 }
 0x23d   : > { %8785 = vmatprep.subr.mxu1 %v9455_v19 }
 0x2fa   : > { %v8726_v54 = vpop.f32.mrb[0].mxu1 }
 0x2fb   : > { %v1711_v58 = vpop.f32.mrb[1].mxu1  ;;  %v1720_v3 = vadd.f32 %v8726_v54, %v1667_v57 }
 0x2fc   : > { %v1712_v59 = vadd.f32 %v1711_v58, %v1642_v52  ;;  %v8727_v60 = vpop.f32.mrb[2].mxu1  ;;  %v1837_v52 = vcombine.low %v10000_v43, %v9951_v9  ;;  %v10021_v58 = vrot.slane %v1971_v61, %v9892_v31  ;;  %v1844_v61 = vrot.slane %v1836_v44, %v9892_v31 }
 0x2fd   : > { %v1714_v62 = vpop.f32.mrb[3].mxu1  ;;  %v9942_v14 = vrot.slane %v1720_v3, %v9892_v31  ;;  %v10025_v60 = vsub.s32 0, %v9842_v29 }
 0x2fe   : > { %v1728_v0 = vcombine.high %v1712_v59, %v1712_v59  ;;  %v9921_v1 = vrot.slane %v1712_v59, %v9892_v31  ;;  %v1715_v2 = vadd.f32 %v1714_v62, %v1659_v56  ;;  %v1851_v7 = vrot.slane %v1837_v52, %v9892_v31 }
 0x2ff   : > { %v9975_v32 = vcombine.high %v9942_v14, %v9942_v14 }
 0x300   : > { %v9924_v4 = vrot.slane %v1728_v0, %v9892_v31  ;;  %v9928_v5 = vcombine.high %v9921_v1, %v9921_v1  ;;  %v1745_v8 = vcombine.high %v1715_v2, %v1715_v2  ;;  %v1752_v15 = vrot.slane %v1715_v2, %v9892_v31 }
 0x301   : > { %v2145_v41 = vcombine.low %v9921_v1, %v9921_v1  ;;  %v2051_v49 = vrot.slane %v9975_v32, %v9892_v31 }
 0x302   : > { %v9935_v11 = vcombine.high %v9924_v4, %v9924_v4  ;;  %v2004_v12 = vcombine.low %v9921_v1, %v9928_v5  ;;  %v9939_v13 = vpop.f32.mrb[4].mxu1  ;;  %v9957_v22 = vrot.slane %v1745_v8, %v9892_v31  ;;  %v9959_v23 = vcombine.high %v1752_v15, %v1752_v15 }
 0x303   : > { %v9945_v16 = vpop.f32.mrb[5].mxu1  ;;  %v2027_v30 = vrot.slane %v1752_v15, %v9892_v31  ;;  %v2146_v33 = vcombine.low %v9928_v5, %v9924_v4  ;;  %v2153_v59 = vrot.slane %v2145_v41, %v9892_v31  ;;  %v2057_v3 = vrot.slane %v2051_v49, 7 }
 0x304   : > { %v2005_v17 = vcombine.low %v9924_v4, %v9935_v11  ;;  %v8735_v20 = vpop.f32.mrb[6].mxu1  ;;  %v2012_v27 = vrot.slane %v2004_v12, %v9892_v31  ;;  %v9981_v35 = vcombine.high %v9957_v22, %v9957_v22  ;;  %v2028_v39 = vcombine.low %v9959_v23, %v9957_v22 }
 0x305   : > { %v9964_v25 = vpop.f32.mrb[7].mxu1  ;;  %v2054_v46 = vrot.slane %v2027_v30, 7  ;;  %v2168_v47 = vrot.slane %v9935_v11, %v9892_v31  ;;  %v2160_v50 = vrot.slane %v2146_v33, %v9892_v31  ;;  %v2177_v56 = vrot.slane %v9959_v23, %v9892_v31 }
 0x306   : > { %v2019_v28 = vrot.slane %v2005_v17, %v9892_v31  ;;  %v2029_v42 = vcombine.low %v9981_v35, %v9942_v14  ;;  %v2170_v48 = vcombine.low %v9957_v22, %v9981_v35  ;;  %v2036_v53 = vrot.slane %v2028_v39, %v9892_v31 }
 0x307   : > { %v2205_v2 = vmul.f32 %v9968_v26, %v2168_v47  ;;  %v2161_v8 = vcombine.low %v2153_v59, %v2160_v50  ;;  %v1998_v12 = vmul.f32 %v10021_v58, %v1752_v15  ;;  %v10044_v20 = vrot.slane %v9911_v55, %v10025_v60 }
 0x308   : > { %v9983_v36 = vcombine.low %v2012_v27, %v2019_v28  ;;  %v2043_v51 = vrot.slane %v2029_v42, %v9892_v31  ;;  %v2184_v57 = vrot.slane %v2170_v48, %v9892_v31  ;;  %v10048_v27 = vcombine.high %v10021_v58, %v10021_v58 }
 0x309   : > { %v2235_v39 = vrot.slane %v2205_v2, %v9892_v31  ;;  %v1860_v42 = vrot.slane %v1853_v6, %v9892_v31  ;;  %v2198_v44 = vsel %vm2197_vm12, 0.0, %v2161_v8  ;;  %v1852_v48 = vcombine.low %v1844_v61, %v1851_v7 }
 0x30a   : > { %v2053_v45 = vrot.slane %v9983_v36, 7  ;;  %v10027_v62 = vcombine.low %v2036_v53, %v2043_v51  ;;  %v2185_v0 = vcombine.low %v2177_v56, %v2184_v57  ;;  %v2002_v49 = vmul.f32 %v10040_v18, %v9942_v14 }
 0x30b   : > { %v2280_v50 = vrot.slane %v9983_v36, 5  ;;  %v1999_v51 = vmul.f32 %v10021_v58, %v9959_v23  ;;  %v2204_v57 = vmul.f32 %v9968_v26, %v2198_v44  ;;  %v2000_v59 = vmul.f32 %v10048_v27, %v9957_v22 }
 0x30c   : > { %v2055_v54 = vsel %vm2052_vm11, %v2053_v45, %v2054_v46  ;;  %v2056_v29 = vrot.slane %v10027_v62, 7  ;;  %v2199_v28 = vsel %vm2197_vm12, 0.0, %v2185_v0  ;;  %v2063_v41 = vsel %vm2052_vm11, 0.0, %v2053_v45 }
 0x30d   : > { %v2070_v63 = vmul.f32 %v9986_v37, %v2055_v54  ;;  %v2206_v46 = vmul.f32 %v9968_v26, %v2199_v28  ;;  %v2069_v52 = vmul.f32 %v9986_v37, %v2063_v41  ;;  %v2281_v7 = vrot.slane %v10027_v62, 5 }
 0x30e   : > { %v10052_v15 = vsel %vm2052_vm11, %v2056_v29, %v2057_v3  ;;  %v2064_v30 = vsel %vm2052_vm11, 0.0, %v2056_v29  ;;  %v1907_v3 = vadd.f32 %v9939_v13, %v1860_v42  ;;  %v2292_v8 = vmul.f32 %v10044_v20, %v2280_v50 }
 0x30f   : > { %v2100_v17 = vrot.slane %v2070_v63, %v9892_v31  ;;  %v2071_v55 = vmul.f32 %v9986_v37, %v2064_v30  ;;  %v2236_v54 = vcombine.high %v2206_v46, %v2206_v46  ;;  %v2243_v56 = vrot.slane %v2206_v46, %v9892_v31 }
 0x310   : > { %v2001_v63 = vmul.f32 %v9954_v21, %v9981_v35  ;;  %v2084_v35 = vrot.slane %v2069_v52, %v9892_v31  ;;  %v2286_v13 = vsel %vm2284_vm13, 0.0, %v2281_v7  ;;  %v2322_v41 = vrot.slane %v2292_v8, %v9892_v31 }
 0x311   : > { %v2139_v33 = vadd.f32 %v2100_v17, %v1998_v12  ;;  %v2101_v45 = vcombine.high %v2071_v55, %v2071_v55  ;;  %v2108_v53 = vrot.slane %v2071_v55, %v9892_v31  ;;  %v10076_v2 = vrot.slane %v2236_v54, %v9892_v31 }
 0x312   : > { %v2077_v12 = vcombine.high %v2069_v52, %v2069_v52  ;;  %v2251_v29 = vcombine.high %v2243_v56, %v2243_v56  ;;  %v10091_v55 = vrot.slane %v1907_v3, %v9892_v31  ;;  %v1994_v42 = vmul.f32 %v10021_v58, %v9921_v1  ;;  %v8462_v1 = vld [vmem:[%s11170_s8] ss:$0 sm:$0xff] }
 0x313   : > { %v2274_v47 = vadd.f32 %v2235_v39, %v2139_v33  ;;  %v2115_v36 = vrot.slane %v2101_v45, %v9892_v31  ;;  %v2116_v0 = vcombine.high %v2108_v53, %v2108_v53  ;;  %v2140_v23 = vadd.f32 %v2108_v53, %v1999_v51 }
 0x314   : > { %v2293_v39 = vmul.f32 %v10044_v20, %v2286_v13  ;;  %v2285_v44 = vsel %vm2284_vm13, 0.0, %v2280_v50  ;;  %v1902_v46 = vadd.f32 %v9964_v25, %v1852_v48  ;;  %v2092_v53 = vcombine.high %v2084_v35, %v2084_v35 }
 0x315   : > { %v2117_v6 = vcombine.high %v2115_v36, %v2115_v36  ;;  %v2142_v61 = vadd.f32 %v2115_v36, %v2001_v63  ;;  %v2141_v22 = vadd.f32 %v2116_v0, %v2000_v59  ;;  %v2275_v17 = vadd.f32 %v2243_v56, %v2140_v23 }
 0x316   : > { %v2323_v51 = vcombine.high %v2293_v39, %v2293_v39  ;;  %v2330_v45 = vrot.slane %v2293_v39, %v9892_v31  ;;  %v2361_v52 = vadd.f32 %v2322_v41, %v2274_v47  ;;  %v2135_v54 = vadd.f32 %v2084_v35, %v1994_v42 }
 0x317   : > { %v10082_v28 = vadd.f32 %v2117_v6, %v2002_v49  ;;  %v2277_v30 = vadd.f32 %v10076_v2, %v2142_v61  ;;  %v2276_v33 = vadd.f32 %v2251_v29, %v2141_v22  ;;  %v2091_v49 = vrot.slane %v2077_v12, %v9892_v31 }
 0x318   : > { %v2212_v56 = vcombine.high %v2204_v57, %v2204_v57  ;;  %v2219_v59 = vrot.slane %v2204_v57, %v9892_v31  ;;  %v10106_v50 = vrot.slane %v2323_v51, %v9892_v31  ;;  %v2338_v25 = vcombine.high %v2330_v45, %v2330_v45 }
 0x319   : > { %v2362_v48 = vadd.f32 %v2330_v45, %v2275_v17  ;;  %v7456_v63 = vsub.f32 0.0, %v10091_v55  ;;  %v2291_v36 = vmul.f32 %v10044_v20, %v2285_v44  ;;  %v1995_v47 = vmul.f32 %v10048_v27, %v9928_v5 }
 0x31a   : > { %v1932_v0 = vcombine.high %v1902_v46, %v1902_v46  ;;  %v2093_v23 = vcombine.high %v2091_v49, %v2091_v49  ;;  %v10112_v57 = vadd.f32 %v2338_v25, %v2276_v33  ;;  %v10115_v3 = vadd.f32 %v10106_v50, %v2277_v30 }
 0x31b   : > { %v10118_v6 = vrot.slane %v8462_v1, %v9892_v31  ;;  %v1996_v61 = vmul.f32 %v9954_v21, %v9924_v4  ;;  %v2226_v8 = vrot.slane %v2212_v56, %v9892_v31  ;;  %v2270_v12 = vadd.f32 %v2219_v59, %v2135_v54 }
 0x31c   : > { %v2136_v22 = vadd.f32 %v2092_v53, %v1995_v47  ;;  %v1997_v5 = vmul.f32 %v10040_v18, %v9935_v11  ;;  %v2227_v27 = vcombine.high %v2219_v59, %v2219_v59  ;;  %v7474_v29 = vmul.f32 1.442695, %v7456_v63 }
 0x31d   : > { %v10126_v17 = vrot.slane %v1902_v46, %v9892_v31  ;;  %v2137_v35 = vadd.f32 %v2091_v49, %v1996_v61  ;;  %v2299_v30 = vcombine.high %v2291_v36, %v2291_v36  ;;  %v2306_v13 = vrot.slane %v2291_v36, %v9892_v31 }
 0x31e   : > { %v10130_v33 = vrot.slane %v1932_v0, %v9892_v31  ;;  %v2192_v4 = vrot.slane %v9942_v14, %v9892_v31  ;;  %v2138_v21 = vadd.f32 %v2093_v23, %v1997_v5  ;;  %v2373_v11 = vcombine.high %v8462_v1, %v8462_v1 }
 0x31f   : > { %v10136_v39 = vcombine.high %v10126_v17, %v10126_v17  ;;  %v2228_v18 = vcombine.high %v2226_v8, %v2226_v8  ;;  %v2357_v41 = vadd.f32 %v2306_v13, %v2270_v12  ;;  %v2271_v42 = vadd.f32 %v2227_v27, %v2136_v22 }
 0x320   : > { %v10140_v44 = vcombine.high %v10130_v33, %v10130_v33  ;;  %v2072_v46 = vmul.f32 %v9986_v37, %v10052_v15  ;;  %9147 = vpow2.f32 %v7474_v29  ;;  %v7454_v14 = vsub.f32 0.0, %v10130_v33 }
 0x321   : > { %v7453_v49 = vsub.f32 0.0, %v10136_v39  ;;  %v2272_v51 = vadd.f32 %v2226_v8, %v2137_v35  ;;  %v2313_v45 = vrot.slane %v2299_v30, %v9892_v31  ;;  %v2314_v53 = vcombine.high %v2306_v13, %v2306_v13 }
 0x322   : > { %v7455_v54 = vsub.f32 0.0, %v10140_v44  ;;  %v2273_v56 = vadd.f32 %v2228_v18, %v2138_v21  ;;  %v2387_v1 = vrot.slane %v2373_v11, %v9892_v31  ;;  %v2388_v25 = vcombine.high %v10118_v6, %v10118_v6 }
 0x323   : > { %v7468_v59 = vmul.f32 1.442695, %v7453_v49  ;;  %v10152_v37 = vadd.f32 %v10118_v6, %v2361_v52  ;;  %v7470_v15 = vmul.f32 1.442695, %v7454_v14  ;;  %v2358_v63 = vadd.f32 %v2314_v53, %v2271_v42 }
 0x324   : > { %v10155_v36 = vadd.f32 %v10118_v6, %v2357_v41  ;;  %v2207_v47 = vmul.f32 %v9968_v26, %v2192_v4  ;;  %v2124_v0 = vrot.slane %v2072_v46, %v9892_v31  ;;  %v10160_v23 = vadd.f32 %v10118_v6, %v2362_v48 }
 0x325   : > { %v2359_v61 = vadd.f32 %v2313_v45, %v2272_v51  ;;  %9149 = vpow2.f32 %v7468_v59  ;;  %v7472_v8 = vmul.f32 1.442695, %v7455_v54  ;;  %v2315_v12 = vcombine.high %v2313_v45, %v2313_v45 }
 0x326   : > { %v2003_v52 = vmul.f32 %v10021_v58, %v9975_v32  ;;  %v2294_v22 = vmul.f32 %v10044_v20, %v2281_v7  ;;  %v2389_v5 = vcombine.high %v2387_v1, %v2387_v1  ;;  %v2404_v27 = vsub.f32 0.0, %v10155_v36 }
 0x327   : > { %v2408_v26 = vsub.f32 0.0, %v10152_v37  ;;  %9151 = vpow2.f32 %v7470_v15  ;;  %v2360_v29 = vadd.f32 %v2315_v12, %v2273_v56  ;;  %v10169_v48 = vadd.f32 %v2388_v25, %v2358_v63 }
 0x328   : > { %v2252_v35 = vcombine.high %v10076_v2, %v10076_v2  ;;  %v2409_v30 = vsub.f32 0.0, %v10160_v23  ;;  %v2259_v32 = vrot.slane %v2207_v47, %v9892_v31  ;;  %9153 = vpow2.f32 %v7472_v8 }
 0x329   : > { %v10175_v58 = vadd.f32 %v2387_v1, %v2359_v61  ;;  %v2144_v62 = vadd.f32 %v2124_v0, %v2003_v52  ;;  %v2346_v7 = vrot.slane %v2294_v22, %v9892_v31  ;;  %v2414_v13 = vmul.f32 1.442695, %v2404_v27 }
 0x32a   : > { %v9148_v20 = vpop.eup %9147  ;;  %v2278_v4 = vadd.f32 %v2252_v35, %v10082_v28  ;;  %v2422_v21 = vmul.f32 1.442695, %v2408_v26  ;;  %v10179_v11 = vadd.f32 %v2389_v5, %v2360_v29  ;;  %v2405_v18 = vsub.f32 0.0, %v10169_v48 }
 0x32b   : > { %v2279_v2 = vadd.f32 %v2259_v32, %v2144_v62  ;;  %v2424_v41 = vmul.f32 1.442695, %v2409_v30  ;;  %v2339_v42 = vcombine.high %v10106_v50, %v10106_v50  ;;  %v7486_v46 = vadd.f32 1.0, %v9148_v20 }
 0x32c   : > { %v2406_v49 = vsub.f32 0.0, %v10175_v58  ;;  %v10186_v14 = vadd.f32 %v2388_v25, %v10112_v57  ;;  %9155 = vpow2.f32 %v2414_v13  ;;  %v10189_v28 = vadd.f32 %v2387_v1, %v10115_v3 }
 0x32d   : > { %v2366_v51 = vadd.f32 %v2346_v7, %v2279_v2  ;;  %v2365_v45 = vadd.f32 %v2339_v42, %v2278_v4  ;;  %9157 = vpow2.f32 %v2422_v21  ;;  %v2407_v54 = vsub.f32 0.0, %v10179_v11 }
 0x32e   : > { %v2416_v56 = vmul.f32 1.442695, %v2405_v18  ;;  %9159 = vpow2.f32 %v2424_v41  ;;  %v2418_v63 = vmul.f32 1.442695, %v2406_v49  ;;  %v2410_v57 = vsub.f32 0.0, %v10186_v14 }
 0x32f   : > { %v9150_v53 = vpop.eup %9149  ;;  %v10192_v50 = vadd.f32 %v2389_v5, %v2365_v45  ;;  %9161 = vrcp.f32 %v7486_v46  ;;  %v2411_v3 = vsub.f32 0.0, %v10189_v28  ;;  %v10197_v1 = vadd.f32 %v10118_v6, %v2366_v51 }
 0x330   : > { %v7483_v59 = vadd.f32 1.0, %v9150_v53  ;;  %v2420_v0 = vmul.f32 1.442695, %v2407_v54  ;;  %v2426_v12 = vmul.f32 1.442695, %v2410_v57 }
 0x331   : > { %v9152_v15 = vpop.eup %9151  ;;  %v2412_v8 = vsub.f32 0.0, %v10192_v50  ;;  %v2428_v52 = vmul.f32 1.442695, %v2411_v3  ;;  %v2413_v22 = vsub.f32 0.0, %v10197_v1 }
 0x332   : > { %v7484_v25 = vadd.f32 1.0, %v9152_v15  ;;  %9163 = vrcp.f32 %v7483_v59  ;;  %v9154_v47 = vpop.eup %9153 }
 0x333   : > { %9165 = vpow2.f32 %v2416_v56  ;;  %v7485_v61 = vadd.f32 1.0, %v9154_v47  ;;  %v2430_v27 = vmul.f32 1.442695, %v2412_v8  ;;  %v2432_v29 = vmul.f32 1.442695, %v2413_v22 }
 0x334   : > { %9167 = vrcp.f32 %v7484_v25 }
 0x335   : > { %9169 = vpow2.f32 %v2418_v63 }
 0x336   : > { %9171 = vrcp.f32 %v7485_v61  ;;  %v9156_v5 = vpop.eup %9155 }
 0x337   : > { %9173 = vpow2.f32 %v2420_v0  ;;  %v9158_v26 = vpop.eup %9157  ;;  %v2434_v30 = vadd.f32 1.0, %v9156_v5 }
 0x338   : > { %9175 = vpow2.f32 %v2426_v12  ;;  %v9160_v6 = vpop.eup %9159  ;;  %v2438_v18 = vadd.f32 1.0, %v9158_v26 }
 0x339   : > { %9177 = vpow2.f32 %v2428_v52  ;;  %v9162_v35 = vpop.eup %9161  ;;  %v2439_v20 = vadd.f32 1.0, %v9160_v6 }
 0x33a   : > { %9179 = vpow2.f32 %v2430_v27  ;;  %v7506_v49 = vmul.f32 %v9162_v35, %v10091_v55 }
 0x33b   : > { %9181 = vpow2.f32 %v2432_v29 }
 0x33c   : > { %v9164_v32 = vpop.eup %9163  ;;  %9183 = vrcp.f32 %v2434_v30 }
 0x33d   : > { %v9166_v62 = vpop.eup %9165  ;;  %v7503_v7 = vmul.f32 %v9164_v32, %v10136_v39 }
 0x33e   : > { %v9168_v13 = vpop.eup %9167  ;;  %v2435_v4 = vadd.f32 1.0, %v9166_v62 }
 0x33f   : > { %v9170_v21 = vpop.eup %9169  ;;  %v7504_v2 = vmul.f32 %v9168_v13, %v10130_v33 }
 0x340   : > { %v9172_v41 = vpop.eup %9171  ;;  %v2436_v42 = vadd.f32 1.0, %v9170_v21  ;;  %9185 = vrcp.f32 %v2435_v4 }
 0x341   : > { %v9174_v46 = vpop.eup %9173  ;;  %9187 = vrcp.f32 %v2439_v20  ;;  %v7505_v51 = vmul.f32 %v9172_v41, %v10140_v44  ;;  %v7542_v45 = vcombine.low %v7503_v7, %v7504_v2 }
 0x342   : > { %v2437_v53 = vadd.f32 1.0, %v9174_v46  ;;  %9189 = vrcp.f32 %v2436_v42  ;;  %v9176_v39 = vpop.eup %9175 }
 0x343   : > { %9191 = vrcp.f32 %v2438_v18  ;;  %v7543_v54 = vcombine.low %v7505_v51, %v7506_v49  ;;  %v9178_v56 = vpop.eup %9177  ;;  %v2440_v59 = vadd.f32 1.0, %v9176_v39  ;;  %v10206_v33 = vrot.slane %v7542_v45, %v9892_v31  ;;  %v9130_v18 = vld [vmem:[%s9778_s10 + $0x8] sm:$0xff]   ;;  %v9132_v39 = vld [vmem:[%s9778_s10 + $0x10] sm:$0xff]  }
 0x344   : > { %9193 = vrcp.f32 %v2437_v53  ;;  %v2441_v63 = vadd.f32 1.0, %v9178_v56  ;;  %v9180_v57 = vpop.eup %9179 }
 0x345   : > { %v10209_v15 = vrot.slane %v7543_v54, %v9892_v31  ;;  %9195 = vrcp.f32 %v2440_v59  ;;  %v2442_v25 = vadd.f32 1.0, %v9180_v57  ;;  %v9182_v3 = vpop.eup %9181 }
 0x346   : > { %9197 = vrcp.f32 %v2441_v63  ;;  %v9184_v47 = vpop.eup %9183  ;;  %v2443_v0 = vadd.f32 1.0, %v9182_v3 }
 0x347   : > { %v7558_v44 = vcombine.low %v10206_v33, %v10209_v15  ;;  %9199 = vrcp.f32 %v2442_v25  ;;  %v10217_v5 = vmul.f32 %v9184_v47, %v10155_v36  ;;  %v9134_v47 = vld [vmem:[%s9778_s10 + $0x18] sm:$0xff]  }
 0x348   : > { %9201 = vrcp.f32 %v2443_v0 }
 0x34a   : > { %v9186_v61 = vpop.eup %9185 }
 0x34b   : > { %v9188_v8 = vpop.eup %9187  ;;  %v10214_v12 = vmul.f32 %v9186_v61, %v10169_v48 }
 0x34c   : > { %v9190_v52 = vpop.eup %9189  ;;  %v10228_v35 = vmul.f32 %v9188_v8, %v10160_v23 }
 0x34d   : > { %v9192_v22 = vpop.eup %9191  ;;  %v10220_v26 = vmul.f32 %v9190_v52, %v10175_v58  ;;  %v2474_v29 = vcombine.low %v10217_v5, %v10214_v12 }
 0x34e   : > { %v9194_v27 = vpop.eup %9193  ;;  %v10231_v30 = vmul.f32 %v9192_v22, %v10152_v37 }
 0x34f   : > { %v10223_v6 = vmul.f32 %v9194_v27, %v10179_v11  ;;  %v9196_v48 = vpop.eup %9195  ;;  %v2482_v20 = vrot.slane %v2474_v29, %v9892_v31 }
 0x350   : > { %v9198_v36 = vpop.eup %9197  ;;  %v10236_v58 = vmul.f32 %v9196_v48, %v10186_v14  ;;  %v2559_v37 = vcombine.low %v10231_v30, %v10228_v35  ;;  %v2497_v7 = vrot.slane %v10231_v30, %v9892_v31 }
 0x351   : > { %v2475_v32 = vcombine.low %v10220_v26, %v10223_v6  ;;  %v10239_v11 = vmul.f32 %v9198_v36, %v10189_v28  ;;  %v9200_v62 = vpop.eup %9199 }
 0x352   : > { %v10250_v14 = vmul.f32 %v9200_v62, %v10192_v50  ;;  %v2498_v28 = vcombine.low %v10228_v35, %v10236_v58  ;;  %v9202_v4 = vpop.eup %9201  ;;  %v2567_v50 = vrot.slane %v2559_v37, %v9892_v31  ;;  %v8468_v49 = vpack.c.bf16 %v2497_v7, %v2497_v7 }
 0x353   : > { %v2489_v23 = vrot.slane %v2475_v32, %v9892_v31  ;;  %v2560_v13 = vcombine.low %v10236_v58, %v10239_v11  ;;  %v10257_v41 = vmul.f32 %v9202_v4, %v10197_v1 }
 0x354   : > { %v2499_v42 = vcombine.low %v10239_v11, %v10250_v14  ;;  %v2506_v1 = vrot.slane %v2498_v28, %v9892_v31  ;;  %v2891_v63 = vrot.slane %v8468_v49, %v9850_v38 }
 0x355   : > { %v2490_v21 = vcombine.low %v2482_v20, %v2489_v23  ;;  %v2574_v2 = vrot.slane %v2560_v13, %v9892_v31  ;;  %v2576_v51 = vcombine.low %v10250_v14, %v10257_v41  ;;  %v2521_v56 = vrot.slane %v10257_v41, %v9892_v31 }
 0x356   : > { %v2513_v54 = vrot.slane %v2499_v42, %v9892_v31  ;;  %v2906_v27 = vrot.slane %v2891_v63, %v9850_v38 }
 0x357   : > { %v2526_v46 = vpack.c.bf16 %v2497_v7, %v2490_v21  ;;  %8753 = vmatmul.mubr.msk.f32.vlgmr.msra.gmra.mrb[0].mxu0 %vm2629_vm14, %v2490_v21  ;;  %v2575_v53 = vcombine.low %v2567_v50, %v2574_v2  ;;  %v2583_v57 = vrot.slane %v2576_v51, %v9892_v31  ;;  %v8469_v61 = vpack.c.bf16 %v2521_v56, %v2521_v56 }
 0x358   : > { %8755 = vmatprep.mubr.msk.f32.mxu0 %vm9454_vm10, %v9455_v19  ;;  %8774 = vmatpush3.bf16.msra.mxu0 %v9896_v34  ;;  %v2514_v34 = vcombine.low %v2506_v1, %v2513_v54 }
 0x359   : > { %v2884_v45 = vrot.slane %v2526_v46, %v9850_v38  ;;  %8775 = vmatprep.subr.bf16.mxu0 %v9130_v18  ;;  %v2930_v36 = vrot.slane %v8469_v61, %v9850_v38 }
 0x35a   : > { %v2527_v0 = vpack.c.bf16 %v2521_v56, %v2514_v34 }
 0x35b   : > { %v2892_v59 = vcombine.high %v2884_v45, %v2884_v45  ;;  %8756 = vmatmul.mubr.msk.f32.gmra.mrb[2].mxu0 %vm2629_vm14, %v2575_v53  ;;  %v2899_v25 = vrot.slane %v2884_v45, %v9850_v38  ;;  %v2945_v13 = vrot.slane %v2930_v36, %v9850_v38  ;;  %v8463_v45 = vld [vmem:[%s11172_s22] ss:$0 sm:$0xff] }
 0x35c   : > { %8758 = vmatprep.mubr.msk.f32.mxu0 %vm9454_vm10, %v9455_v19  ;;  %8776 = vmatpush3.bf16.msra.mxu0 %v9130_v18  ;;  %v2923_v8 = vrot.slane %v2527_v0, %v9850_v38  ;;  %v2542_v53 = vcombine.high %v8463_v45, %v8463_v45 }
 0x35d   : > { %v2913_v3 = vrot.slane %v2892_v59, %v9850_v38  ;;  %8777 = vmatprep.subr.bf16.mxu0 %v9132_v39 }
 0x35e   : > { %v2931_v29 = vcombine.high %v2923_v8, %v2923_v8  ;;  %v2938_v48 = vrot.slane %v2923_v8, %v9850_v38  ;;  %v2556_v54 = vrot.slane %v2542_v53, %v9892_v31 }
 0x35f   : > { %8759 = vmatmul.mubr.msk.f32.gmra.mrb[4].mxu0 %vm2629_vm14, %v2583_v57  ;;  %v2972_v52 = vcombine.low %v2899_v25, %v2913_v3  ;;  %v8470_v22 = vcombine.high %v2899_v25, %v2913_v3 }
 0x360   : > { %8778 = vmatpush3.bf16.msra.mxu0 %v9132_v39  ;;  %v2952_v62 = vrot.slane %v2931_v29, %v9850_v38  ;;  %v2953_v20 = vcombine.high %v2938_v48, %v2938_v48  ;;  %v2974_v23 = vcombine.low %v2906_v27, %v2938_v48  ;;  %v10312_v39 = vrot.slane %v8463_v45, %v9892_v31 }
 0x361   : > { %8779 = vmatprep.subr.bf16.mxu0 %v9134_v47  ;;  %v2982_v32 = vrot.slane %v2972_v52, %v9850_v38  ;;  %v2989_v37 = vrot.slane %v8470_v22, %v9850_v38  ;;  %v10317_v59 = vcombine.high %v2556_v54, %v2556_v54  ;;  %v8467_v22 = vld [vmem:[%s11173_s17] ss:$0 sm:$0xff]  ;;  %s11179_s17 = sld [smem:[#allocation42_spill]] (!%p8555_p13) }
 0x362   : > { %v2975_v7 = vcombine.low %v2952_v62, %v2953_v20  ;;  %v2954_v28 = vcombine.high %v2952_v62, %v2952_v62  ;;  %v2996_v4 = vrot.slane %v2974_v23, %v9850_v38  ;;  %v2557_v56 = vcombine.high %v10312_v39, %v10312_v39 }
 0x363   : > { %v3004_v18 = vcombine.low %v2982_v32, %v2989_v37  ;;  %v2585_v63 = vcombine.low %v2556_v54, %v10317_v59  ;;  %v2601_v3 = vcombine.low %v10312_v39, %v10312_v39  ;;  %v2955_v32 = vcombine.high %v8467_v22, %v8467_v22 }
 0x364   : > { %8780 = vmatpush3.bf16.msra.mxu0 %v9134_v47  ;;  %v3003_v21 = vrot.slane %v2975_v7, %v9850_v38  ;;  %v3021_v2 = vcombine.low %v2954_v28, %v2945_v13  ;;  %v2584_v34 = vcombine.low %v10312_v39, %v2557_v56  ;;  %v2602_v47 = vcombine.low %v2557_v56, %v2556_v54 }
 0x365   : > { %8805 = vmatprep.subr.mxu0 %v9455_v19  ;;  %v3012_v50 = vrot.slane %v3004_v18, %v9850_v38  ;;  %v2599_v25 = vrot.slane %v2585_v63, %v9892_v31  ;;  %v2609_v61 = vrot.slane %v2601_v3, %v9892_v31  ;;  %v10346_v13 = vrot.slane %v8467_v22, %v9892_v31 }
 0x366   : > { %v3005_v42 = vcombine.low %v2996_v4, %v3003_v21  ;;  %v3028_v46 = vrot.slane %v3021_v2, %v9850_v38  ;;  %v2592_v57 = vrot.slane %v2584_v34, %v9892_v31  ;;  %v2616_v8 = vrot.slane %v2602_v47, %v9892_v31 }
 0x367   : > { %v2969_v4 = vrot.slane %v2955_v32, %v9892_v31 }
 0x368   : > { %v3019_v49 = vrot.slane %v3005_v42, %v9850_v38  ;;  %v3035_v1 = vrot.slane %v3028_v46, %v9850_v38  ;;  %v2600_v0 = vcombine.low %v2592_v57, %v2599_v25  ;;  %v2617_v48 = vcombine.low %v2609_v61, %v2616_v8 }
 0x369   : > { %v10359_v45 = vcombine.high %v2969_v4, %v2969_v4  ;;  %v3077_v25 = vcombine.low %v10346_v13, %v10346_v13 }
 0x36a   : > { %v3020_v51 = vcombine.low %v3012_v50, %v3019_v49  ;;  %v2970_v49 = vcombine.high %v10346_v13, %v10346_v13 }
 0x36b   : > { %v3061_v56 = vcombine.low %v2969_v4, %v10359_v45 }
 0x36c   : > { %8769 = vmatprep.mubr.msk.bf16.mxu1 %vm2629_vm14, %v3020_v51  ;;  %8781 = vmatprep.mubr.msk.bf16.mxu0 %vm2629_vm14, %v3020_v51  ;;  %v3060_v53 = vcombine.low %v10346_v13, %v2970_v49  ;;  %v3078_v3 = vcombine.low %v2970_v49, %v2969_v4 }
 0x36d   : > { %8770 = vmatmul.mubr.msk.bf16.vlgmr.msra.gmra.mrb[8].mxu1 %vm2629_vm14, %v3035_v1  ;;  %8782 = vmatmul.mubr.msk.bf16.vlgmr.msra.gmra.mrb[8].mxu0 %vm2629_vm14, %v3035_v1  ;;  %v3075_v57 = vrot.slane %v3061_v56, %v9892_v31 }
 0x36e   : > { %8787 = vmatprep.mubr.msk.f32.mxu1 %vm9454_vm10, %v9455_v19  ;;  %8807 = vmatprep.mubr.msk.f32.mxu0 %vm9454_vm10, %v9455_v19  ;;  %v3068_v63 = vrot.slane %v3060_v53, %v9892_v31  ;;  %v3092_v22 = vrot.slane %v3078_v3, %v9892_v31 }
 0x370   : > { %v3076_v8 = vcombine.low %v3068_v63, %v3075_v57 }
 0x42a   : > { %v2702_v52 = vpop.f32.mrb[0].mxu0 }
 0x42b   : > { %v10332_v27 = vadd.f32 %v2702_v52, %v2600_v0  ;;  %v8754_v29 = vpop.f32.mrb[1].mxu0  ;;  %v3085_v52 = vrot.slane %v3077_v25, %v9892_v31 }
 0x42d   : > { %v10336_v36 = vrot.slane %v10332_v27, %v9892_v31 }
 0x42e   : > { %v2707_v62 = vpop.f32.mrb[2].mxu0 }
 0x42f   : > { %v10340_v20 = vcombine.high %v10336_v36, %v10336_v36  ;;  %v2781_v23 = vand.u32 2147483647, %v10336_v36  ;;  %v8757_v37 = vpop.f32.mrb[3].mxu0  ;;  %v10343_v7 = vadd.f32 %v2707_v62, %v2617_v48  ;;  %v2771_v3 = vmax.f32 %v10336_v36, 0.0 }
 0x431   : > { %v2782_v28 = vand.u32 2147483647, %v10340_v20  ;;  %v2791_v21 = vsub.f32 0.0, %v2781_v23  ;;  %v10352_v18 = vrot.slane %v10343_v7, %v9892_v31 }
 0x432   : > { %v10354_v2 = vpop.f32.mrb[4].mxu0 }
 0x433   : > { %v2792_v42 = vsub.f32 0.0, %v2782_v28  ;;  %v8760_v46 = vpop.f32.mrb[5].mxu0  ;;  %v2801_v50 = vmul.f32 1.442695, %v2791_v21  ;;  %v2785_v1 = vand.u32 2147483647, %v10352_v18  ;;  %v3093_v21 = vcombine.low %v3085_v52, %v3092_v22 }
 0x435   : > { %v2803_v51 = vmul.f32 1.442695, %v2792_v42  ;;  %9203 = vpow2.f32 %v2801_v50  ;;  %v2795_v54 = vsub.f32 0.0, %v2785_v1 }
 0x437   : > { %9205 = vpow2.f32 %v2803_v51  ;;  %v2809_v34 = vmul.f32 1.442695, %v2795_v54 }
 0x439   : > { %9207 = vpow2.f32 %v2809_v34 }
 0x43f   : > { %v9204_v47 = vpop.eup %9203 }
 0x440   : > { %v2821_v61 = vadd.f32 1.0, %v9204_v47  ;;  %v8771_v48 = vpop.f32.mrb[8].mxu1  ;;  %v10369_v32 = vpop.f32.mrb[8].mxu0  ;;  %v2772_v47 = vmax.f32 %v10340_v20, 0.0 }
 0x441   : > { %v9206_v0 = vpop.eup %9205  ;;  %v3145_v62 = vpop.f32.mrb[9].mxu1 }
 0x442   : > { %v2822_v29 = vadd.f32 1.0, %v9206_v0  ;;  %9209 = vlog2.f32 %v2821_v61  ;;  %v10371_v23 = vpop.f32.mrb[9].mxu0  ;;  %v3146_v37 = vadd.f32 %v3145_v62, %v3076_v8  ;;  %v8772_v28 = vpop.f32.mrb[10].mxu1  ;;  %v2775_v62 = vmax.f32 %v10352_v18, 0.0 }
 0x443   : > { %v8784_v4 = vpop.f32.mrb[10].mxu0  ;;  %v3148_v42 = vpop.f32.mrb[11].mxu1 }
 0x444   : > { %9211 = vlog2.f32 %v2822_v29  ;;  %v10373_v46 = vpop.f32.mrb[11].mxu0  ;;  %v9208_v50 = vpop.eup %9207  ;;  %v3169_v49 = vrot.slane %v3146_v37, %v9892_v31  ;;  %v3149_v1 = vadd.f32 %v3148_v42, %v3093_v21  ;;  %v3162_v42 = vcombine.high %v3146_v37, %v3146_v37 }
 0x445   : > { %v2825_v51 = vadd.f32 1.0, %v9208_v50 }
 0x446   : > { %3432 = vxpose.xlu0.b32.start.end [1/1] (short) (narrow) %v3169_v49, 8  ;;  %v3186_v54 = vrot.slane %v3149_v1, %v9892_v31  ;;  %v3666_v63 = vrot.slane %v3169_v49, %v9931_v10  ;;  %v3179_v8 = vcombine.high %v3149_v1, %v3149_v1  ;;  %v3177_v22 = vcombine.high %v3169_v49, %v3169_v49 }
 0x447   : > { %9213 = vlog2.f32 %v2825_v51  ;;  %v3094_v49 = vcombine.low %v10359_v45, %v10346_v13  ;;  %v3176_v37 = vrot.slane %v3162_v42, %v9892_v31 }
 0x448   : > { %v3194_v25 = vcombine.high %v3186_v54, %v3186_v54  ;;  %v3193_v36 = vrot.slane %v3179_v8, %v9892_v31  ;;  %v4142_v50 = vrot.slane %v3177_v22, %v9931_v10  ;;  %v2751_v8 = vcombine.high %v10352_v18, %v10352_v18 }
 0x449   : > { %v3101_v1 = vrot.slane %v3094_v49, %v9892_v31  ;;  %v3178_v45 = vcombine.high %v3176_v37, %v3176_v37  ;;  %v2618_v18 = vcombine.low %v10317_v59, %v10312_v39 }
 0x44a   : > { %3668 = vxpose.xlu0.b32.start.end [1/1] (short) (narrow) %v3666_v63, 8  ;;  %3541 = vxpose.xlu1.b32.start.end [1/1] (short) (narrow) %v3194_v25, 8  ;;  %v3782_v52 = vrot.slane %v3194_v25, %v9931_v10  ;;  %v4258_v51 = vrot.slane %v3193_v36, %v9931_v10 }
 0x44b   : > { %v2625_v49 = vrot.slane %v2618_v18, %v9892_v31 }
 0x44c   : > { %v9210_v53 = vpop.eup %9209 }
 0x44d   : > { %v2832_v34 = vmul.f32 0.6931472, %v9210_v53  ;;  %v3195_v53 = vcombine.high %v3193_v36, %v3193_v36  ;;  %v2713_v39 = vadd.f32 %v10354_v2, %v2625_v49  ;;  %v2776_v49 = vmax.f32 %v2751_v8, 0.0 }
 0x44e   : > { %v9212_v56 = vpop.eup %9211  ;;  %3784 = vxpose.xlu0.b32.start.end [1/1] (short) (narrow) %v3782_v52, 8  ;;  %3909 = vxpose.xlu1.b32.start.end [1/1] (short) (narrow) %v3177_v22, 8  ;;  %v2786_v52 = vand.u32 2147483647, %v2751_v8 }
 0x44f   : > { %v2834_v57 = vmul.f32 0.6931472, %v9212_v56  ;;  %v10380_v0 = vadd.f32 %v2832_v34, %v2771_v3  ;;  %v4618_v56 = vrot.slane %v3176_v37, %v9931_v10  ;;  %v3154_v34 = vadd.f32 %v8771_v48, %v3101_v1 }
 0x450   : > { %v4734_v13 = vrot.slane %v3195_v53, %v9931_v10  ;;  %v2796_v22 = vsub.f32 0.0, %v2786_v52 }
 0x451   : > { %v10382_v61 = vadd.f32 %v2834_v57, %v2772_v47  ;;  %v9214_v29 = vpop.eup %9213  ;;  %v10389_v20 = vmul.f32 %v10380_v0, %v10217_v5  ;;  %v3202_v63 = vrot.slane %v3154_v34, %v9892_v31  ;;  %v5094_v57 = vrot.slane %v3178_v45, %v9931_v10 }
 0x452   : > { %v2840_v28 = vmul.f32 0.6931472, %v9214_v29  ;;  %4017 = vxpose.xlu0.b32.start.end [1/1] (short) (narrow) %v3193_v36, 8  ;;  %4144 = vxpose.xlu1.b32.start.end [1/1] (short) (narrow) %v4142_v50, 8  ;;  %v5570_v47 = vrot.slane %v3186_v54, %v9931_v10  ;;  %v2719_v29 = vcombine.high %v10332_v27, %v10332_v27 }
 0x453   : > { %v10393_v4 = vmul.f32 %v10382_v61, %v10214_v12  ;;  %8786 = vmatpush3.msk.msra.mxu1 %vm2052_vm11, %v10389_v20  ;;  %v5210_v25 = vrot.slane %v3202_v63, %v9931_v10  ;;  %v3203_v3 = vcombine.high %v3202_v63, %v3202_v63 }
 0x454   : > { %v10395_v21 = vadd.f32 %v2840_v28, %v2775_v62  ;;  %8790 = vmatprep.subr.mxu1 %v9455_v19  ;;  %v2736_v62 = vcombine.high %v10343_v7, %v10343_v7  ;;  %v2811_v28 = vmul.f32 1.442695, %v2796_v22  ;;  %v10423_v36 = vrot.slane %v2719_v29, %v9892_v31 }
 0x455   : > { %8806 = vmatpush3.msk.msra.mxu0 %vm2052_vm11, %v10393_v4  ;;  %v5686_v48 = vrot.slane %v3203_v3, %v9931_v10 }
 0x456   : > { %8815 = vmatprep.subr.mxu0 %v9455_v19  ;;  %4260 = vxpose.xlu0.b32.start.end [1/1] (short) (narrow) %v4258_v51, 8  ;;  %9215 = vpow2.f32 %v2811_v28  ;;  %v2783_v42 = vand.u32 2147483647, %v10423_v36  ;;  %v10434_v27 = vcombine.high %v10423_v36, %v10423_v36 }
 0x457   : > { %4385 = vxpose.xlu1.b32.start.end [1/1] (short) (narrow) %v3176_v37, 8 }
 0x458   : > { %v2793_v7 = vsub.f32 0.0, %v2783_v42 }
 0x45a   : > { %4493 = vxpose.xlu0.b32.start.end [1/1] (short) (narrow) %v3195_v53, 8  ;;  %v2784_v53 = vand.u32 2147483647, %v10434_v27 }
 0x45b   : > { %4620 = vxpose.xlu1.b32.start.end [1/1] (short) (narrow) %v4618_v56, 8  ;;  %v2805_v56 = vmul.f32 1.442695, %v2793_v7 }
 0x45d   : > { %9217 = vpow2.f32 %v2805_v56 }
 0x45e   : > { %4736 = vxpose.xlu0.b32.start.end [1/1] (short) (narrow) %v4734_v13, 8 }
 0x45f   : > { %4861 = vxpose.xlu1.b32.start.end [1/1] (short) (narrow) %v3178_v45, 8  ;;  %v2794_v45 = vsub.f32 0.0, %v2784_v53 }
 0x460   : > { %v9216_v1 = vpop.eup %9215 }
 0x461   : > { %v2826_v13 = vadd.f32 1.0, %v9216_v1 }
 0x462   : > { %4969 = vxpose.xlu0.b32.start.end [1/1] (short) (narrow) %v3202_v63, 8  ;;  %v10445_v63 = vrot.slane %v2713_v39, %v9892_v31 }
 0x463   : > { %5096 = vxpose.xlu1.b32.start.end [1/1] (short) (narrow) %v5094_v57, 8 }
 0x464   : > { %v10450_v2 = vcombine.high %v10445_v63, %v10445_v63 }
 0x466   : > { %5212 = vxpose.xlu0.b32.start.end [1/1] (short) (narrow) %v5210_v25, 8  ;;  %v2807_v25 = vmul.f32 1.442695, %v2794_v45  ;;  %v2790_v42 = vand.u32 2147483647, %v10450_v2 }
 0x467   : > { %5337 = vxpose.xlu1.b32.start.end [1/1] (short) (narrow) %v3186_v54, 8  ;;  %v10426_v54 = vrot.slane %v2736_v62, %v9892_v31  ;;  %v9218_v52 = vpop.eup %9217 }
 0x468   : > { %v2823_v28 = vadd.f32 1.0, %v9218_v52 }
 0x469   : > { %v2787_v50 = vand.u32 2147483647, %v10426_v54  ;;  %v10439_v51 = vcombine.high %v10426_v54, %v10426_v54 }
 0x46a   : > { %5445 = vxpose.xlu0.b32.start.end [1/1] (short) (narrow) %v3203_v3, 8  ;;  %v2789_v3 = vand.u32 2147483647, %v10445_v63 }
 0x46b   : > { %5572 = vxpose.xlu1.b32.start.end [1/1] (short) (narrow) %v5570_v47, 8  ;;  %v2797_v37 = vsub.f32 0.0, %v2787_v50  ;;  %v2788_v59 = vand.u32 2147483647, %v10439_v51 }
 0x46d   : > { %v2813_v34 = vmul.f32 1.442695, %v2797_v37  ;;  %v2798_v57 = vsub.f32 0.0, %v2788_v59  ;;  %v2800_v37 = vsub.f32 0.0, %v2790_v42 }
 0x46e   : > { %5688 = vxpose.xlu0.b32.start.end [1/1] (short) (narrow) %v5686_v48, 8  ;;  %v2799_v48 = vsub.f32 0.0, %v2789_v3 }
 0x46f   : > { %9219 = vpow2.f32 %v2813_v34  ;;  %v2815_v47 = vmul.f32 1.442695, %v2798_v57  ;;  %v2819_v39 = vmul.f32 1.442695, %v2800_v37 }
 0x470   : > { %9221 = vlog2.f32 %v2826_v13  ;;  %v2817_v62 = vmul.f32 1.442695, %v2799_v48 }
 0x471   : > { %9223 = vpow2.f32 %v2807_v25 }
 0x472   : > { %9225 = vpow2.f32 %v2815_v47 }
 0x473   : > { %9227 = vpow2.f32 %v2817_v62  ;;  %v2777_v62 = vmax.f32 %v10426_v54, 0.0  ;;  %v4179_v54 = vrot.slane %v10393_v4, %v9931_v10 }
 0x474   : > { %9229 = vlog2.f32 %v2823_v28 }
 0x479   : > { %v9220_v22 = vpop.eup %9219 }
 0x47a   : > { %v9222_v29 = vpop.eup %9221  ;;  %v2827_v18 = vadd.f32 1.0, %v9220_v22  ;;  %v3703_v22 = vrot.slane %v10389_v20, %v9931_v10 }
 0x47b   : > { %v2842_v50 = vmul.f32 0.6931472, %v9222_v29  ;;  %v9224_v7 = vpop.eup %9223  ;;  %v2773_v29 = vmax.f32 %v10423_v36, 0.0 }
 0x47c   : > { %9231 = vlog2.f32 %v2827_v18  ;;  %v9226_v1 = vpop.eup %9225  ;;  %v2824_v56 = vadd.f32 1.0, %v9224_v7 }
 0x47d   : > { %v10453_v53 = vadd.f32 %v2842_v50, %v2776_v49  ;;  %v2828_v59 = vadd.f32 1.0, %v9226_v1  ;;  %v9228_v8 = vpop.eup %9227 }
 0x47e   : > { %9233 = vlog2.f32 %v2824_v56  ;;  %v9230_v45 = vpop.eup %9229  ;;  %v2829_v25 = vadd.f32 1.0, %v9228_v8  ;;  %v2778_v8 = vmax.f32 %v10439_v51, 0.0 }
 0x47f   : > { %v3413_v13 = vmul.f32 %v10453_v53, %v10228_v35  ;;  %9235 = vpow2.f32 %v2819_v39  ;;  %v2836_v47 = vmul.f32 0.6931472, %v9230_v45 }
 0x480   : > { %9237 = vlog2.f32 %v2828_v59 }
 0x481   : > { %9239 = vlog2.f32 %v2829_v25  ;;  %v10471_v50 = vadd.f32 %v2836_v47, %v2773_v29  ;;  %v3819_v36 = vrot.slane %v3413_v13, %v9931_v10 }
 0x486   : > { %v9232_v57 = vpop.eup %9231 }
 0x487   : > { %v2844_v48 = vmul.f32 0.6931472, %v9232_v57 }
 0x488   : > { %v9234_v28 = vpop.eup %9233 }
 0x489   : > { %v9236_v18 = vpop.eup %9235  ;;  %v10473_v20 = vadd.f32 %v2844_v48, %v2777_v62  ;;  %v2838_v37 = vmul.f32 0.6931472, %v9234_v28  ;;  %v2779_v28 = vmax.f32 %v10445_v63, 0.0 }
 0x48a   : > { %v9238_v49 = vpop.eup %9237  ;;  %v2830_v1 = vadd.f32 1.0, %v9236_v18 }
 0x48b   : > { %v2846_v39 = vmul.f32 0.6931472, %v9238_v49  ;;  %v3414_v59 = vmul.f32 %v10473_v20, %v10236_v58  ;;  %v9240_v47 = vpop.eup %9239 }
 0x48c   : > { %9241 = vlog2.f32 %v2830_v1 }
 0x48d   : > { %v4295_v25 = vrot.slane %v3414_v59, %v9931_v10 }
 0x4c6   : > { %v3448_v34 = vpop.trf.xlu0 }
 0x4c7   : > { %8788 = vmatmul.mubr.msk.f32.vlgmr.msra.gmra.mrb[12].mxu1 %vm3464_vm15, %v3448_v34  ;;  %v3410_v34 = vmul.f32 %v10471_v50, %v10220_v26 }
 0x4c8   : > { %8791 = vmatpush3.msk.msra.mxu1 %vm2052_vm11, %v3413_v13  ;;  %8792 = vmatprep.mubr.msk.f32.mxu1 %vm9454_vm10, %v9455_v19  ;;  %v2774_v13 = vmax.f32 %v10434_v27, 0.0  ;;  %v10503_v27 = vadd.f32 %v2846_v39, %v2778_v8  ;;  %v3412_v39 = vmul.f32 %v10395_v21, %v10231_v30 }
 0x4c9   : > { %8795 = vmatprep.subr.mxu1 %v9455_v19 }
 0x4ca   : > { %v3684_v3 = vpop.trf.xlu0  ;;  %v3557_v52 = vpop.trf.xlu1  ;;  %v10498_v45 = vadd.f32 %v2838_v37, %v2774_v13  ;;  %v3415_v29 = vmul.f32 %v10503_v27, %v10239_v11  ;;  %v5607_v8 = vrot.slane %v3412_v39, %v9931_v10 }
 0x4cb   : > { %8793 = vmatmul.mubr.msk.f32.vlgmr.msra.gmra.mrb[14].mxu1 %vm3464_vm15, %v3557_v52  ;;  %v2848_v52 = vmul.f32 0.6931472, %v9240_v47 }
 0x4cc   : > { %8796 = vmatpush3.msk.msra.mxu1 %vm2052_vm11, %v3703_v22  ;;  %8797 = vmatprep.mubr.msk.f32.mxu1 %vm9454_vm10, %v9455_v19  ;;  %v3411_v62 = vmul.f32 %v10498_v45, %v10223_v6  ;;  %v4771_v63 = vrot.slane %v3415_v29, %v9931_v10 }
 0x4cd   : > { %8800 = vmatprep.subr.mxu1 %v9455_v19  ;;  %v10532_v18 = vadd.f32 %v2848_v52, %v2779_v28 }
 0x4ce   : > { %v3800_v42 = vpop.trf.xlu0  ;;  %v3925_v7 = vpop.trf.xlu1 }
 0x4cf   : > { %8798 = vmatmul.mubr.msk.f32.vlgmr.msra.gmra.mrb[16].mxu1 %vm3464_vm15, %v3684_v3  ;;  %8808 = vmatmul.mubr.msk.f32.vlgmr.msra.gmra.mrb[6].mxu0 %vm3464_vm15, %v3925_v7  ;;  %v4655_v3 = vrot.slane %v3410_v34, %v9931_v10 }
 0x4d0   : > { %8801 = vmatpush3.msk.msra.mxu1 %vm2052_vm11, %v3819_v36  ;;  %8816 = vmatpush3.msk.msra.mxu0 %vm2052_vm11, %v4179_v54  ;;  %v5131_v36 = vrot.slane %v3411_v62, %v9931_v10  ;;  %v9242_v54 = vpop.eup %9241 }
 0x4d1   : > { %8802 = vmatprep.mubr.msk.f32.mxu1 %vm9454_vm10, %v9455_v19  ;;  %8810 = vmatprep.subr.mxu1 %v9455_v19  ;;  %v2850_v37 = vmul.f32 0.6931472, %v9242_v54 }
 0x4d2   : > { %v4033_v56 = vpop.trf.xlu0  ;;  %8817 = vmatprep.mubr.msk.f32.mxu0 %vm9454_vm10, %v9455_v19  ;;  %8825 = vmatprep.subr.mxu0 %v9455_v19  ;;  %v4160_v4 = vpop.trf.xlu1 }
 0x4d3   : > { %8803 = vmatmul.mubr.msk.f32.vlgmr.msra.gmra.mrb[18].mxu1 %vm3464_vm15, %v3800_v42  ;;  %8818 = vmatmul.mubr.msk.f32.vlgmr.msra.gmra.mrb[12].mxu0 %vm3464_vm15, %v4160_v4  ;;  %v2780_v4 = vmax.f32 %v10450_v2, 0.0 }
 0x4d4   : > { %8811 = vmatpush3.msk.msra.mxu1 %vm2052_vm11, %v3414_v59  ;;  %8826 = vmatpush3.msk.msra.mxu0 %vm2052_vm11, %v3410_v34 }
 0x4d5   : > { %8812 = vmatprep.mubr.msk.f32.mxu1 %vm9454_vm10, %v9455_v19  ;;  %8820 = vmatprep.subr.mxu1 %v9455_v19  ;;  %v10561_v34 = vadd.f32 %v2850_v37, %v2780_v4 }
 0x4d6   : > { %v4276_v57 = vpop.trf.xlu0  ;;  %8827 = vmatprep.mubr.msk.f32.mxu0 %vm9454_vm10, %v9455_v19  ;;  %8835 = vmatprep.subr.mxu0 %v9455_v19 }
 0x4d7   : > { %v4401_v51 = vpop.trf.xlu1  ;;  %8813 = vmatmul.mubr.msk.f32.vlgmr.msra.gmra.mrb[20].mxu1 %vm3464_vm15, %v4033_v56  ;;  %v3416_v56 = vmul.f32 %v10532_v18, %v10250_v14 }
 0x4d8   : > { %8828 = vmatmul.mubr.msk.f32.vlgmr.msra.gmra.mrb[14].mxu0 %vm3464_vm15, %v4401_v51  ;;  %8821 = vmatpush3.msk.msra.mxu1 %vm2052_vm11, %v4295_v25 }
 0x4d9   : > { %8836 = vmatpush3.msk.msra.mxu0 %vm2052_vm11, %v4655_v3  ;;  %8822 = vmatprep.mubr.msk.f32.mxu1 %vm9454_vm10, %v9455_v19  ;;  %v5247_v2 = vrot.slane %v3416_v56, %v9931_v10 }
 0x4da   : > { %8830 = vmatprep.subr.mxu1 %v9455_v19  ;;  %v4509_v48 = vpop.trf.xlu0  ;;  %8837 = vmatprep.mubr.msk.f32.mxu0 %vm9454_vm10, %v9455_v19 }
 0x4db   : > { %8845 = vmatprep.subr.mxu0 %v9455_v19  ;;  %v4636_v22 = vpop.trf.xlu1  ;;  %8823 = vmatmul.mubr.msk.f32.vlgmr.msra.gmra.mrb[22].mxu1 %vm3464_vm15, %v4276_v57  ;;  %v3417_v57 = vmul.f32 %v10561_v34, %v10257_v41 }
 0x4dc   : > { %8838 = vmatmul.mubr.msk.f32.vlgmr.msra.gmra.mrb[16].mxu0 %vm3464_vm15, %v4636_v22  ;;  %8831 = vmatpush3.msk.msra.mxu1 %vm2052_vm11, %v3415_v29  ;;  %v3421_v22 = vrot.slane %v10380_v0, %v10025_v60  ;;  %v10605_v29 = vld [vmem:[%s9792_s14] sm:$0xff] }
 0x4dd   : > { %8846 = vmatpush3.msk.msra.mxu0 %vm2052_vm11, %v3411_v62  ;;  %8832 = vmatprep.mubr.msk.f32.mxu1 %vm9454_vm10, %v9455_v19  ;;  %v5723_v3 = vrot.slane %v3417_v57, %v9931_v10 }
 0x4de   : > { %8840 = vmatprep.subr.mxu1 %v9455_v19  ;;  %v4752_v42 = vpop.trf.xlu0  ;;  %8847 = vmatprep.mubr.msk.f32.mxu0 %vm9454_vm10, %v9455_v19 }
 0x4df   : > { %8855 = vmatprep.subr.mxu0 %v9455_v19  ;;  %v4877_v7 = vpop.trf.xlu1  ;;  %8833 = vmatmul.mubr.msk.f32.vlgmr.msra.gmra.mrb[24].mxu1 %vm3464_vm15, %v4509_v48  ;;  %v8477_v48 = vld [vmem:[%s11174_s30] ss:$0 sm:$0xff]  ;;  %s11180_s30 = sld [smem:[#allocation44_spill]] (!%p8555_p13) }
 0x4e0   : > { %8848 = vmatmul.mubr.msk.f32.vlgmr.msra.gmra.mrb[18].mxu0 %vm3464_vm15, %v4877_v7  ;;  %8841 = vmatpush3.msk.msra.mxu1 %vm2052_vm11, %v4771_v63  ;;  %v3228_v52 = vcombine.high %v8477_v48, %v8477_v48  ;;  %v10608_v62 = vrot.slane %v8477_v48, %v9892_v31  ;;  %v3652_v7 = vrot.slane %v10380_v0, %v9931_v10 }
 0x4e1   : > { %8856 = vmatpush3.msk.msra.mxu0 %vm2052_vm11, %v5131_v36  ;;  %8842 = vmatprep.mubr.msk.f32.mxu1 %vm9454_vm10, %v9455_v19  ;;  %v3656_v0 = vrot.slane %v10453_v53, %v9931_v10  ;;  %v3902_v48 = vrot.slane %v10473_v20, %v10025_v60 }
 0x4e2   : > { %8850 = vmatprep.subr.mxu1 %v9455_v19  ;;  %v4985_v49 = vpop.trf.xlu0  ;;  %8857 = vmatprep.mubr.msk.f32.mxu0 %vm9454_vm10, %v9455_v19  ;;  %v3242_v28 = vrot.slane %v3228_v52, %v9892_v31  ;;  %v3243_v63 = vcombine.high %v10608_v62, %v10608_v62  ;;  %v3657_v37 = vmul.f32 %v3652_v7, %v10605_v29 }
 0x4e3   : > { %8865 = vmatprep.subr.mxu0 %v9455_v19  ;;  %v5112_v1 = vpop.trf.xlu1  ;;  %8843 = vmatmul.mubr.msk.f32.vlgmr.msra.gmra.mrb[26].mxu1 %vm3464_vm15, %v4752_v42  ;;  %v3426_v42 = vmul.f32 %v3421_v22, %v10605_v29  ;;  %v4128_v22 = vrot.slane %v10382_v61, %v9931_v10  ;;  %v4132_v7 = vrot.slane %v10473_v20, %v9931_v10 }
 0x4e4   : > { %8858 = vmatmul.mubr.msk.f32.vlgmr.msra.gmra.mrb[20].mxu0 %vm3464_vm15, %v5112_v1  ;;  %8851 = vmatpush3.msk.msra.mxu1 %vm2052_vm11, %v3416_v56  ;;  %v10616_v36 = vcombine.high %v3242_v28, %v3242_v28  ;;  %v3269_v1 = vcombine.low %v10608_v62, %v3243_v63  ;;  %v3659_v4 = vmul.f32 1.442695, %v3657_v37  ;;  %v3904_v37 = vmul.f32 %v3902_v48, %v10605_v29 }
 0x4e5   : > { %8866 = vmatpush3.msk.msra.mxu0 %vm2052_vm11, %v3412_v39  ;;  %8852 = vmatprep.mubr.msk.f32.mxu1 %vm9454_vm10, %v9455_v19  ;;  %v3428_v54 = vmul.f32 1.442695, %v3426_v42 }
 0x4e6   : > { %8860 = vmatprep.subr.mxu1 %v9455_v19  ;;  %v5228_v59 = vpop.trf.xlu0  ;;  %8867 = vmatprep.mubr.msk.f32.mxu0 %vm9454_vm10, %v9455_v19  ;;  %v3270_v56 = vcombine.low %v3242_v28, %v10616_v36 }
 0x4e7   : > { %8875 = vmatprep.subr.mxu0 %v9455_v19  ;;  %v5353_v13 = vpop.trf.xlu1  ;;  %8853 = vmatmul.mubr.msk.f32.vlgmr.msra.gmra.mrb[28].mxu1 %vm3464_vm15, %v4985_v49  ;;  %v3425_v49 = vrot.slane %v10453_v53, %v10025_v60  ;;  %9243 = vpow2.f32 %v3428_v54 }
 0x4e8   : > { %8868 = vmatmul.mubr.msk.f32.vlgmr.msra.gmra.mrb[22].mxu0 %vm3464_vm15, %v5353_v13  ;;  %8861 = vmatpush3.msk.msra.mxu1 %vm2052_vm11, %v5247_v2  ;;  %v3284_v13 = vrot.slane %v3270_v56, %v9892_v31  ;;  %v3286_v2 = vcombine.low %v10608_v62, %v10608_v62  ;;  %9245 = vpow2.f32 %v3659_v4 }
 0x4e9   : > { %8876 = vmatpush3.msk.msra.mxu0 %vm2052_vm11, %v5607_v8  ;;  %8862 = vmatprep.mubr.msk.f32.mxu1 %vm9454_vm10, %v9455_v19  ;;  %v3427_v39 = vmul.f32 %v3425_v49, %v10605_v29  ;;  %v3287_v8 = vcombine.low %v3243_v63, %v3242_v28 }
 0x4ea   : > { %8870 = vmatprep.subr.mxu1 %v9455_v19  ;;  %v5461_v51 = vpop.trf.xlu0  ;;  %8877 = vmatprep.mubr.msk.f32.mxu0 %vm9454_vm10, %v9455_v19 }
 0x4eb   : > { %v5588_v25 = vpop.trf.xlu1  ;;  %8885 = vmatprep.subr.mxu0 %v9455_v19  ;;  %8863 = vmatmul.mubr.msk.f32.vlgmr.msra.gmra.mrb[30].mxu1 %vm3464_vm15, %v5228_v59  ;;  %v3277_v59 = vrot.slane %v3269_v1, %v9892_v31  ;;  %v3301_v53 = vrot.slane %v3287_v8, %v9892_v31  ;;  %v4374_v1 = vrot.slane %v10471_v50, %v10025_v60  ;;  %v3907_v8 = vmul.f32 1.442695, %v3904_v37 }
 0x4ec   : > { %8878 = vmatmul.mubr.msk.f32.vlgmr.msra.gmra.mrb[24].mxu0 %vm3464_vm15, %v5588_v25  ;;  %8871 = vmatpush3.msk.msra.mxu1 %vm2052_vm11, %v3417_v57  ;;  %v3430_v57 = vmul.f32 1.442695, %v3427_v39  ;;  %v3658_v25 = vmul.f32 %v3656_v0, %v10605_v29 }
 0x4ed   : > { %8872 = vmatprep.mubr.msk.f32.mxu1 %vm9454_vm10, %v9455_v19  ;;  %8880 = vmatprep.subr.mxu1 %v9455_v19 }
 0x4ee   : > { %8887 = vmatprep.mubr.msk.f32.mxu0 %vm9454_vm10, %v9455_v19  ;;  %v5704_v47 = vpop.trf.xlu0  ;;  %9247 = vpow2.f32 %v3430_v57  ;;  %v3661_v28 = vmul.f32 1.442695, %v3658_v25  ;;  %v4378_v57 = vrot.slane %v10503_v27, %v10025_v60  ;;  %v4604_v25 = vrot.slane %v10471_v50, %v9931_v10 }
 0x4ef   : > { %8873 = vmatmul.mubr.msk.f32.vlgmr.msra.gmra.mrb[32].mxu1 %vm3464_vm15, %v5461_v51  ;;  %v3898_v51 = vrot.slane %v10382_v61, %v10025_v60  ;;  %v4133_v61 = vmul.f32 %v4128_v22, %v10605_v29 }
 0x4f0   : > { %8881 = vmatpush3.msk.msra.mxu1 %vm2052_vm11, %v5723_v3  ;;  %8882 = vmatprep.mubr.msk.f32.mxu1 %vm9454_vm10, %v9455_v19  ;;  %v3285_v3 = vcombine.low %v3277_v59, %v3284_v13  ;;  %9249 = vpow2.f32 %v3661_v28  ;;  %v4134_v13 = vmul.f32 %v4132_v7, %v10605_v29  ;;  %v4380_v50 = vmul.f32 %v4378_v57, %v10605_v29 }
 0x4f1   : > { %8890 = vmatprep.subr.mxu1 %v9455_v19  ;;  %v9244_v52 = vpop.eup %9243  ;;  %v3903_v42 = vmul.f32 %v3898_v51, %v10605_v29  ;;  %v4850_v7 = vrot.slane %v10498_v45, %v10025_v60 }
 0x4f2   : > { %v10643_v63 = vadd.f32 %v10371_v23, %v3285_v3  ;;  %v5799_v49 = vmul.f32 0.0, %v9244_v52  ;;  %v9246_v59 = vpop.eup %9245  ;;  %v4379_v3 = vmul.f32 %v4374_v1, %v10605_v29  ;;  %v4608_v52 = vrot.slane %v10503_v27, %v9931_v10 }
 0x4f3   : > { %8883 = vmatmul.mubr.msk.f32.vlgmr.msra.gmra.mrb[34].mxu1 %vm3464_vm15, %v5704_v47  ;;  %v3294_v47 = vrot.slane %v3286_v2, %v9892_v31  ;;  %v3905_v39 = vmul.f32 1.442695, %v3903_v42  ;;  %v4609_v42 = vmul.f32 %v4604_v25, %v10605_v29  ;;  %v4854_v1 = vrot.slane %v10532_v18, %v10025_v60 }
 0x4f4   : > { %8892 = vmatprep.mubr.msk.f32.mxu1 %vm9454_vm10, %v9455_v19  ;;  %v10651_v23 = vrot.slane %v10643_v63, %v9892_v31  ;;  %v4381_v28 = vmul.f32 1.442695, %v4379_v3  ;;  %v4383_v27 = vmul.f32 1.442695, %v4380_v50  ;;  %v5084_v3 = vrot.slane %v10532_v18, %v9931_v10 }
 0x4f5   : > { %v3302_v54 = vcombine.low %v3294_v47, %v3301_v53  ;;  %9251 = vpow2.f32 %v3905_v39  ;;  %v4137_v53 = vmul.f32 1.442695, %v4134_v13  ;;  %v4855_v13 = vmul.f32 %v4850_v7, %v10605_v29 }
 0x4f6   : > { %9253 = vpow2.f32 %v3907_v8  ;;  %v5080_v8 = vrot.slane %v10498_v45, %v9931_v10  ;;  %v5326_v45 = vrot.slane %v10395_v21, %v10025_v60  ;;  %v3380_v7 = vcombine.high %v10651_v23, %v10651_v23 }
 0x4f7   : > { %v10654_v20 = vadd.f32 %v10373_v46, %v3302_v54  ;;  %v4135_v46 = vmul.f32 1.442695, %v4133_v61  ;;  %v4610_v61 = vmul.f32 %v4608_v52, %v10605_v29  ;;  %v4856_v52 = vmul.f32 %v4854_v1, %v10605_v29 }
 0x4f8   : > { %v9248_v51 = vpop.eup %9247  ;;  %v4857_v18 = vmul.f32 1.442695, %v4855_v13  ;;  %v5086_v13 = vmul.f32 %v5084_v3, %v10605_v29 }
 0x4f9   : > { %v10669_v47 = vrot.slane %v10654_v20, %v9892_v31  ;;  %v5800_v48 = vmul.f32 0.0, %v9248_v51  ;;  %9255 = vpow2.f32 %v4135_v46  ;;  %v4613_v50 = vmul.f32 1.442695, %v4610_v61 }
 0x4fa   : > { %v9250_v37 = vpop.eup %9249  ;;  %9257 = vpow2.f32 %v4137_v53  ;;  %v5958_v53 = vrot.slane %v10651_v23, %v9931_v10  ;;  %v5330_v61 = vrot.slane %v10561_v34, %v10025_v60 }
 0x4fb   : > { %9259 = vpow2.f32 %v4381_v28  ;;  %v5085_v28 = vmul.f32 %v5080_v8, %v10605_v29  ;;  %v5556_v8 = vrot.slane %v10395_v21, %v9931_v10 }
 0x4fc   : > { %9261 = vpow2.f32 %v4383_v27 }
 0x4ff   : > { %v9252_v46 = vpop.eup %9251 }
 0x59a   : > { %v3537_v56 = vpop.f32.mrb[12].mxu1 }
 0x59b   : > { %v5801_v0 = vadd.f32 %v5799_v49, %v3537_v56  ;;  %v8789_v4 = vpop.f32.mrb[13].mxu1  ;;  %v3397_v56 = vcombine.high %v10669_v47, %v10669_v47 }
 0x59d   : > { %8886 = vmatpush3.msra.mxu0 %v5801_v0  ;;  %v5951_v2 = vmul.f32 %v9246_v59, %v5801_v0  ;;  %v4611_v59 = vmul.f32 1.442695, %v4609_v42  ;;  %v9254_v42 = vpop.eup %9253 }
 0x59e   : > { %8888 = vmatmul.mubr.msk.f32.vlgmr.msra.gmra.mrb[26].mxu0 %vm5803_vm0, %v10651_v23  ;;  %8895 = vmatprep.subr.mxu0 %v9455_v19  ;;  %v3645_v22 = vpop.f32.mrb[14].mxu1  ;;  %v9256_v27 = vpop.eup %9255 }
 0x59f   : > { %8897 = vmatprep.mubr.msk.f32.mxu0 %vm9454_vm10, %v9455_v19  ;;  %v5802_v54 = vadd.f32 %v5800_v48, %v3645_v22  ;;  %v8794_v49 = vpop.f32.mrb[15].mxu1  ;;  %9263 = vpow2.f32 %v4611_v59  ;;  %v6034_v59 = vrot.slane %v3397_v56, %v9931_v10 }
 0x5a0   : > { %9265 = vpow2.f32 %v4613_v50  ;;  %v6266_v50 = vrot.slane %v3380_v7, %v9931_v10 }
 0x5a1   : > { %8891 = vmatpush3.msra.mxu1 %v5802_v54  ;;  %v5952_v39 = vmul.f32 %v9250_v37, %v5802_v54  ;;  %9267 = vpow2.f32 %v4857_v18  ;;  %v5332_v18 = vmul.f32 %v5330_v61, %v10605_v29 }
 0x5a2   : > { %v3775_v0 = vpop.f32.mrb[16].mxu1  ;;  %8893 = vmatmul.mubr.msk.f32.vlgmr.msra.gmra.mrb[36].mxu1 %vm5803_vm0, %v3397_v56  ;;  %v4013_v4 = vpop.f32.mrb[6].mxu0  ;;  %8900 = vmatprep.subr.mxu1 %v9455_v19  ;;  %v5331_v56 = vmul.f32 %v5326_v45, %v10605_v29  ;;  %v5089_v45 = vmul.f32 1.442695, %v5086_v13 }
 0x5a3   : > { %v5953_v57 = vadd.f32 %v5951_v2, %v3775_v0  ;;  %v8799_v51 = vpop.f32.mrb[17].mxu1  ;;  %v8809_v25 = vpop.f32.mrb[7].mxu0  ;;  %8902 = vmatprep.mubr.msk.f32.mxu1 %vm9454_vm10, %v9455_v19  ;;  %v3382_v0 = vcombine.high %v10654_v20, %v10654_v20  ;;  %v5087_v20 = vmul.f32 1.442695, %v5085_v28 }
 0x5a4   : > { %v9258_v51 = vpop.eup %9257 }
 0x5a5   : > { %8896 = vmatpush3.msra.mxu0 %v5953_v57  ;;  %v6109_v48 = vmul.f32 %v9252_v46, %v5953_v57  ;;  %v9260_v21 = vpop.eup %9259 }
 0x5a6   : > { %v3891_v2 = vpop.f32.mrb[18].mxu1  ;;  %8898 = vmatmul.mubr.msk.f32.vlgmr.msra.gmra.mrb[28].mxu0 %vm5803_vm0, %v5958_v53  ;;  %8905 = vmatprep.subr.mxu0 %v9455_v19  ;;  %v4251_v22 = vpop.f32.mrb[12].mxu0 }
 0x5a7   : > { %v5954_v54 = vadd.f32 %v5952_v39, %v3891_v2  ;;  %v6111_v49 = vadd.f32 %v6109_v48, %v4013_v4  ;;  %v8804_v37 = vpop.f32.mrb[19].mxu1  ;;  %8907 = vmatprep.mubr.msk.f32.mxu0 %vm9454_vm10, %v9455_v19  ;;  %v8819_v1 = vpop.f32.mrb[13].mxu0  ;;  %v4859_v4 = vmul.f32 1.442695, %v4856_v52  ;;  %v3365_v48 = vcombine.high %v10643_v63, %v10643_v63 }
 0x5a8   : > { %v3396_v52 = vrot.slane %v3382_v0, %v9892_v31  ;;  %v5560_v63 = vrot.slane %v10561_v34, %v9931_v10  ;;  %v3303_v0 = vcombine.low %v10616_v36, %v10608_v62 }
 0x5a9   : > { %8901 = vmatpush3.msra.mxu1 %v5954_v54  ;;  %8906 = vmatpush3.msra.mxu0 %v6111_v49  ;;  %v6110_v23 = vmul.f32 %v9254_v42, %v5954_v54  ;;  %v6259_v39 = vmul.f32 %v9256_v27, %v6111_v49  ;;  %9269 = vpow2.f32 %v4859_v4  ;;  %v5561_v54 = vmul.f32 %v5556_v8, %v10605_v29  ;;  %v9262_v49 = vpop.eup %9261 }
 0x5aa   : > { %v4121_v57 = vpop.f32.mrb[20].mxu1  ;;  %8903 = vmatmul.mubr.msk.f32.vlgmr.msra.gmra.mrb[38].mxu1 %vm5803_vm0, %v6034_v59  ;;  %8908 = vmatmul.mubr.msk.f32.vlgmr.msra.gmra.mrb[30].mxu0 %vm5803_vm0, %v3380_v7  ;;  %9271 = vpow2.f32 %v5087_v20  ;;  %v5333_v7 = vmul.f32 1.442695, %v5331_v56  ;;  %v9264_v34 = vpop.eup %9263  ;;  %v3379_v59 = vrot.slane %v3365_v48, %v9892_v31  ;;  %v6342_v13 = vrot.slane %v3396_v52, %v9931_v10 }
 0x5ab   : > { %v4489_v60 = vpop.f32.mrb[14].mxu0  ;;  %v6112_v25 = vadd.f32 %v6110_v23, %v4121_v57  ;;  %v6261_v46 = vadd.f32 %v6259_v39, %v4251_v22  ;;  %v8814_v3 = vpop.f32.mrb[21].mxu1  ;;  %8910 = vmatprep.subr.mxu1 %v9455_v19  ;;  %8915 = vmatprep.subr.mxu0 %v9455_v19  ;;  %9273 = vpow2.f32 %v5089_v45  ;;  %v5335_v4 = vmul.f32 1.442695, %v5332_v18 }
 0x5ac   : > { %v8829_v53 = vpop.f32.mrb[15].mxu0  ;;  %8912 = vmatprep.mubr.msk.f32.mxu1 %vm9454_vm10, %v9455_v19  ;;  %8917 = vmatprep.mubr.msk.f32.mxu0 %vm9454_vm10, %v9455_v19  ;;  %9275 = vpow2.f32 %v5333_v7  ;;  %v5563_v36 = vmul.f32 1.442695, %v5561_v54  ;;  %v5562_v57 = vmul.f32 %v5560_v63, %v10605_v29  ;;  %v3310_v3 = vrot.slane %v3303_v0, %v9892_v31 }
 0x5ad   : > { %8911 = vmatpush3.msra.mxu1 %v6112_v25  ;;  %8916 = vmatpush3.msra.mxu0 %v6261_v46  ;;  %v6260_v2 = vmul.f32 %v9258_v51, %v6112_v25  ;;  %v6417_v22 = vmul.f32 %v9260_v21, %v6261_v46  ;;  %v6574_v53 = vrot.slane %v3379_v59, %v9931_v10  ;;  %9277 = vpow2.f32 %v5335_v4 }
 0x5ae   : > { %v4367_v28 = vpop.f32.mrb[22].mxu1  ;;  %8913 = vmatmul.mubr.msk.f32.vlgmr.msra.gmra.mrb[40].mxu1 %vm5803_vm0, %v3396_v52  ;;  %8918 = vmatmul.mubr.msk.f32.vlgmr.msra.gmra.mrb[32].mxu0 %vm5803_vm0, %v6266_v50  ;;  %v3398_v21 = vcombine.high %v3396_v52, %v3396_v52  ;;  %9279 = vpow2.f32 %v5563_v36  ;;  %v3357_v7 = vadd.f32 %v10369_v32, %v3310_v3  ;;  %v3381_v54 = vcombine.high %v3379_v59, %v3379_v59 }
 0x5af   : > { %v4727_v42 = vpop.f32.mrb[16].mxu0  ;;  %v6262_v37 = vadd.f32 %v6260_v2, %v4367_v28  ;;  %v6419_v1 = vadd.f32 %v6417_v22, %v4489_v60  ;;  %v8824_v27 = vpop.f32.mrb[23].mxu1  ;;  %8920 = vmatprep.subr.mxu1 %v9455_v19  ;;  %8925 = vmatprep.subr.mxu0 %v9455_v19  ;;  %v5565_v2 = vmul.f32 1.442695, %v5562_v57 }
 0x5b0   : > { %v8839_v61 = vpop.f32.mrb[17].mxu0  ;;  %8922 = vmatprep.mubr.msk.f32.mxu1 %vm9454_vm10, %v9455_v19  ;;  %8927 = vmatprep.mubr.msk.f32.mxu0 %vm9454_vm10, %v9455_v19  ;;  %v9266_v60 = vpop.eup %9265  ;;  %v6882_v4 = vrot.slane %v3381_v54, %v9931_v10 }
 0x5b1   : > { %8921 = vmatpush3.msra.mxu1 %v6262_v37  ;;  %8926 = vmatpush3.msra.mxu0 %v6419_v1  ;;  %v6418_v23 = vmul.f32 %v9262_v49, %v6262_v37  ;;  %v6567_v39 = vmul.f32 %v9264_v34, %v6419_v1  ;;  %v9268_v46 = vpop.eup %9267  ;;  %v6650_v49 = vrot.slane %v3398_v21, %v9931_v10  ;;  %9281 = vpow2.f32 %v5565_v2 }
 0x5b2   : > { %v4597_v8 = vpop.f32.mrb[24].mxu1  ;;  %8923 = vmatmul.mubr.msk.f32.vlgmr.msra.gmra.mrb[42].mxu1 %vm5803_vm0, %v6342_v13  ;;  %8928 = vmatmul.mubr.msk.f32.vlgmr.msra.gmra.mrb[34].mxu0 %vm5803_vm0, %v3379_v59 }
 0x5b3   : > { %v4965_v62 = vpop.f32.mrb[18].mxu0  ;;  %v6420_v20 = vadd.f32 %v6418_v23, %v4597_v8  ;;  %v6569_v56 = vadd.f32 %v6567_v39, %v4727_v42  ;;  %v8834_v51 = vpop.f32.mrb[25].mxu1  ;;  %8930 = vmatprep.subr.mxu1 %v9455_v19  ;;  %8935 = vmatprep.subr.mxu0 %v9455_v19  ;;  %v3405_v39 = vrot.slane %v3357_v7, %v9892_v31  ;;  %v9135_v7 = vld [vmem:[%s9797_s27] sm:$0xff]  }
 0x5b4   : > { %v8849_v25 = vpop.f32.mrb[19].mxu0  ;;  %8932 = vmatprep.mubr.msk.f32.mxu1 %vm9454_vm10, %v9455_v19  ;;  %8937 = vmatprep.mubr.msk.f32.mxu0 %vm9454_vm10, %v9455_v19  ;;  %v9270_v52 = vpop.eup %9269 }
 0x5b5   : > { %8931 = vmatpush3.msra.mxu1 %v6420_v20  ;;  %8936 = vmatpush3.msra.mxu0 %v6569_v56  ;;  %v6568_v29 = vmul.f32 %v9266_v60, %v6420_v20  ;;  %v6725_v48 = vmul.f32 %v9268_v46, %v6569_v56  ;;  %v9272_v42 = vpop.eup %9271  ;;  %v6958_v3 = vrot.slane %v3405_v39, %v9931_v10 }
 0x5b6   : > { %v4843_v50 = vpop.f32.mrb[26].mxu1  ;;  %8933 = vmatmul.mubr.msk.f32.vlgmr.msra.gmra.mrb[44].mxu1 %vm5803_vm0, %v3398_v21  ;;  %8938 = vmatmul.mubr.msk.f32.vlgmr.msra.gmra.mrb[36].mxu0 %vm5803_vm0, %v6574_v53  ;;  %v9274_v32 = vpop.eup %9273 }
 0x5b7   : > { %v5203_v45 = vpop.f32.mrb[20].mxu0  ;;  %v6570_v22 = vadd.f32 %v6568_v29, %v4843_v50  ;;  %v6727_v18 = vadd.f32 %v6725_v48, %v4965_v62  ;;  %v8844_v63 = vpop.f32.mrb[27].mxu1  ;;  %8940 = vmatprep.subr.mxu1 %v9455_v19  ;;  %8945 = vmatprep.subr.mxu0 %v9455_v19 }
 0x5b8   : > { %v8859_v28 = vpop.f32.mrb[21].mxu0  ;;  %8942 = vmatprep.mubr.msk.f32.mxu1 %vm9454_vm10, %v9455_v19  ;;  %8947 = vmatprep.mubr.msk.f32.mxu0 %vm9454_vm10, %v9455_v19  ;;  %v9276_v23 = vpop.eup %9275 }
 0x5b9   : > { %8941 = vmatpush3.msra.mxu1 %v6570_v22  ;;  %8946 = vmatpush3.msra.mxu0 %v6727_v18  ;;  %v6726_v37 = vmul.f32 %v9270_v52, %v6570_v22  ;;  %v6875_v1 = vmul.f32 %v9272_v42, %v6727_v18  ;;  %v9278_v60 = vpop.eup %9277  ;;  %v3406_v52 = vcombine.high %v3405_v39, %v3405_v39 }
 0x5ba   : > { %v5073_v27 = vpop.f32.mrb[28].mxu1  ;;  %8943 = vmatmul.mubr.msk.f32.vlgmr.msra.gmra.mrb[46].mxu1 %vm5803_vm0, %v6650_v49  ;;  %8948 = vmatmul.mubr.msk.f32.vlgmr.msra.gmra.mrb[38].mxu0 %vm5803_vm0, %v3381_v54  ;;  %v9280_v46 = vpop.eup %9279  ;;  %v7190_v22 = vrot.slane %v10669_v47, %v9931_v10  ;;  %v9136_v54 = vld [vmem:[%s9797_s27 + $0x8] sm:$0xff]   ;;  %v9137_v49 = vld [vmem:[%s9797_s27 + $0x10] sm:$0xff]  }
 0x5bb   : > { %v5441_v61 = vpop.f32.mrb[22].mxu0  ;;  %v6728_v34 = vadd.f32 %v6726_v37, %v5073_v27  ;;  %v6877_v0 = vadd.f32 %v6875_v1, %v5203_v45  ;;  %v8854_v59 = vpop.f32.mrb[29].mxu1  ;;  %8950 = vmatprep.subr.mxu1 %v9455_v19  ;;  %8955 = vmatprep.subr.mxu0 %v9455_v19  ;;  %v7266_v42 = vrot.slane %v3406_v52, %v9931_v10  ;;  %v9138_v37 = vld [vmem:[%s9797_s27 + $0x18] sm:$0xff]  }
 0x5bc   : > { %v8869_v13 = vpop.f32.mrb[23].mxu0  ;;  %8952 = vmatprep.mubr.msk.f32.mxu1 %vm9454_vm10, %v9455_v19  ;;  %8957 = vmatprep.mubr.msk.f32.mxu0 %vm9454_vm10, %v9455_v19  ;;  %v9282_v2 = vpop.eup %9281  ;;  %v1820_v10 = vcombine.low %v9951_v9, %v9992_v40 }
 0x5bd   : > { %8951 = vmatpush3.msra.mxu1 %v6728_v34  ;;  %8956 = vmatpush3.msra.mxu0 %v6877_v0  ;;  %v6876_v8 = vmul.f32 %v9274_v32, %v6728_v34  ;;  %v7033_v62 = vmul.f32 %v9276_v23, %v6877_v0 }
 0x5be   : > { %v5319_v36 = vpop.f32.mrb[30].mxu1  ;;  %8953 = vmatmul.mubr.msk.f32.vlgmr.msra.gmra.mrb[48].mxu1 %vm5803_vm0, %v3405_v39  ;;  %8958 = vmatmul.mubr.msk.f32.vlgmr.msra.gmra.mrb[40].mxu0 %vm5803_vm0, %v6882_v4  ;;  %v1834_v27 = vrot.slane %v1820_v10, %v9892_v31 }
 0x5bf   : > { %v5679_v57 = vpop.f32.mrb[24].mxu0  ;;  %v6878_v20 = vadd.f32 %v6876_v8, %v5319_v36  ;;  %v7035_v56 = vadd.f32 %v7033_v62, %v5441_v61  ;;  %v8864_v51 = vpop.f32.mrb[31].mxu1  ;;  %8960 = vmatprep.subr.mxu1 %v9455_v19  ;;  %8965 = vmatprep.subr.mxu0 %v9455_v19 }
 0x5c0   : > { %v8879_v25 = vpop.f32.mrb[25].mxu0  ;;  %8962 = vmatprep.mubr.msk.f32.mxu1 %vm9454_vm10, %v9455_v19  ;;  %8967 = vmatprep.mubr.msk.f32.mxu0 %vm9454_vm10, %v9455_v19 }
 0x5c1   : > { %8961 = vmatpush3.msra.mxu1 %v6878_v20  ;;  %8966 = vmatpush3.msra.mxu0 %v7035_v56  ;;  %v7034_v53 = vmul.f32 %v9278_v60, %v6878_v20  ;;  %v7183_v21 = vmul.f32 %v9280_v46, %v7035_v56  ;;  %v10831_v60 = vcombine.high %v10091_v55, %v10091_v55  ;;  %v7452_v56 = vsub.f32 0.0, %v10126_v17 }
 0x5c2   : > { %v5549_v29 = vpop.f32.mrb[32].mxu1  ;;  %8963 = vmatmul.mubr.msk.f32.vlgmr.msra.gmra.mrb[50].mxu1 %vm5803_vm0, %v6958_v3  ;;  %8968 = vmatmul.mubr.msk.f32.vlgmr.msra.gmra.mrb[42].mxu0 %vm5803_vm0, %v10669_v47 }
 0x5c3   : > { %v7036_v48 = vadd.f32 %v7034_v53, %v5549_v29  ;;  %v7185_v50 = vadd.f32 %v7183_v21, %v5679_v57  ;;  %v8874_v45 = vpop.f32.mrb[33].mxu1  ;;  %8970 = vmatprep.subr.mxu1 %v9455_v19  ;;  %8975 = vmatprep.subr.mxu0 %v9455_v19  ;;  %v7457_v46 = vsub.f32 0.0, %v10831_v60  ;;  %v7466_v3 = vmul.f32 1.442695, %v7452_v56 }
 0x5c4   : > { %8972 = vmatprep.mubr.msk.f32.mxu1 %vm9454_vm10, %v9455_v19  ;;  %8977 = vmatprep.mubr.msk.f32.mxu0 %vm9454_vm10, %v9455_v19 }
 0x5c5   : > { %8971 = vmatpush3.msra.mxu1 %v7036_v48  ;;  %8976 = vmatpush3.msra.mxu0 %v7185_v50  ;;  %v7184_v18 = vmul.f32 %v9282_v2, %v7036_v48  ;;  %v7476_v48 = vmul.f32 1.442695, %v7457_v46 }
 0x5c6   : > { %v5795_v63 = vpop.f32.mrb[34].mxu1  ;;  %8973 = vmatmul.mubr.msk.f32.vlgmr.msra.gmra.mrb[52].mxu1 %vm5803_vm0, %v3406_v52  ;;  %8978 = vmatmul.mubr.msk.f32.vlgmr.msra.gmra.mrb[44].mxu0 %vm5803_vm0, %v7190_v22 }
 0x5c7   : > { %v7186_v28 = vadd.f32 %v7184_v18, %v5795_v63  ;;  %v8884_v47 = vpop.f32.mrb[35].mxu1  ;;  %8980 = vmatprep.subr.mxu1 %v9455_v19  ;;  %8982 = vmatprep.mubr.msk.f32.mxu1 %vm9454_vm10, %v9455_v19  ;;  %v1819_v19 = vcombine.low %v9962_v24, %v10000_v43  ;;  %v8544_v63 = vld [vmem:[%s11175_s28] ss:$0 sm:$0xff] }
 0x5c8   : > { %8985 = vmatprep.subr.bf16.mxu0 %v9135_v7 }
 0x5c9   : > { %8981 = vmatpush3.msra.mxu1 %v7186_v28  ;;  %8986 = vmatpush3.bf16.msra.mxu0 %v9135_v7  ;;  %v1827_v1 = vrot.slane %v1819_v19, %v9892_v31 }
 0x5ca   : > { %8983 = vmatmul.mubr.msk.f32.vlgmr.msra.gmra.mrb[54].mxu1 %vm5803_vm0, %v7266_v42  ;;  %8987 = vmatprep.subr.bf16.mxu0 %v9136_v54 }
 0x5cb   : > { %v1835_v61 = vcombine.low %v1827_v1, %v1834_v27 }
 0x5cd   : > { %8988 = vmatpush3.bf16.msra.mxu0 %v9136_v54  ;;  %v1899_v32 = vadd.f32 %v9945_v16, %v1835_v61 }
 0x5ce   : > { %8989 = vmatprep.subr.bf16.mxu0 %v9137_v49 }
 0x5cf   : > { %v1915_v34 = vcombine.high %v1899_v32, %v1899_v32  ;;  %v10813_v59 = vrot.slane %v1899_v32, %v9892_v31 }
 0x5d1   : > { %8990 = vmatpush3.bf16.msra.mxu0 %v9137_v49  ;;  %v10810_v0 = vrot.slane %v1915_v34, %v9892_v31  ;;  %v10821_v9 = vcombine.high %v10813_v59, %v10813_v59  ;;  %v7448_v39 = vsub.f32 0.0, %v10813_v59 }
 0x5d2   : > { %8991 = vmatprep.subr.bf16.mxu0 %v9138_v37 }
 0x5d3   : > { %v10817_v24 = vcombine.high %v10810_v0, %v10810_v0  ;;  %v7449_v13 = vsub.f32 0.0, %v10821_v9  ;;  %v7450_v23 = vsub.f32 0.0, %v10810_v0  ;;  %v7458_v20 = vmul.f32 1.442695, %v7448_v39 }
 0x5d5   : > { %8992 = vmatpush3.bf16.msra.mxu0 %v9138_v37  ;;  %v7451_v43 = vsub.f32 0.0, %v10817_v24  ;;  %v7460_v8 = vmul.f32 1.442695, %v7449_v13  ;;  %v7462_v36 = vmul.f32 1.442695, %v7450_v23  ;;  %v7351_v37 = vcombine.high %v8544_v63, %v8544_v63 }
 0x5d6   : > { %v10851_v13 = vrot.slane %v8544_v63, %v9892_v31 }
 0x5d7   : > { %v7464_v4 = vmul.f32 1.442695, %v7451_v43 }
 0x5d8   : > { %v7366_v56 = vcombine.high %v10851_v13, %v10851_v13 }
 0x5d9   : > { %9283 = vpow2.f32 %v7464_v4 }
 0x5da   : > { %9285 = vpow2.f32 %v7460_v8 }
 0x5db   : > { %9287 = vpow2.f32 %v7462_v36 }
 0x5dc   : > { %9289 = vpow2.f32 %v7458_v20 }
 0x5dd   : > { %9291 = vpow2.f32 %v7466_v3 }
 0x5de   : > { %9293 = vpow2.f32 %v7476_v48 }
 0x5e3   : > { %v9284_v2 = vpop.eup %9283 }
 0x5e4   : > { %v9286_v18 = vpop.eup %9285  ;;  %v7481_v42 = vadd.f32 1.0, %v9284_v2 }
 0x5e5   : > { %v9288_v28 = vpop.eup %9287  ;;  %v7479_v49 = vadd.f32 1.0, %v9286_v18 }
 0x5e6   : > { %v9290_v47 = vpop.eup %9289  ;;  %v7480_v1 = vadd.f32 1.0, %v9288_v28  ;;  %9295 = vrcp.f32 %v7481_v42 }
 0x5e7   : > { %v7478_v27 = vadd.f32 1.0, %v9290_v47  ;;  %v9292_v34 = vpop.eup %9291  ;;  %9297 = vrcp.f32 %v7479_v49 }
 0x5e8   : > { %9299 = vrcp.f32 %v7480_v1  ;;  %v9294_v23 = vpop.eup %9293  ;;  %v7482_v39 = vadd.f32 1.0, %v9292_v34 }
 0x5e9   : > { %9301 = vrcp.f32 %v7478_v27  ;;  %v7487_v20 = vadd.f32 1.0, %v9294_v23 }
 0x5ea   : > { %9303 = vrcp.f32 %v7482_v39 }
 0x5eb   : > { %9305 = vrcp.f32 %v7487_v20 }
 0x671   : > { %v5872_v40 = vpop.f32.mrb[26].mxu0 }
 0x672   : > { %5949 = vst.msk [vmem:[#allocation3] sm:$0x1] %vm5948_vm1, %v5872_v40  ;;  %v8889_v16 = vpop.f32.mrb[27].mxu0  ;;  %v7365_v40 = vrot.slane %v7351_v37, %v9892_v31 }
 0x674   : > { %v7374_v48 = vmul.f32 %v7365_v40, %v10220_v26 }
 0x675   : > { %v5944_v62 = vpop.f32.mrb[36].mxu1 }
 0x676   : > { %5950 = vst.msk [vmem:[#allocation3 + $0x10] sm:$0x1] %vm5948_vm1, %v5944_v62  ;;  %v8894_v57 = vpop.f32.mrb[37].mxu1  ;;  %v7367_v62 = vcombine.high %v7365_v40, %v7365_v40 }
 0x678   : > { %v7375_v46 = vmul.f32 %v7367_v62, %v10223_v6  ;;  %v7372_v6 = vmul.f32 %v10851_v13, %v10217_v5  ;;  %v7380_v63 = vmul.f32 %v7367_v62, %v10250_v14 }
 0x679   : > { %v6027_v51 = vpop.f32.mrb[28].mxu0 }
 0x67a   : > { %6107 = vst.msk [vmem:[#allocation3 + $0x1] sm:$0x1] %vm5948_vm1, %v6027_v51  ;;  %v8899_v25 = vpop.f32.mrb[29].mxu0  ;;  %v7393_v18 = vcombine.low %v7374_v48, %v7375_v46 }
 0x67c   : > { %v7407_v37 = vrot.slane %v7393_v18, %v9892_v31 }
 0x67d   : > { %v6103_v53 = vpop.f32.mrb[38].mxu1  ;;  %v6181_v21 = vpop.f32.mrb[30].mxu0 }
 0x67e   : > { %6108 = vst.msk [vmem:[#allocation3 + $0x11] sm:$0x1] %vm5948_vm1, %v6103_v53  ;;  %6257 = vst.msk [vmem:[#allocation3 + $0x2] sm:$0x1] %vm5948_vm1, %v6181_v21  ;;  %v8904_v55 = vpop.f32.mrb[39].mxu1  ;;  %v8909_v29 = vpop.f32.mrb[31].mxu0 }
 0x67f   : > { %v9296_v21 = vpop.eup %9295  ;;  %v7373_v29 = vmul.f32 %v7366_v56, %v10214_v12 }
 0x680   : > { %v9298_v55 = vpop.eup %9297 }
 0x681   : > { %v6253_v50 = vpop.f32.mrb[40].mxu1  ;;  %v6335_v45 = vpop.f32.mrb[32].mxu0  ;;  %v7499_v26 = vmul.f32 %v9298_v55, %v10821_v9  ;;  %v7392_v42 = vcombine.low %v7372_v6, %v7373_v29 }
 0x682   : > { %6258 = vst.msk [vmem:[#allocation3 + $0x12] sm:$0x1] %vm5948_vm1, %v6253_v50  ;;  %6415 = vst.msk [vmem:[#allocation3 + $0x3] sm:$0x1] %vm5948_vm1, %v6335_v45  ;;  %v8914_v52 = vpop.f32.mrb[41].mxu1  ;;  %v8919_v22 = vpop.f32.mrb[33].mxu0 }
 0x683   : > { %v9300_v50 = vpop.eup %9299  ;;  %v7501_v22 = vmul.f32 %v9296_v21, %v10817_v24  ;;  %v7379_v24 = vmul.f32 %v7365_v40, %v10239_v11  ;;  %v7376_v11 = vmul.f32 %v10851_v13, %v10231_v30  ;;  %v7400_v1 = vrot.slane %v7392_v42, %v9892_v31 }
 0x684   : > { %v9302_v52 = vpop.eup %9301  ;;  %v7500_v47 = vmul.f32 %v9300_v50, %v10810_v0 }
 0x685   : > { %v6411_v7 = vpop.f32.mrb[42].mxu1  ;;  %v6489_v54 = vpop.f32.mrb[34].mxu0  ;;  %v7498_v5 = vmul.f32 %v9302_v52, %v10813_v59  ;;  %v7415_v39 = vrot.slane %v7376_v11, %v9892_v31 }
 0x686   : > { %6416 = vst.msk [vmem:[#allocation3 + $0x13] sm:$0x1] %vm5948_vm1, %v6411_v7  ;;  %6565 = vst.msk [vmem:[#allocation3 + $0x4] sm:$0x1] %vm5948_vm1, %v6489_v54  ;;  %v8924_v19 = vpop.f32.mrb[43].mxu1  ;;  %v8929_v10 = vpop.f32.mrb[35].mxu0  ;;  %v7378_v7 = vmul.f32 %v7366_v56, %v10236_v58  ;;  %v7519_v14 = vcombine.low %v7500_v47, %v7501_v22 }
 0x687   : > { %v7377_v19 = vmul.f32 %v10851_v13, %v10228_v35  ;;  %v7417_v10 = vcombine.low %v7379_v24, %v7380_v63  ;;  %v9304_v58 = vpop.eup %9303  ;;  %v7518_v59 = vcombine.low %v7498_v5, %v7499_v26 }
 0x688   : > { %v9306_v34 = vpop.eup %9305  ;;  %v7533_v35 = vrot.slane %v7519_v14, %v9892_v31  ;;  %v7502_v40 = vmul.f32 %v9304_v58, %v10126_v17 }
 0x689   : > { %v6561_v61 = vpop.f32.mrb[44].mxu1  ;;  %v6643_v32 = vpop.f32.mrb[36].mxu0  ;;  %v7416_v27 = vcombine.low %v7377_v19, %v7378_v7  ;;  %v7431_v23 = vrot.slane %v7417_v10, %v9892_v31  ;;  %v7526_v30 = vrot.slane %v7518_v59, %v9892_v31 }
 0x68a   : > { %6566 = vst.msk [vmem:[#allocation3 + $0x14] sm:$0x1] %vm5948_vm1, %v6561_v61  ;;  %6723 = vst.msk [vmem:[#allocation3 + $0x5] sm:$0x1] %vm5948_vm1, %v6643_v32  ;;  %v8934_v16 = vpop.f32.mrb[45].mxu1  ;;  %v8939_v43 = vpop.f32.mrb[37].mxu0  ;;  %v7541_v56 = vrot.slane %v7502_v40, %v9892_v31 }
 0x68b   : > { %v7408_v16 = vcombine.low %v7400_v1, %v7407_v37  ;;  %v7534_v20 = vcombine.low %v7526_v30, %v7533_v35 }
 0x68d   : > { %v6719_v4 = vpop.f32.mrb[46].mxu1  ;;  %v6797_v8 = vpop.f32.mrb[38].mxu0 }
 0x68e   : > { %6724 = vst.msk [vmem:[#allocation3 + $0x15] sm:$0x1] %vm5948_vm1, %v6719_v4  ;;  %6873 = vst.msk [vmem:[#allocation3 + $0x6] sm:$0x1] %vm5948_vm1, %v6797_v8  ;;  %v8944_v36 = vpop.f32.mrb[47].mxu1  ;;  %v8949_v57 = vpop.f32.mrb[39].mxu0  ;;  %v7381_v4 = vmul.f32 %v10851_v13, %v10257_v41  ;;  %v7424_v8 = vrot.slane %v7416_v27, %v9892_v31 }
 0x68f   : > { %v7507_v36 = vmul.f32 %v9306_v34, %v10831_v60 }
 0x690   : > { %v7439_v46 = vrot.slane %v7381_v4, %v9892_v31 }
 0x691   : > { %v6869_v51 = vpop.f32.mrb[48].mxu1  ;;  %v6951_v25 = vpop.f32.mrb[40].mxu0  ;;  %v7565_v41 = vrot.slane %v7507_v36, %v9892_v31 }
 0x692   : > { %6874 = vst.msk [vmem:[#allocation3 + $0x16] sm:$0x1] %vm5948_vm1, %v6869_v51  ;;  %7031 = vst.msk [vmem:[#allocation3 + $0x7] sm:$0x1] %vm5948_vm1, %v6951_v25  ;;  %v8954_v3 = vpop.f32.mrb[49].mxu1  ;;  %v8959_v53 = vpop.f32.mrb[41].mxu0  ;;  %v7432_v51 = vcombine.low %v7424_v8, %v7431_v23 }
 0x695   : > { %v7027_v45 = vpop.f32.mrb[50].mxu1  ;;  %v7105_v2 = vpop.f32.mrb[42].mxu0 }
 0x696   : > { %7032 = vst.msk [vmem:[#allocation3 + $0x17] sm:$0x1] %vm5948_vm1, %v7027_v45  ;;  %7181 = vst.msk [vmem:[#allocation3 + $0x8] sm:$0x1] %vm5948_vm1, %v7105_v2  ;;  %v8964_v28 = vpop.f32.mrb[51].mxu1  ;;  %v8969_v12 = vpop.f32.mrb[43].mxu0 }
 0x699   : > { %v7177_v54 = vpop.f32.mrb[52].mxu1  ;;  %v7259_v49 = vpop.f32.mrb[44].mxu0  ;;  %v7341_v32 = vld [vmem:[#allocation3] sm:$0xff] }
 0x69a   : > { %7182 = vst.msk [vmem:[#allocation3 + $0x18] sm:$0x1] %vm5948_vm1, %v7177_v54  ;;  %7339 = vst.msk [vmem:[#allocation3 + $0x9] sm:$0x1] %vm5948_vm1, %v7259_v49  ;;  %v8974_v0 = vpop.f32.mrb[53].mxu1  ;;  %v8979_v9 = vpop.f32.mrb[45].mxu0  ;;  %v7444_v62 = vadd.f32 %v7408_v16, %v7341_v32 }
 0x69b   : > { %v8545_v32 = vld [vmem:[%s1115_s0] ss:$0 sm:$0xff] }
 0x69c   : > { %v7570_v53 = vmul.f32 %v7534_v20, %v7444_v62  ;;  %v7670_v34 = vcombine.high %v8545_v32, %v8545_v32  ;;  %v7677_v35 = vrot.slane %v8545_v32, %v9892_v31 }
 0x69d   : > { %v7335_v61 = vpop.f32.mrb[54].mxu1  ;;  %v7343_v17 = vld [vmem:[#allocation3 + $0x10] sm:$0xff] }
 0x69e   : > { %7340 = vst.msk [vmem:[#allocation3 + $0x19] sm:$0x1] %vm5948_vm1, %v7335_v61  ;;  %v8984_v43 = vpop.f32.mrb[55].mxu1  ;;  %v7446_v3 = vadd.f32 %v7432_v51, %v7343_v17  ;;  %v7684_v40 = vrot.slane %v7670_v34, %v9892_v31  ;;  %v7792_v30 = vcombine.low %v7677_v35, %v7677_v35  ;;  %v8026_v34 = vld [vmem:[%s11178_s24] sm:$0xff] (!%p8555_p13) }
 0x69f   : > { %v7685_v43 = vcombine.high %v7677_v35, %v7677_v35 }
 0x6a0   : > { %v7572_v60 = vmul.f32 %v7558_v44, %v7446_v3  ;;  %v7686_v16 = vcombine.high %v7684_v40, %v7684_v40  ;;  %v7800_v36 = vrot.slane %v7792_v30, %v9892_v31 }
 0x6a1   : > { %v7342_v57 = vld [vmem:[#allocation3 + $0x8] sm:$0x3]  ;;  %v7775_v23 = vcombine.low %v7677_v35, %v7685_v43 }
 0x6a2   : > { %v7445_v25 = vadd.f32 %v7415_v39, %v7342_v57  ;;  %v7776_v39 = vcombine.low %v7684_v40, %v7686_v16  ;;  %v7809_v4 = vcombine.low %v7686_v16, %v7677_v35  ;;  %v8027_v35 = vld [vmem:[%s11178_s24 + $0x8] sm:$0xff] (!%p8555_p13)  ;;  %v8028_v16 = vld [vmem:[%s11178_s24 + $0x10] sm:$0xff] (!%p8555_p13) }
 0x6a3   : > { %v7783_v8 = vrot.slane %v7775_v23, %v9892_v31 }
 0x6a4   : > { %v7571_v21 = vmul.f32 %v7541_v56, %v7445_v25  ;;  %v7790_v62 = vrot.slane %v7776_v39, %v9892_v31  ;;  %v7816_v17 = vrot.slane %v7809_v4, %v9892_v31 }
 0x6a5   : > { %v7344_v55 = vld [vmem:[#allocation3 + $0x18] sm:$0x3] }
 0x6a6   : > { %v7447_v13 = vadd.f32 %v7439_v46, %v7344_v55  ;;  %v7574_v29 = vpack.c.bf16 %v7571_v21, %v7570_v53  ;;  %v8546_v48 = vpack.c.bf16 %v7571_v21, %v7571_v21  ;;  %v7791_v20 = vcombine.low %v7783_v8, %v7790_v62 }
 0x6a8   : > { %v7573_v50 = vmul.f32 %v7565_v41, %v7447_v13  ;;  %v7599_v45 = vrot.slane %v7574_v29, %v9850_v38  ;;  %v7606_v2 = vrot.slane %v8546_v48, %v9850_v38 }
 0x6aa   : > { %v7575_v52 = vpack.c.bf16 %v7573_v50, %v7572_v60  ;;  %v7607_v22 = vcombine.high %v7599_v45, %v7599_v45  ;;  %v8547_v6 = vpack.c.bf16 %v7573_v50, %v7573_v50  ;;  %v7614_v18 = vrot.slane %v7599_v45, %v9850_v38 }
 0x6ab   : > { %v7621_v12 = vrot.slane %v7606_v2, %v9850_v38 }
 0x6ac   : > { %v7628_v63 = vrot.slane %v7607_v22, %v9850_v38  ;;  %v7638_v28 = vrot.slane %v7575_v52, %v9850_v38  ;;  %v7645_v26 = vrot.slane %v8547_v6, %v9850_v38 }
 0x6ae   : > { %v7646_v33 = vcombine.high %v7638_v28, %v7638_v28  ;;  %v7653_v15 = vrot.slane %v7638_v28, %v9850_v38  ;;  %v7687_v44 = vcombine.low %v7614_v18, %v7628_v63  ;;  %v8548_v47 = vcombine.high %v7614_v18, %v7628_v63  ;;  %v9307_v28 = vld [vmem:[#allocation2 + $0x18] sm:$0x3] }
 0x6af   : > { %v7660_v14 = vrot.slane %v7645_v26, %v9850_v38 }
 0x6b0   : > { %v7667_v42 = vrot.slane %v7646_v33, %v9850_v38  ;;  %v7668_v7 = vcombine.high %v7653_v15, %v7653_v15  ;;  %v7689_v24 = vcombine.low %v7621_v12, %v7653_v15  ;;  %v7697_v5 = vrot.slane %v7687_v44, %v9850_v38 }
 0x6b1   : > { %v7704_v54 = vrot.slane %v8548_v47, %v9850_v38  ;;  %v9308_v47 = vld [vmem:[#allocation2 + $0x8] sm:$0x3] }
 0x6b2   : > { %v7690_v49 = vcombine.low %v7667_v42, %v7668_v7  ;;  %v7669_v37 = vcombine.high %v7667_v42, %v7667_v42  ;;  %v7711_v19 = vrot.slane %v7689_v24, %v9850_v38 }
 0x6b3   : > { %v7719_v0 = vcombine.low %v7697_v5, %v7704_v54 }
 0x6b4   : > { %v7718_v10 = vrot.slane %v7690_v49, %v9850_v38  ;;  %v7736_v9 = vcombine.low %v7669_v37, %v7660_v14  ;;  %v9309_v37 = vld [vmem:[#allocation2] sm:$0xff] }
 0x6b5   : > { %v7727_v59 = vrot.slane %v7719_v0, %v9850_v38  ;;  %v9310_v0 = vld [vmem:[#allocation2 + $0x10] sm:$0xff] }
 0x6b6   : > { %v7720_v58 = vcombine.low %v7711_v19, %v7718_v10  ;;  %v7743_v11 = vrot.slane %v7736_v9, %v9850_v38 }
 0x6b8   : > { %v7734_v1 = vrot.slane %v7720_v58, %v9850_v38  ;;  %v7750_v61 = vrot.slane %v7743_v11, %v9850_v38  ;;  %v7793_v38 = vcombine.low %v7685_v43, %v7684_v40  ;;  %v9020_v40 = vpack.c.bf16 (!%p8555_p13), %v8027_v35, %v8026_v34  ;;  %v8029_v43 = vld [vmem:[%s11178_s24 + $0x18] sm:$0xff] (!%p8555_p13) }
 0x6b9   : > { %v9024_v23 = vpack.c.bf16 (!%p8555_p13), %v8029_v43, %v8028_v16 }
 0x6ba   : > { %v7735_v27 = vcombine.low %v7727_v59, %v7734_v1  ;;  %v7807_v57 = vrot.slane %v7793_v38, %v9892_v31  ;;  %9021 = vmatprep.subr.bf16.mxu0 (!%p8555_p13), %v9020_v40 }
 0x6bc   : > { %8993 = vmatprep.mubr.msk.bf16.mxu0 %vm2629_vm14, %v7735_v27  ;;  %v7808_v51 = vcombine.low %v7800_v36, %v7807_v57 }
 0x6bd   : > { %8994 = vmatmul.mubr.msk.bf16.vlgmr.msra.gmra.mrb[48].mxu0 %vm2629_vm14, %v7750_v61 }
 0x6be   : > { %9023 = vmatpush3.bf16.msra.mxu0 (!%p8555_p13), %v9020_v40 }
 0x6bf   : > { %9025 = vmatprep.subr.bf16.mxu0 (!%p8555_p13), %v9024_v23 }
 0x6c2   : > { %9027 = vmatpush3.bf16.msra.mxu0 (!%p8555_p13), %v9024_v23 }
 0x790   : > { %v8995_v56 = vpop.f32.mrb[48].mxu0 }
 0x791   : > { %v7869_v25 = vadd.f32 %v8995_v56, %v7816_v17  ;;  %v7860_v46 = vpop.f32.mrb[49].mxu0 }
 0x792   : > { %v7861_v3 = vadd.f32 %v7860_v46, %v7791_v20  ;;  %v8996_v53 = vpop.f32.mrb[50].mxu0 }
 0x793   : > { %v7917_v21 = vrot.slane %v7869_v25, %v9892_v31  ;;  %v7863_v55 = vpop.f32.mrb[51].mxu0  ;;  %v8556_v53 = vld [vmem:[%s11179_s17] ss:$0 sm:$0xff] (!%p8555_p13) }
 0x794   : > { %v7877_v41 = vcombine.high %v7861_v3, %v7861_v3  ;;  %v7884_v13 = vrot.slane %v7861_v3, %v9892_v31  ;;  %v7864_v29 = vadd.f32 %v7863_v55, %v7808_v51 }
 0x795   : > { %v7918_v48 = vcombine.high %v7917_v21, %v7917_v21 }
 0x796   : > { %v7891_v60 = vrot.slane %v7877_v41, %v9892_v31  ;;  %v7892_v50 = vcombine.high %v7884_v13, %v7884_v13  ;;  %v7894_v45 = vcombine.high %v7864_v29, %v7864_v29  ;;  %v7901_v2 = vrot.slane %v7864_v29, %v9892_v31 }
 0x797   : > { %v7966_v52 = vrot.slane %v7918_v48, %v9892_v31 }
 0x798   : > { %v7893_v22 = vcombine.high %v7891_v60, %v7891_v60  ;;  %v7919_v6 = vcombine.low %v7884_v13, %v7892_v50  ;;  %v7908_v18 = vrot.slane %v7894_v45, %v9892_v31  ;;  %v7909_v63 = vcombine.high %v7901_v2, %v7901_v2 }
 0x799   : > { %v10935_v12 = vadd.f32 %v9307_v28, %v7966_v52  ;;  %v7942_v26 = vrot.slane %v7901_v2, %v9892_v31  ;;  %v8557_v28 = vld [vmem:[%s11180_s30] ss:$0 sm:$0xff] (!%p8555_p13) }
 0x79a   : > { %v7920_v33 = vcombine.low %v7891_v60, %v7893_v22  ;;  %v7910_v15 = vcombine.high %v7908_v18, %v7908_v18  ;;  %v7943_v44 = vcombine.low %v7909_v63, %v7908_v18  ;;  %v7927_v7 = vrot.slane %v7919_v6, %v9892_v31 }
 0x79b   : > { %7978 = vst.msk [vmem:[#allocation2 + $0x18] sm:$0x3] %vm1403_vm9, %v10935_v12  ;;  %v10940_v42 = vadd.f32 %v9308_v47, %v7942_v26  ;;  %v7986_v59 = vmul.f32 (!%p8555_p13), %v10935_v12, %v10935_v12 }
 0x79c   : > { %v7934_v24 = vrot.slane %v7920_v33, %v9892_v31  ;;  %v7944_v5 = vcombine.low %v7910_v15, %v7917_v21  ;;  %v7951_v49 = vrot.slane %v7943_v44, %v9892_v31 }
 0x79d   : > { %7976 = vst.msk [vmem:[#allocation2 + $0x8] sm:$0x3] %vm1403_vm9, %v10940_v42  ;;  %v7996_v61 = vsel (!%p8555_p13), %vm1403_vm9, %v7986_v59, 0.0 }
 0x79e   : > { %v7935_v54 = vcombine.low %v7927_v7, %v7934_v24  ;;  %v7958_v14 = vrot.slane %v7944_v5, %v9892_v31  ;;  %7982 = sbr.rel (%p8555_p13) target bundleno = 2345 (0x929), region = 136  ;;  %v7984_v31 = vmul.f32 (!%p8555_p13), %v10940_v42, %v10940_v42 }
 0x7a0   : > { %v7971_v19 = vadd.f32 %v9309_v37, %v7935_v54  ;;  %v7959_v10 = vcombine.low %v7951_v49, %v7958_v14  ;;  %v7990_v32 = vsel (!%p8555_p13), %vm1403_vm9, %v7984_v31, 0.0 }
 0x7a2   : > { %7975 = vst.msk [vmem:[#allocation2] sm:$0xff] %vm1399_vm8, %v7971_v19  ;;  %v7973_v9 = vadd.f32 %v9310_v0, %v7959_v10  ;;  %v7983_v11 = vmul.f32 (!%p8555_p13), %v7971_v19, %v7971_v19 }
 0x7a4   : > { %7977 = vst.msk [vmem:[#allocation2 + $0x10] sm:$0xff] %vm1399_vm8, %v7973_v9  ;;  %v7985_v58 = vmul.f32 (!%p8555_p13), %v7973_v9, %v7973_v9  ;;  %v7987_v27 = vsel (!%p8555_p13), %vm1399_vm8, %v7983_v11, 0.0 }
 0x7a5   : > { %7988 = vadd.xlane.f32.xlu0 %v7987_v27 }
 0x7a6   : > { %v7993_v1 = vsel %vm1399_vm8, %v7985_v58, 0.0 }
 0x7a7   : > { %7994 = vadd.xlane.f32.xlu1 %v7993_v1 }
 0x7a9   : > { %7991 = vadd.xlane.f32.xlu0 %v7990_v32 }
 0x7ab   : > { %7997 = vadd.xlane.f32.xlu1 %v7996_v61 }
 0x832   : > { %v7989_v30 = vpop.xlane.xlu0 %7988 }
 0x833   : > { %v7999_v4 = vmul.f32 0.03125, %v7989_v30 }
 0x834   : > { %v7995_v39 = vpop.xlane.xlu1 %7994 }
 0x835   : > { %v8001_v38 = vmul.f32 0.03125, %v7995_v39  ;;  %v8003_v62 = vadd.f32 1e-05, %v7999_v4 }
 0x836   : > { %v7992_v57 = vpop.xlane.xlu0 %7991 }
 0x837   : > { %v8005_v8 = vadd.f32 1e-05, %v8001_v38  ;;  %v8000_v20 = vmul.f32 0.03125, %v7992_v57 }
 0x838   : > { %v7998_v36 = vpop.xlane.xlu1 %7997 }
 0x839   : > { %9311 = vrsqrt.f32 %v8005_v8  ;;  %v8002_v17 = vmul.f32 0.03125, %v7998_v36  ;;  %v8004_v51 = vadd.f32 1e-05, %v8000_v20 }
 0x83a   : > { %9313 = vrsqrt.f32 %v8003_v62 }
 0x83b   : > { %v8006_v56 = vadd.f32 1e-05, %v8002_v17 }
 0x83d   : > { %9315 = vrsqrt.f32 %v8006_v56 }
 0x83e   : > { %9317 = vrsqrt.f32 %v8004_v51 }
 0x843   : > { %v9312_v25 = vpop.eup %9311 }
 0x844   : > { %v9314_v46 = vpop.eup %9313  ;;  %v8013_v3 = vmul.f32 %v9312_v25, %v7973_v9 }
 0x845   : > { %v8011_v21 = vmul.f32 %v9314_v46, %v7971_v19 }
 0x846   : > { %v8024_v13 = vmul.f32 %v8556_v53, %v8013_v3 }
 0x847   : > { %v9316_v55 = vpop.eup %9315  ;;  %v8022_v60 = vmul.f32 %v8556_v53, %v8011_v21 }
 0x848   : > { %v9318_v41 = vpop.eup %9317  ;;  %v8014_v29 = vmul.f32 %v9316_v55, %v10935_v12  ;;  %v8045_v52 = vrot.slane %v8024_v13, 2 }
 0x849   : > { %v8012_v48 = vmul.f32 %v9318_v41, %v10940_v42  ;;  %v8042_v22 = vrot.slane %v8022_v60, 2 }
 0x84a   : > { %v8025_v50 = vmul.f32 %v8556_v53, %v8014_v29 }
 0x84b   : > { %v8023_v45 = vmul.f32 %v8556_v53, %v8012_v48 }
 0x84c   : > { %v8046_v2 = vrot.slane %v8025_v50, 2 }
 0x84d   : > { %v8043_v6 = vrot.slane %v8023_v45, 2 }
 0x84e   : > { %v8047_v18 = vsel %vm8041_vm2, %v8045_v52, %v8046_v2 }
 0x84f   : > { %v8044_v63 = vsel %vm8041_vm2, %v8042_v22, %v8043_v6 }
 0x850   : > { %9005 = vmatprep.mubr.msk.f32.mxu0 %vm1399_vm8, %v8044_v63 }
 0x851   : > { %9006 = vmatmul.mubr.msk.f32.vlgmr.msra.gmra.mrb[0].mxu0 %vm1399_vm8, %v8047_v18 }
 0x924   : > { %v9007_v12 = vpop.f32.mrb[0].mxu0 }
 0x925   : > { %v8124_v26 = vadd.f32 %v9007_v12, %v8557_v28  ;;  %v8118_v33 = vpop.f32.mrb[1].mxu0 }
 0x926   : > { %v8119_v15 = vadd.f32 %v8557_v28, %v8118_v33 }
 0x927   : > { %8128 = vst [vmem:[%s9804_s7 + $0x8] sm:$0xff] %v8124_v26 }
 0x928   : > { %8127 = vst [vmem:[%s9804_s7] sm:$0xff] %v8119_v15 }
 0x929 PF: > { %s11181_s14 = sld [smem:[#allocation14_spill]]  ;;  %s11182_s27 = sld [smem:[#allocation11_spill]] }
 0x92a   : > { %s11183_s28 = sld [smem:[#allocation19_spill]]  ;;  %s11184_s26 = sld [smem:[#allocation45_spill]] }
 0x92b   : > { %s8143_s3 = sshll.u32 %s9804_s7, 4  ;;  %s9457_s13 = smov [#allocation7]   ;;  %s10990_s3 = int_to_ptr.vmem [resolvable:$true] %s8143_s3 }
 0x92c   : > { %s9347_s10 = scalar_lea.vmem %s10990_s3, 256  ;;  %s9351_s25 = sshll.u32 %s9457_s13, 4  ;;  %s9352_s25 = int_to_ptr.vmem [resolvable:$false] %s9351_s25 }
 0x92d   : > { %p9348_p0 = scmp.ne.s32.totalorder %s10990_s3, %s9347_s10  ;;  %s9353_s22 = scalar_lea.vmem %s9352_s25, 512 }
 0x92e   : > { %p9354_p7 = scmp.lt.s32.totalorder %s10990_s3, %s9352_s25  ;;  %p9355_p8 = scmp.lt.s32.totalorder %s9353_s22, %s9347_s10 }
 0x92f   : > { %s8572_s4 = sshll.u32 %s11181_s14, 8  ;;  %s11185_s11 = sand.u32 1, %s11182_s27  }
 0x930   : > { %s10987_s0 = scalar_lea.hbm %s11184_s26, %s8572_s4  ;;  %s10994_s8 = scalar_lea.sflag [#allocation6], %s11185_s11 }
 0x931   : > { %p11186_p2 = scmp.ne.s32.totalorder %s11183_s28, 0  ;;  %p9356_p11 = por %p9355_p8, %p9354_p7 }
 0x933   : > { %p9349_p5 = pnand %p9348_p0, %p11186_p2 }
 0x935   : > { %p9350_p6 = pneg %p9349_p5 }
 0x937   : > { %p9357_p12 = pnand %p9356_p11, %p9350_p6 }
 0x939   : > { %9360 = shalt.err (!%p9357_p12)
}
 0x93a   : > { %s9361_s7 = scalar_lea.hbm %s10987_s0, 256  ;;  %s9365_s17 = scalar_lea.hbm %s11184_s26, 512 }
 0x93b   : > { %p9362_p1 = scmp.ne.s32.totalorder %s10987_s0, %s9361_s7  ;;  %p9366_p9 = scmp.lt.u32.totalorder %s10987_s0, %s11184_s26 }
 0x93c   : > { %p9367_p10 = scmp.lt.u32.totalorder %s9365_s17, %s9361_s7  ;;  %p9369_p0 = scmp.lt.u32.totalorder %s9361_s7, %s10987_s0 }
 0x93d   : > { %p9363_p4 = pnand %p9362_p1, %p11186_p2 }
 0x93e   : > { %p9368_p13 = por %p9367_p10, %p9366_p9 }
 0x93f   : > { %p9364_p3 = pneg %p9363_p4 }
 0x940   : > { %p9370_p5 = por %p9369_p0, %p9368_p13 }
 0x942   : > { %p9371_p6 = pnand %p9370_p5, %p9364_p3 }
 0x944   : > { %9374 = shalt.err (!%p9371_p6)
}
 0x945   : > { %s9458_s30 = smov 128   ;;  %s9459_s14 = smov 8  }
 0x946   : > { %9032 = dma.vmem_to_hbm [thread:$0]  (%p11186_p2), %s10990_s3, 256, %s10987_s0, %s10994_s8, %s9458_s30, %s9458_s30, %s9459_s14  }
 0x947 PF: > { %s11187_s27 = sld [smem:[#allocation17_spill]]  ;;  %s11188_s4 = sld [smem:[#allocation10_spill]] }
 0x948   : > { %s11189_s29 = sld [smem:[#allocation21_spill]] }
 0x94d   : > { %p9044_p7 = scmp.ge.s32.totalorder %s11187_s27, 2  ;;  %s8158_s5 = sand.u32 1, %s11188_s4  }
 0x94e   : > { %p11190_p8 = scmp.ne.s32.totalorder %s11189_s29, 0  ;;  %s8159_s11 = scalar_lea.sflag [#allocation6], %s8158_s5 }
 0x950   : > { %p9039_p11 = pnand %p9044_p7, %p11190_p8 }
 0x952   : > { %9412 = dma.done.wait (!%p9039_p11), %s8159_s11, 256  }
 0x953   : > { %9414 = vsyncadd (!%p9039_p11), %s8159_s11, 4294967040  ;;  %s40_s0 = sadd.s32 1, %s11187_s27   ;;  %s11191_s27 = sld [smem:[#allocation11_spill]] }
 0x954   : > { %p37_p12 = scmp.ge.s32.totalorder %s40_s0, 6   ;;  %s11192_s3 = sld [smem:[#allocation12_spill]] }
 0x955   : > { %s11193_s7 = sld [smem:[#allocation22_spill]]  ;;  %s11194_s28 = sld [smem:[#allocation15_spill]] }
 0x956   : > { %s11195_s8 = sld [smem:[#allocation16_spill]]  ;;  %s11196_s4 = sld [smem:[#allocation18_spill]] }
 0x957   : > { %s11197_s29 = sld [smem:[#allocation20_spill]]  ;;  %39 = sbr.rel (!%p37_p12) target bundleno = 28 (0x1c), region = 228 }
 0x95e   :  { %8164 = vsyncpa [#allocation5], 1 }
 0x95f   :  { %8166 = vsyncpa [#allocation5 + $0x1], 1 }
 0x960   :  { %8167 = vsyncpa [#allocation6], 1 }
 0x961   :  { %8169 = vsyncpa [#allocation6 + $0x1], 1 }

</bundles_post_ra>
